<compile_context>
chip_gen: v5e
topology: v5e:2x2
jax: 0.10.0
libtpu: 0.0.40
codegen_flags: <defaults>
</compile_context>

<pallas_src>
import functools
import math

import jax
import jax.numpy as jnp
from jax.experimental import pallas as pl
from jax.experimental.pallas import tpu as pltpu

# Synthetic hyper-params implied by the module's __init__ (small, TPU-friendly).
DECODER_INPUT_CHANNELS = 32
HIDDEN_LAYER_CHANNELS = 64
OUT_CHANNELS = 3

PACK = 4  # pixels packed per 128-lane row (4 * 32 input channels = 128 lanes)

_INV_SQRT2 = 0.7071067811865476
_SQRT_2_OVER_PI = math.sqrt(2.0 / math.pi)


def _erf_poly(z):
    """erf via Abramowitz & Stegun 7.1.26 (max abs error ~1.5e-7).

    Built only from mul/add/div/exp/select so it lowers in Mosaic unconditionally.
    TODO(synk): switch to jax.lax.erf if the Mosaic build lowers erf_p natively.
    """
    p = 0.3275911
    a1, a2, a3, a4, a5 = 0.254829592, -0.284496736, 1.421413741, -1.453152027, 1.061405429
    za = jnp.where(z >= 0.0, z, -z)
    t = 1.0 / (1.0 + p * za)
    poly = ((((a5 * t + a4) * t + a3) * t + a2) * t + a1) * t
    r = 1.0 - poly * jnp.exp(-za * za)
    return jnp.where(z >= 0.0, r, -r)


def _gelu_exact(x, erf_fn):
    # PyTorch nn.GELU() default ("none") = exact erf formulation.
    return 0.5 * x * (1.0 + erf_fn(x * _INV_SQRT2))


def _gelu_tanh(x):
    # tanh approximation -> EUP tanh slot instead of a long VALU polynomial chain.
    return 0.5 * x * (1.0 + jnp.tanh(_SQRT_2_OVER_PI * (x + 0.044715 * x * x * x)))


def _make_kernel(exact: bool):
    def gelu(x):
        return _gelu_exact(x, _erf_poly) if exact else _gelu_tanh(x)

    def kernel(x_ref, w1_ref, b1_ref, w2_ref, b2_ref, w3_ref, b3_ref, o_ref):
        # Layer 1: (tm, 128) @ (128, 256); f32 accumulate on the MXU.
        h = jnp.dot(x_ref[...], w1_ref[...], preferred_element_type=jnp.float32)
        h = gelu(h + b1_ref[...])
        if not exact:
            h = h.astype(jnp.bfloat16)            # bf16 MXU operands on the fast path
        # Layer 2: (tm, 256) @ (256, 256).
        h = jnp.dot(h, w2_ref[...], preferred_element_type=jnp.float32)
        h = gelu(h + b2_ref[...])
        if not exact:
            h = h.astype(jnp.bfloat16)
        # Layer 3 + sigmoid: (tm, 256) @ (256, 12).  Output columns are NOT padded.
        h = jnp.dot(h, w3_ref[...], preferred_element_type=jnp.float32) + b3_ref[...]
        if exact:
            o = 1.0 / (1.0 + jnp.exp(-h))
        else:
            o = pl.reciprocal(1.0 + jnp.exp(-h), approx=True)   # EUP reciprocal
        o_ref[...] = o.astype(o_ref.dtype)

    return kernel


def _block_diag(w, k):
    """Block-diagonal replication: (fi, fo) -> (k*fi, k*fo)."""
    fi, fo = w.shape
    bd = jnp.zeros((k * fi, k * fo), w.dtype)
    for g in range(k):
        bd = bd.at[g * fi:(g + 1) * fi, g * fo:(g + 1) * fo].set(w)
    return bd


@functools.partial(jax.jit, static_argnames=("tm", "exact"))
def color_decoder(x, w1, b1, w2, b2, w3, b3, *, tm=512, exact=True):
    """x: (N, C_in) -> (N, C_out).  `tm` is the row tile in PACKED rows (PACK px each)."""
    N, C_in = x.shape
    H = w1.shape[1]
    C_out = w3.shape[1]

    mat_dtype = jnp.float32 if exact else jnp.bfloat16
    out_dtype = jnp.float32 if exact else jnp.bfloat16
    itemsz = 4 if exact else 2

    # ---- 4-way packing: (N, C_in) -> (N/PACK, PACK*C_in). Pad N only to a multiple of
    # PACK (<= 3 dead rows) — no tile-sized row padding / no extra HBM pass over x. ----
    N4 = ((N + PACK - 1) // PACK) * PACK
    x_p = jnp.pad(x, ((0, N4 - N), (0, 0))) if N4 != N else x
    n_rows = N4 // PACK
    x_pk = x_p.reshape(n_rows, PACK * C_in).astype(mat_dtype)

    # Block-diagonal packed weights (built once; resident in VMEM for the whole grid).
    w1_bd = _block_diag(w1.astype(mat_dtype), PACK)   # (PACK*C_in, PACK*H)   = (128, 256)
    w2_bd = _block_diag(w2.astype(mat_dtype), PACK)   # (PACK*H,    PACK*H)   = (256, 256)
    w3_bd = _block_diag(w3.astype(mat_dtype), PACK)   # (PACK*H,    PACK*C_out)=(256, 12)
    b1_t = jnp.tile(b1.astype(jnp.float32), PACK).reshape(1, PACK * H)
    b2_t = jnp.tile(b2.astype(jnp.float32), PACK).reshape(1, PACK * H)
    b3_t = jnp.tile(b3.astype(jnp.float32), PACK).reshape(1, PACK * C_out)

    # Row tile: multiple of 8 sublanes, no larger than needed; last grid block may be
    # ragged (Pallas clips its DMA and masks its writes).
    tm = max(8, (tm // 8) * 8)
    tm_eff = min(tm, ((n_rows + 7) // 8) * 8)
    grid = (pl.cdiv(n_rows, tm_eff),)

    K1, N1 = PACK * C_in, PACK * H
    K2, N2 = PACK * H, PACK * H
    K3, N3 = PACK * H, PACK * C_out

    cost = pl.CostEstimate(
        flops=2 * n_rows * (K1 * N1 + K2 * N2 + K3 * N3),
        transcendentals=n_rows * (2 * N1 + N3),
        bytes_accessed=(n_rows * (K1 + N3) * itemsz
                        + (w1_bd.size + w2_bd.size + w3_bd.size) * itemsz
                        + (b1_t.size + b2_t.size + b3_t.size) * 4),
    )

    const = lambda shape: pl.BlockSpec(shape, lambda i: (0, 0))   # resident weights

    out = pl.pallas_call(
        _make_kernel(exact),
        out_shape=jax.ShapeDtypeStruct((n_rows, N3), out_dtype),
        grid_spec=pltpu.PrefetchScalarGridSpec(
            num_scalar_prefetch=0,
            grid=grid,
            in_specs=[
                pl.BlockSpec((tm_eff, K1), lambda i: (i, 0)),  # packed x row tile
                const((K1, N1)),                               # W1 (block-diag)
                const((1, N1)),                                # b1 (tiled)
                const((K2, N2)),                               # W2 (block-diag)
                const((1, N2)),                                # b2 (tiled)
                const((K3, N3)),                               # W3 (block-diag, un-padded)
                const((1, N3)),                                # b3 (tiled)
            ],
            out_specs=pl.BlockSpec((tm_eff, N3), lambda i: (i, 0)),
        ),
        compiler_params=pltpu.CompilerParams(
            dimension_semantics=("parallel",)),   # row tiles shard across TCs on v7x
        cost_estimate=cost,
    )(x_pk, w1_bd, b1_t, w2_bd, b2_t, w3_bd, b3_t)

    # Un-pack: group g of packed row r is pixel PACK*r + g -> plain row-major reshape.
    # TODO(synk): pack factor 8 for layer 1 (K=256) if a bundle dump still shows the
    # vmatmul/vex slot saturating on v6e/v7x.
    # TODO(synk): strict fp32 PyTorch parity would additionally pass precision=HIGHEST
    # to the in-kernel dots on the exact path.
    return out.reshape(N4, C_out)[:N]


def _init_linear(key, fan_in, fan_out):
    # Deterministic PyTorch-style (Kaiming-uniform-ish) init: U(-1/sqrt(fan_in), ...).
    kw, kb = jax.random.split(key)
    bound = 1.0 / math.sqrt(fan_in)
    w = jax.random.uniform(kw, (fan_in, fan_out), jnp.float32, -bound, bound)
    b = jax.random.uniform(kb, (fan_out,), jnp.float32, -bound, bound)
    return w, b


def _reference(x, w1, b1, w2, b2, w3, b3):
    hp = jax.lax.Precision.HIGHEST
    h = _gelu_exact(jnp.dot(x, w1, precision=hp) + b1, jax.lax.erf)
    h = _gelu_exact(jnp.dot(h, w2, precision=hp) + b2, jax.lax.erf)
    return jax.nn.sigmoid(jnp.dot(h, w3, precision=hp) + b3)


if __name__ == "__main__":
    key = jax.random.PRNGKey(0)
    kx, kx2, k1, k2, k3 = jax.random.split(key, 5)

    w1, b1 = _init_linear(k1, DECODER_INPUT_CHANNELS, HIDDEN_LAYER_CHANNELS)
    w2, b2 = _init_linear(k2, HIDDEN_LAYER_CHANNELS, HIDDEN_LAYER_CHANNELS)
    w3, b3 = _init_linear(k3, HIDDEN_LAYER_CHANNELS, OUT_CHANNELS)

    # Small, deliberately ragged batch (not a multiple of PACK or of the row tile).
    N = 530
    x = jax.random.normal(kx, (N, DECODER_INPUT_CHANNELS), jnp.float32)
    ref = _reference(x, w1, b1, w2, b2, w3, b3)

    # 1) exact path (erf GELU, exact sigmoid, f32 matmul operands).
    out = jax.block_until_ready(color_decoder(x, w1, b1, w2, b2, w3, b3))
    assert out.shape == (N, OUT_CHANNELS)
    assert jnp.allclose(out, ref, atol=5e-3, rtol=5e-3), "exact-path mismatch vs reference"

    # 2) fast path (bf16 matmuls, tanh GELU, EUP approx-reciprocal sigmoid, bf16 out).
    out_fast = jax.block_until_ready(
        color_decoder(x, w1, b1, w2, b2, w3, b3, exact=False))
    assert out_fast.shape == (N, OUT_CHANNELS)
    assert jnp.allclose(out_fast.astype(jnp.float32), ref, atol=3e-2, rtol=3e-2), \
        "fast-path mismatch vs reference"

    # 3) multi-step grid + ragged last block (1025 packed rows over tm=512 -> grid=3).
    N2 = 4100
    x2 = jax.random.normal(kx2, (N2, DECODER_INPUT_CHANNELS), jnp.float32)
    ref2 = _reference(x2, w1, b1, w2, b2, w3, b3)
    out2 = jax.block_until_ready(color_decoder(x2, w1, b1, w2, b2, w3, b3))
    assert out2.shape == (N2, OUT_CHANNELS)
    assert jnp.allclose(out2, ref2, atol=5e-3, rtol=5e-3), "multi-block mismatch vs reference"

    print("KERNEL_OK")
</pallas_src>

<mosaic_0001>
module attributes {stable_mosaic.version = 11 : i64} {
  func.func @kernel(%arg0: i32, %arg1: memref<136x128xf32, #tpu.memory_space<vmem>>, %arg2: memref<128x256xf32, #tpu.memory_space<vmem>>, %arg3: memref<1x256xf32, #tpu.memory_space<vmem>>, %arg4: memref<256x256xf32, #tpu.memory_space<vmem>>, %arg5: memref<1x256xf32, #tpu.memory_space<vmem>>, %arg6: memref<256x12xf32, #tpu.memory_space<vmem>>, %arg7: memref<1x12xf32, #tpu.memory_space<vmem>>, %arg8: memref<136x12xf32, #tpu.memory_space<vmem>>) attributes {dimension_semantics = [#tpu.dimension_semantics<parallel>], iteration_bounds = array<i64: 1>, scalar_prefetch = 0 : i64, scratch_operands = 0 : i64, tpu.core_type = #tpu.core_type<tc>, window_params = [{transform_indices = @transform_0, window_bounds = array<i64: 136, 128>}, {pipeline_mode = #tpu.pipeline_mode<synchronous>, transform_indices = @transform_1, window_bounds = array<i64: 128, 256>}, {pipeline_mode = #tpu.pipeline_mode<synchronous>, transform_indices = @transform_2, window_bounds = array<i64: 1, 256>}, {pipeline_mode = #tpu.pipeline_mode<synchronous>, transform_indices = @transform_3, window_bounds = array<i64: 256, 256>}, {pipeline_mode = #tpu.pipeline_mode<synchronous>, transform_indices = @transform_4, window_bounds = array<i64: 1, 256>}, {pipeline_mode = #tpu.pipeline_mode<synchronous>, transform_indices = @transform_5, window_bounds = array<i64: 256, 12>}, {pipeline_mode = #tpu.pipeline_mode<synchronous>, transform_indices = @transform_6, window_bounds = array<i64: 1, 12>}, {transform_indices = @transform_7, window_bounds = array<i64: 136, 12>}]} {
    %c0 = arith.constant 0 : index
    %c0_0 = arith.constant 0 : index
    %0 = vector.load %arg1[%c0, %c0_0] : memref<136x128xf32, #tpu.memory_space<vmem>>, vector<136x128xf32>
    %c0_1 = arith.constant 0 : index
    %c0_2 = arith.constant 0 : index
    %1 = vector.load %arg2[%c0_1, %c0_2] : memref<128x256xf32, #tpu.memory_space<vmem>>, vector<128x256xf32>
    %cst = arith.constant dense<0.000000e+00> : vector<136x256xf32>
    %2 = tpu.matmul %0, %1, %cst {dimension_numbers = #tpu.dot_dimension_numbers<[1], [0], [0], [1], [0, 0, 1, 1], [], []>} : vector<136x128xf32>, vector<128x256xf32>, vector<136x256xf32> -> vector<136x256xf32>
    %c0_3 = arith.constant 0 : index
    %c0_4 = arith.constant 0 : index
    %3 = vector.load %arg3[%c0_3, %c0_4] : memref<1x256xf32, #tpu.memory_space<vmem>>, vector<1x256xf32>
    %4 = vector.broadcast %3 : vector<1x256xf32> to vector<136x256xf32>
    %5 = arith.addf %2, %4 : vector<136x256xf32>
    %cst_5 = arith.constant 5.000000e-01 : f32
    %6 = vector.broadcast %cst_5 : f32 to vector<136x256xf32>
    %7 = arith.mulf %6, %5 : vector<136x256xf32>
    %cst_6 = arith.constant 0.707106769 : f32
    %8 = vector.broadcast %cst_6 : f32 to vector<136x256xf32>
    %9 = arith.mulf %5, %8 : vector<136x256xf32>
    %cst_7 = arith.constant 0.000000e+00 : f32
    %10 = vector.broadcast %cst_7 : f32 to vector<136x256xf32>
    %11 = arith.cmpf oge, %9, %10 : vector<136x256xf32>
    %cst_8 = arith.constant 0.000000e+00 : f32
    %12 = vector.broadcast %cst_8 : f32 to vector<136x256xf32>
    %13 = arith.subf %12, %9 : vector<136x256xf32>
    %14 = arith.select %11, %9, %13 : vector<136x256xi1>, vector<136x256xf32>
    %cst_9 = arith.constant 0.327591091 : f32
    %15 = vector.broadcast %cst_9 : f32 to vector<136x256xf32>
    %16 = arith.mulf %15, %14 : vector<136x256xf32>
    %cst_10 = arith.constant 1.000000e+00 : f32
    %17 = vector.broadcast %cst_10 : f32 to vector<136x256xf32>
    %18 = arith.addf %17, %16 : vector<136x256xf32>
    %cst_11 = arith.constant 1.000000e+00 : f32
    %19 = vector.broadcast %cst_11 : f32 to vector<136x256xf32>
    %20 = arith.divf %19, %18 : vector<136x256xf32>
    %cst_12 = arith.constant 1.06140542 : f32
    %21 = vector.broadcast %cst_12 : f32 to vector<136x256xf32>
    %22 = arith.mulf %21, %20 : vector<136x256xf32>
    %cst_13 = arith.constant -1.45315206 : f32
    %23 = vector.broadcast %cst_13 : f32 to vector<136x256xf32>
    %24 = arith.addf %22, %23 : vector<136x256xf32>
    %25 = arith.mulf %24, %20 : vector<136x256xf32>
    %cst_14 = arith.constant 1.42141378 : f32
    %26 = vector.broadcast %cst_14 : f32 to vector<136x256xf32>
    %27 = arith.addf %25, %26 : vector<136x256xf32>
    %28 = arith.mulf %27, %20 : vector<136x256xf32>
    %cst_15 = arith.constant -0.284496725 : f32
    %29 = vector.broadcast %cst_15 : f32 to vector<136x256xf32>
    %30 = arith.addf %28, %29 : vector<136x256xf32>
    %31 = arith.mulf %30, %20 : vector<136x256xf32>
    %cst_16 = arith.constant 0.254829586 : f32
    %32 = vector.broadcast %cst_16 : f32 to vector<136x256xf32>
    %33 = arith.addf %31, %32 : vector<136x256xf32>
    %34 = arith.mulf %33, %20 : vector<136x256xf32>
    %cst_17 = arith.constant 0.000000e+00 : f32
    %35 = vector.broadcast %cst_17 : f32 to vector<136x256xf32>
    %36 = arith.subf %35, %14 : vector<136x256xf32>
    %37 = arith.mulf %36, %14 : vector<136x256xf32>
    %38 = math.exp %37 : vector<136x256xf32>
    %39 = arith.mulf %34, %38 : vector<136x256xf32>
    %cst_18 = arith.constant 1.000000e+00 : f32
    %40 = vector.broadcast %cst_18 : f32 to vector<136x256xf32>
    %41 = arith.subf %40, %39 : vector<136x256xf32>
    %cst_19 = arith.constant 0.000000e+00 : f32
    %42 = vector.broadcast %cst_19 : f32 to vector<136x256xf32>
    %43 = arith.cmpf oge, %9, %42 : vector<136x256xf32>
    %cst_20 = arith.constant 0.000000e+00 : f32
    %44 = vector.broadcast %cst_20 : f32 to vector<136x256xf32>
    %45 = arith.subf %44, %41 : vector<136x256xf32>
    %46 = arith.select %43, %41, %45 : vector<136x256xi1>, vector<136x256xf32>
    %cst_21 = arith.constant 1.000000e+00 : f32
    %47 = vector.broadcast %cst_21 : f32 to vector<136x256xf32>
    %48 = arith.addf %47, %46 : vector<136x256xf32>
    %49 = arith.mulf %7, %48 : vector<136x256xf32>
    %c0_22 = arith.constant 0 : index
    %c0_23 = arith.constant 0 : index
    %50 = vector.load %arg4[%c0_22, %c0_23] : memref<256x256xf32, #tpu.memory_space<vmem>>, vector<256x256xf32>
    %cst_24 = arith.constant dense<0.000000e+00> : vector<136x256xf32>
    %51 = tpu.matmul %49, %50, %cst_24 {dimension_numbers = #tpu.dot_dimension_numbers<[1], [0], [0], [1], [0, 0, 1, 1], [], []>} : vector<136x256xf32>, vector<256x256xf32>, vector<136x256xf32> -> vector<136x256xf32>
    %c0_25 = arith.constant 0 : index
    %c0_26 = arith.constant 0 : index
    %52 = vector.load %arg5[%c0_25, %c0_26] : memref<1x256xf32, #tpu.memory_space<vmem>>, vector<1x256xf32>
    %53 = vector.broadcast %52 : vector<1x256xf32> to vector<136x256xf32>
    %54 = arith.addf %51, %53 : vector<136x256xf32>
    %cst_27 = arith.constant 5.000000e-01 : f32
    %55 = vector.broadcast %cst_27 : f32 to vector<136x256xf32>
    %56 = arith.mulf %55, %54 : vector<136x256xf32>
    %cst_28 = arith.constant 0.707106769 : f32
    %57 = vector.broadcast %cst_28 : f32 to vector<136x256xf32>
    %58 = arith.mulf %54, %57 : vector<136x256xf32>
    %cst_29 = arith.constant 0.000000e+00 : f32
    %59 = vector.broadcast %cst_29 : f32 to vector<136x256xf32>
    %60 = arith.cmpf oge, %58, %59 : vector<136x256xf32>
    %cst_30 = arith.constant 0.000000e+00 : f32
    %61 = vector.broadcast %cst_30 : f32 to vector<136x256xf32>
    %62 = arith.subf %61, %58 : vector<136x256xf32>
    %63 = arith.select %60, %58, %62 : vector<136x256xi1>, vector<136x256xf32>
    %cst_31 = arith.constant 0.327591091 : f32
    %64 = vector.broadcast %cst_31 : f32 to vector<136x256xf32>
    %65 = arith.mulf %64, %63 : vector<136x256xf32>
    %cst_32 = arith.constant 1.000000e+00 : f32
    %66 = vector.broadcast %cst_32 : f32 to vector<136x256xf32>
    %67 = arith.addf %66, %65 : vector<136x256xf32>
    %cst_33 = arith.constant 1.000000e+00 : f32
    %68 = vector.broadcast %cst_33 : f32 to vector<136x256xf32>
    %69 = arith.divf %68, %67 : vector<136x256xf32>
    %cst_34 = arith.constant 1.06140542 : f32
    %70 = vector.broadcast %cst_34 : f32 to vector<136x256xf32>
    %71 = arith.mulf %70, %69 : vector<136x256xf32>
    %cst_35 = arith.constant -1.45315206 : f32
    %72 = vector.broadcast %cst_35 : f32 to vector<136x256xf32>
    %73 = arith.addf %71, %72 : vector<136x256xf32>
    %74 = arith.mulf %73, %69 : vector<136x256xf32>
    %cst_36 = arith.constant 1.42141378 : f32
    %75 = vector.broadcast %cst_36 : f32 to vector<136x256xf32>
    %76 = arith.addf %74, %75 : vector<136x256xf32>
    %77 = arith.mulf %76, %69 : vector<136x256xf32>
    %cst_37 = arith.constant -0.284496725 : f32
    %78 = vector.broadcast %cst_37 : f32 to vector<136x256xf32>
    %79 = arith.addf %77, %78 : vector<136x256xf32>
    %80 = arith.mulf %79, %69 : vector<136x256xf32>
    %cst_38 = arith.constant 0.254829586 : f32
    %81 = vector.broadcast %cst_38 : f32 to vector<136x256xf32>
    %82 = arith.addf %80, %81 : vector<136x256xf32>
    %83 = arith.mulf %82, %69 : vector<136x256xf32>
    %cst_39 = arith.constant 0.000000e+00 : f32
    %84 = vector.broadcast %cst_39 : f32 to vector<136x256xf32>
    %85 = arith.subf %84, %63 : vector<136x256xf32>
    %86 = arith.mulf %85, %63 : vector<136x256xf32>
    %87 = math.exp %86 : vector<136x256xf32>
    %88 = arith.mulf %83, %87 : vector<136x256xf32>
    %cst_40 = arith.constant 1.000000e+00 : f32
    %89 = vector.broadcast %cst_40 : f32 to vector<136x256xf32>
    %90 = arith.subf %89, %88 : vector<136x256xf32>
    %cst_41 = arith.constant 0.000000e+00 : f32
    %91 = vector.broadcast %cst_41 : f32 to vector<136x256xf32>
    %92 = arith.cmpf oge, %58, %91 : vector<136x256xf32>
    %cst_42 = arith.constant 0.000000e+00 : f32
    %93 = vector.broadcast %cst_42 : f32 to vector<136x256xf32>
    %94 = arith.subf %93, %90 : vector<136x256xf32>
    %95 = arith.select %92, %90, %94 : vector<136x256xi1>, vector<136x256xf32>
    %cst_43 = arith.constant 1.000000e+00 : f32
    %96 = vector.broadcast %cst_43 : f32 to vector<136x256xf32>
    %97 = arith.addf %96, %95 : vector<136x256xf32>
    %98 = arith.mulf %56, %97 : vector<136x256xf32>
    %c0_44 = arith.constant 0 : index
    %c0_45 = arith.constant 0 : index
    %99 = vector.load %arg6[%c0_44, %c0_45] : memref<256x12xf32, #tpu.memory_space<vmem>>, vector<256x12xf32>
    %cst_46 = arith.constant dense<0.000000e+00> : vector<136x12xf32>
    %100 = tpu.matmul %98, %99, %cst_46 {dimension_numbers = #tpu.dot_dimension_numbers<[1], [0], [0], [1], [0, 0, 1, 1], [], []>} : vector<136x256xf32>, vector<256x12xf32>, vector<136x12xf32> -> vector<136x12xf32>
    %c0_47 = arith.constant 0 : index
    %c0_48 = arith.constant 0 : index
    %101 = vector.load %arg7[%c0_47, %c0_48] : memref<1x12xf32, #tpu.memory_space<vmem>>, vector<1x12xf32>
    %102 = vector.broadcast %101 : vector<1x12xf32> to vector<136x12xf32>
    %103 = arith.addf %100, %102 : vector<136x12xf32>
    %cst_49 = arith.constant 0.000000e+00 : f32
    %104 = vector.broadcast %cst_49 : f32 to vector<136x12xf32>
    %105 = arith.subf %104, %103 : vector<136x12xf32>
    %106 = math.exp %105 : vector<136x12xf32>
    %cst_50 = arith.constant 1.000000e+00 : f32
    %107 = vector.broadcast %cst_50 : f32 to vector<136x12xf32>
    %108 = arith.addf %107, %106 : vector<136x12xf32>
    %cst_51 = arith.constant 1.000000e+00 : f32
    %109 = vector.broadcast %cst_51 : f32 to vector<136x12xf32>
    %110 = arith.divf %109, %108 : vector<136x12xf32>
    %c0_52 = arith.constant 0 : index
    %c0_53 = arith.constant 0 : index
    %111 = vector.load %arg8[%c0_52, %c0_53] : memref<136x12xf32, #tpu.memory_space<vmem>>, vector<136x12xf32>
    tpu.vector_store %arg8[%c0_52, %c0_53], %110 {strides = array<i32>} : memref<136x12xf32, #tpu.memory_space<vmem>>, vector<136x12xf32>,
    return
  }
  func.func @transform_0(%arg0: i32) -> (i32, i32) {
    %c0_i32 = arith.constant 0 : i32
    %c0_i32_0 = arith.constant 0 : i32
    return %arg0, %c0_i32 : i32, i32
  }
  func.func @transform_1(%arg0: i32) -> (i32, i32) {
    %c0_i32 = arith.constant 0 : i32
    %c0_i32_0 = arith.constant 0 : i32
    %c0_i32_1 = arith.constant 0 : i32
    return %c0_i32, %c0_i32_0 : i32, i32
  }
  func.func @transform_2(%arg0: i32) -> (i32, i32) {
    %c0_i32 = arith.constant 0 : i32
    %c0_i32_0 = arith.constant 0 : i32
    %c0_i32_1 = arith.constant 0 : i32
    return %c0_i32, %c0_i32_0 : i32, i32
  }
  func.func @transform_3(%arg0: i32) -> (i32, i32) {
    %c0_i32 = arith.constant 0 : i32
    %c0_i32_0 = arith.constant 0 : i32
    %c0_i32_1 = arith.constant 0 : i32
    return %c0_i32, %c0_i32_0 : i32, i32
  }
  func.func @transform_4(%arg0: i32) -> (i32, i32) {
    %c0_i32 = arith.constant 0 : i32
    %c0_i32_0 = arith.constant 0 : i32
    %c0_i32_1 = arith.constant 0 : i32
    return %c0_i32, %c0_i32_0 : i32, i32
  }
  func.func @transform_5(%arg0: i32) -> (i32, i32) {
    %c0_i32 = arith.constant 0 : i32
    %c0_i32_0 = arith.constant 0 : i32
    %c0_i32_1 = arith.constant 0 : i32
    return %c0_i32, %c0_i32_0 : i32, i32
  }
  func.func @transform_6(%arg0: i32) -> (i32, i32) {
    %c0_i32 = arith.constant 0 : i32
    %c0_i32_0 = arith.constant 0 : i32
    %c0_i32_1 = arith.constant 0 : i32
    return %c0_i32, %c0_i32_0 : i32, i32
  }
  func.func @transform_7(%arg0: i32) -> (i32, i32) {
    %c0_i32 = arith.constant 0 : i32
    %c0_i32_0 = arith.constant 0 : i32
    return %arg0, %c0_i32 : i32, i32
  }
}

</mosaic_0001>

<bundles_post_ra>
// kernel: tile.18
= control target key start
LH: loop header
LB: loop body
LE: loop exit
PB: predicated region body
PF: predicated region fallthrough
CT: control target
= control target key end

     0   :  { %s22_s0 = inlined_call_operand.vmem [shape: f32[64], index: 0, kind: input, shape index: {}]   ;;  %s23_s1 = inlined_call_operand.vmem [shape: f32[4,64], index: 1, kind: output, shape index: {}]  }
   0x1   :  { %v4_v0 = vld [vmem:[%s22_s0] ss:$0 sm:$0xff] }
   0x2   :  { %5 = vst [vmem:[%s23_s1] sm:$0xf] %v4_v0 }

// kernel: tile.19
= control target key start
LH: loop header
LB: loop body
LE: loop exit
PB: predicated region body
PF: predicated region fallthrough
CT: control target
= control target key end

     0   :  { %s6_s8 = smov 3  ;;  %vm8_vm0 = vcmask 523264   ;;  %s31_s9 = smov 64   ;;  %vm15_vm1 = vcmask 1048064   ;;  %s51_s0 = inlined_call_operand.vmem [shape: f32[4,64], index: 0, kind: input, shape index: {}]   ;;  %s52_s1 = inlined_call_operand.vmem [shape: f32[1,256], index: 1, kind: output, shape index: {}]  }
   0x1   :  { %v4_v0 = vld [vmem:[%s51_s0] sm:$0xf]  ;;  %s11_s0 = smov 3 }
   0x2   :  { %5 = vst [vmem:[#allocation1] sm:$0xf] %v4_v0 }
   0x9   :  { %v12_v1 = vld [vmem:[#allocation1 + $0x1] ss:$2 sm:%s11_s0]   ;;  %v7_v2 = vld [vmem:[#allocation1] ss:$2 sm:%s6_s8]  }
   0xa   :  { %13 = vrot.lane.b32.xlu0 %v12_v1, %s31_s9  ;;  %9 = vst.msk [vmem:[#allocation0] ss:$8 sm:$0x3] %vm8_vm0, %v7_v2  }
  0x7c   :  { %v14_v3 = vpop.permute.xlu0 %13  }
  0x7d   :  { %16 = vst.msk [vmem:[#allocation0] ss:$8 sm:$0x3] %vm15_vm1, %v14_v3  }
  0x84   :  { %v19_v4 = vld [vmem:[#allocation0] sm:$0x1]  ;;  %v24_v5 = vld [vmem:[#allocation0 + $0x8] sm:$0x1] }
  0x85   :  { %22 = vst [vmem:[%s52_s1] sm:$0x1] %v19_v4 }
  0x86   :  { %29 = vst [vmem:[%s52_s1 + $0x1] sm:$0x1] %v24_v5 }

// kernel: tile.28
= control target key start
LH: loop header
LB: loop body
LE: loop exit
PB: predicated region body
PF: predicated region fallthrough
CT: control target
= control target key end

     0   :  { %s22_s0 = inlined_call_operand.vmem [shape: f32[3], index: 0, kind: input, shape index: {}]   ;;  %s23_s1 = inlined_call_operand.vmem [shape: f32[4,3], index: 1, kind: output, shape index: {}]  }
   0x1   :  { %v4_v0 = vld [vmem:[%s22_s0] ss:$0 sm:$0xff] }
   0x2   :  { %5 = vst [vmem:[%s23_s1] sm:$0xf] %v4_v0 }

// kernel: tile.29
= control target key start
LH: loop header
LB: loop body
LE: loop exit
PB: predicated region body
PF: predicated region fallthrough
CT: control target
= control target key end

     0   :  { %s37_s8 = smov 3   ;;  %s38_s9 = smov 6   ;;  %vm7_vm0 = vcmask 23552   ;;  %vm13_vm1 = vcmask 97352   ;;  %vm19_vm2 = vcmask 72752   ;;  %vm25_vm3 = vcmask 48152   ;;  %s55_s0 = inlined_call_operand.vmem [shape: f32[4,3], index: 0, kind: input, shape index: {}]   ;;  %s56_s1 = inlined_call_operand.vmem [shape: f32[1,12], index: 1, kind: output, shape index: {}]  }
   0x1   :  { %v4_v0 = vld [vmem:[%s55_s0] sm:$0xf]  ;;  %s36_s0 = smov 9  }
   0x2   :  { %5 = vst [vmem:[#allocation1] sm:$0xf] %v4_v0 }
   0x9   :  { %v10_v1 = vld [vmem:[#allocation1 + $0x3] sm:$0x1]   ;;  %v22_v2 = vld [vmem:[#allocation1 + $0x1] sm:$0x1]   ;;  %v16_v3 = vld [vmem:[#allocation1 + $0x2] sm:$0x1]  }
   0xa   :  { %11 = vrot.lane.b32.xlu0 %v10_v1, %s36_s0  ;;  %23 = vrot.lane.b32.xlu1 %v22_v2, %s37_s8  ;;  %v6_v4 = vld [vmem:[#allocation1] sm:$0x1]  }
   0xb   :  { %8 = vst.msk [vmem:[#allocation0] sm:$0x1] %vm7_vm0, %v6_v4  }
  0x12   :  { %17 = vrot.lane.b32.xlu0 %v16_v3, %s38_s9 }
  0x7c   :  { %v12_v5 = vpop.permute.xlu0 %11   ;;  %v24_v6 = vpop.permute.xlu1 %23  }
  0x7d   :  { %14 = vst.msk [vmem:[#allocation0] sm:$0x1] %vm13_vm1, %v12_v5  }
  0x84   :  { %v18_v7 = vpop.permute.xlu0 %17  }
  0x85   :  { %20 = vst.msk [vmem:[#allocation0] sm:$0x1] %vm19_vm2, %v18_v7  }
  0x86   :  { %26 = vst.msk [vmem:[#allocation0] sm:$0x1] %vm25_vm3, %v24_v6  }
  0x8d   :  { %v29_v8 = vld [vmem:[#allocation0] sm:$0x1] }
  0x8e   :  { %32 = vst [vmem:[%s56_s1] sm:$0x1] %v29_v8 }

// kernel: color_decoder.1
= control target key start
LH: loop header
LB: loop body
LE: loop exit
PB: predicated region body
PF: predicated region fallthrough
CT: control target
= control target key end

     0   :  { %s8001_s1 = inlined_call_operand.vmem [shape: f32[128,256], index: 1, kind: input, shape index: {}]   ;;  %s8002_s0 = inlined_call_operand.vmem [shape: f32[133,128], index: 0, kind: input, shape index: {}]   ;;  %s8003_s3 = inlined_call_operand.vmem [shape: f32[256,256], index: 3, kind: input, shape index: {}]   ;;  %s8004_s2 = inlined_call_operand.vmem [shape: f32[1,256], index: 2, kind: input, shape index: {}]   ;;  %s8005_s5 = inlined_call_operand.vmem [shape: f32[256,12], index: 5, kind: input, shape index: {}]   ;;  %s8006_s4 = inlined_call_operand.vmem [shape: f32[1,256], index: 4, kind: input, shape index: {}]   ;;  %s8007_s6 = inlined_call_operand.vmem [shape: f32[1,12], index: 6, kind: input, shape index: {}]   ;;  %s8008_s7 = inlined_call_operand.vmem [shape: f32[133,12], index: 7, kind: output, shape index: {}]  }
   0x1   :  { %v73_v0 = vld [vmem:[%s8001_s1 + $0xf0] sm:$0xff]  ;;  %v74_v1 = vld [vmem:[%s8001_s1 + $0xf8] sm:$0xff]  ;;  %v71_v2 = vld [vmem:[%s8001_s1 + $0xe0] sm:$0xff] }
   0x2   :  { %81 = vmatpush.msra.mxu0 %v73_v0  ;;  %149 = vmatpush.msra.mxu1 %v74_v1  ;;  %v72_v3 = vld [vmem:[%s8001_s1 + $0xe8] sm:$0xff]  ;;  %v69_v4 = vld [vmem:[%s8001_s1 + $0xd0] sm:$0xff]  ;;  %v70_v5 = vld [vmem:[%s8001_s1 + $0xd8] sm:$0xff] }
   0x3   :  { %v67_v6 = vld [vmem:[%s8001_s1 + $0xc0] sm:$0xff]  ;;  %v68_v7 = vld [vmem:[%s8001_s1 + $0xc8] sm:$0xff]  ;;  %v65_v8 = vld [vmem:[%s8001_s1 + $0xb0] sm:$0xff] }
   0x4   :  { %82 = vmatpush.msra.mxu0 %v71_v2  ;;  %150 = vmatpush.msra.mxu1 %v72_v3  ;;  %v66_v9 = vld [vmem:[%s8001_s1 + $0xb8] sm:$0xff]  ;;  %v63_v10 = vld [vmem:[%s8001_s1 + $0xa0] sm:$0xff]  ;;  %v64_v11 = vld [vmem:[%s8001_s1 + $0xa8] sm:$0xff] }
   0x5   :  { %v61_v12 = vld [vmem:[%s8001_s1 + $0x90] sm:$0xff]  ;;  %v62_v13 = vld [vmem:[%s8001_s1 + $0x98] sm:$0xff]  ;;  %v59_v14 = vld [vmem:[%s8001_s1 + $0x80] sm:$0xff] }
   0x6   :  { %83 = vmatpush.msra.mxu0 %v69_v4  ;;  %151 = vmatpush.msra.mxu1 %v70_v5  ;;  %v60_v15 = vld [vmem:[%s8001_s1 + $0x88] sm:$0xff]  ;;  %v57_v16 = vld [vmem:[%s8001_s1 + $0x70] sm:$0xff]  ;;  %v58_v17 = vld [vmem:[%s8001_s1 + $0x78] sm:$0xff] }
   0x7   :  { %v55_v18 = vld [vmem:[%s8001_s1 + $0x60] sm:$0xff]  ;;  %v56_v19 = vld [vmem:[%s8001_s1 + $0x68] sm:$0xff]  ;;  %v53_v20 = vld [vmem:[%s8001_s1 + $0x50] sm:$0xff] }
   0x8   :  { %84 = vmatpush.msra.mxu0 %v67_v6  ;;  %152 = vmatpush.msra.mxu1 %v68_v7  ;;  %v54_v21 = vld [vmem:[%s8001_s1 + $0x58] sm:$0xff]  ;;  %v51_v22 = vld [vmem:[%s8001_s1 + $0x40] sm:$0xff]  ;;  %v52_v23 = vld [vmem:[%s8001_s1 + $0x48] sm:$0xff] }
   0x9   :  { %v49_v24 = vld [vmem:[%s8001_s1 + $0x30] sm:$0xff]  ;;  %v50_v25 = vld [vmem:[%s8001_s1 + $0x38] sm:$0xff]  ;;  %v47_v26 = vld [vmem:[%s8001_s1 + $0x20] sm:$0xff] }
   0xa   :  { %85 = vmatpush.msra.mxu0 %v65_v8  ;;  %153 = vmatpush.msra.mxu1 %v66_v9  ;;  %v48_v27 = vld [vmem:[%s8001_s1 + $0x28] sm:$0xff]  ;;  %v45_v28 = vld [vmem:[%s8001_s1 + $0x10] sm:$0xff]  ;;  %v46_v29 = vld [vmem:[%s8001_s1 + $0x18] sm:$0xff] }
   0xb   :  { %v43_v30 = vld [vmem:[%s8001_s1] sm:$0xff]  ;;  %v44_v31 = vld [vmem:[%s8001_s1 + $0x8] sm:$0xff]  ;;  %v28_v34 = vld [vmem:[%s8002_s0 + $0x10] sm:$0xff] }
   0xc   :  { %86 = vmatpush.msra.mxu0 %v63_v10  ;;  %154 = vmatpush.msra.mxu1 %v64_v11  ;;  %v26_v32 = vld [vmem:[%s8002_s0] sm:$0xff]  ;;  %v27_v33 = vld [vmem:[%s8002_s0 + $0x8] sm:$0xff]  ;;  %v1642_v35 = vld [vmem:[%s8003_s3 + $0xf8] sm:$0xff] }
   0xd   :  { %v29_v36 = vld [vmem:[%s8002_s0 + $0x18] sm:$0xff]  ;;  %v30_v38 = vld [vmem:[%s8002_s0 + $0x20] sm:$0xff]  ;;  %v1640_v39 = vld [vmem:[%s8003_s3 + $0xe8] sm:$0xff] }
   0xe   :  { %87 = vmatpush.msra.mxu0 %v61_v12  ;;  %155 = vmatpush.msra.mxu1 %v62_v13  ;;  %v1674_v37 = vld [vmem:[%s8003_s3 + $0x1f8] sm:$0xff]  ;;  %v1672_v40 = vld [vmem:[%s8003_s3 + $0x1e8] sm:$0xff]  ;;  %v32_v44 = vld [vmem:[%s8002_s0 + $0x30] sm:$0xff] }
   0xf   :  { %v31_v41 = vld [vmem:[%s8002_s0 + $0x28] sm:$0xff]  ;;  %v1638_v42 = vld [vmem:[%s8003_s3 + $0xd8] sm:$0xff]  ;;  %v34_v50 = vld [vmem:[%s8002_s0 + $0x40] sm:$0xff] }
  0x10   :  { %88 = vmatpush.msra.mxu0 %v59_v14  ;;  %156 = vmatpush.msra.mxu1 %v60_v15  ;;  %v1670_v43 = vld [vmem:[%s8003_s3 + $0x1d8] sm:$0xff]  ;;  %v1636_v45 = vld [vmem:[%s8003_s3 + $0xc8] sm:$0xff]  ;;  %v36_v56 = vld [vmem:[%s8002_s0 + $0x50] sm:$0xff] }
  0x11   :  { %v1668_v46 = vld [vmem:[%s8003_s3 + $0x1c8] sm:$0xff]  ;;  %v33_v47 = vld [vmem:[%s8002_s0 + $0x38] sm:$0xff]  ;;  %v38_v61 = vld [vmem:[%s8002_s0 + $0x60] sm:$0xff] }
  0x12   :  { %89 = vmatpush.msra.mxu0 %v57_v16  ;;  %157 = vmatpush.msra.mxu1 %v58_v17  ;;  %v1634_v48 = vld [vmem:[%s8003_s3 + $0xb8] sm:$0xff]  ;;  %v1632_v51 = vld [vmem:[%s8003_s3 + $0xa8] sm:$0xff]  ;;  %v40_v3 = vld [vmem:[%s8002_s0 + $0x70] sm:$0xff] }
  0x13   :  { %v1666_v49 = vld [vmem:[%s8003_s3 + $0x1b8] sm:$0xff]  ;;  %v1664_v52 = vld [vmem:[%s8003_s3 + $0x1a8] sm:$0xff]  ;;  %v75_v6 = vld [vmem:[%s8004_s2] sm:$0x3] }
  0x14   :  { %90 = vmatpush.msra.mxu0 %v55_v18  ;;  %158 = vmatpush.msra.mxu1 %v56_v19  ;;  %v35_v53 = vld [vmem:[%s8002_s0 + $0x48] sm:$0xff]  ;;  %v1630_v54 = vld [vmem:[%s8003_s3 + $0x98] sm:$0xff]  ;;  %v1641_v7 = vld [vmem:[%s8003_s3 + $0xf0] sm:$0xff]  ;;  %v4470_v11 = vperm.slane %v75_v6, 0  ;;  %v4472_v12 = vperm.slane %v75_v6, 1 }
  0x15   :  { %v1662_v55 = vld [vmem:[%s8003_s3 + $0x198] sm:$0xff]  ;;  %v1628_v57 = vld [vmem:[%s8003_s3 + $0x88] sm:$0xff]  ;;  %v1673_v8 = vld [vmem:[%s8003_s3 + $0x1f0] sm:$0xff]  ;;  %1681 = vmatpush.msra.mxu2 %v1641_v7 }
  0x16   :  { %91 = vmatpush.msra.mxu0 %v53_v20  ;;  %159 = vmatpush.msra.mxu1 %v54_v21  ;;  %v1660_v58 = vld [vmem:[%s8003_s3 + $0x188] sm:$0xff]  ;;  %v37_v59 = vld [vmem:[%s8002_s0 + $0x58] sm:$0xff]  ;;  %v1639_v9 = vld [vmem:[%s8003_s3 + $0xe0] sm:$0xff] }
  0x17   :  { %v1626_v60 = vld [vmem:[%s8003_s3 + $0x78] sm:$0xff]  ;;  %v1624_v63 = vld [vmem:[%s8003_s3 + $0x68] sm:$0xff]  ;;  %1749 = vmatpush.msra.mxu3 %v1673_v8  ;;  %v1671_v10 = vld [vmem:[%s8003_s3 + $0x1e0] sm:$0xff]  ;;  %1682 = vmatpush.msra.mxu2 %v1639_v9 }
  0x18   :  { %92 = vmatpush.msra.mxu0 %v51_v22  ;;  %160 = vmatpush.msra.mxu1 %v52_v23  ;;  %v1658_v62 = vld [vmem:[%s8003_s3 + $0x178] sm:$0xff]  ;;  %v39_v0 = vld [vmem:[%s8002_s0 + $0x68] sm:$0xff]  ;;  %v1637_v15 = vld [vmem:[%s8003_s3 + $0xd0] sm:$0xff] }
  0x19   :  { %v1656_v1 = vld [vmem:[%s8003_s3 + $0x168] sm:$0xff]  ;;  %v1622_v2 = vld [vmem:[%s8003_s3 + $0x58] sm:$0xff]  ;;  %v1669_v16 = vld [vmem:[%s8003_s3 + $0x1d0] sm:$0xff]  ;;  %1750 = vmatpush.msra.mxu3 %v1671_v10  ;;  %1683 = vmatpush.msra.mxu2 %v1637_v15 }
  0x1a   :  { %93 = vmatpush.msra.mxu0 %v49_v24  ;;  %161 = vmatpush.msra.mxu1 %v50_v25  ;;  %v1654_v4 = vld [vmem:[%s8003_s3 + $0x158] sm:$0xff]  ;;  %v1620_v13 = vld [vmem:[%s8003_s3 + $0x48] sm:$0xff]  ;;  %v42_v19 = vld [vmem:[%s8002_s0 + $0x80] sm:$0xff] }
  0x1b   :  { %v41_v5 = vld [vmem:[%s8002_s0 + $0x78] sm:$0xff]  ;;  %v1652_v14 = vld [vmem:[%s8003_s3 + $0x148] sm:$0xff]  ;;  %1751 = vmatpush.msra.mxu3 %v1669_v16  ;;  %v1635_v22 = vld [vmem:[%s8003_s3 + $0xc0] sm:$0xff] }
  0x1c   :  { %94 = vmatpush.msra.mxu0 %v47_v26  ;;  %162 = vmatpush.msra.mxu1 %v48_v27  ;;  %v1667_v23 = vld [vmem:[%s8003_s3 + $0x1c0] sm:$0xff]  ;;  %v1633_v26 = vld [vmem:[%s8003_s3 + $0xb0] sm:$0xff] }
  0x1d   :  { %1684 = vmatpush.msra.mxu2 %v1635_v22  ;;  %1752 = vmatpush.msra.mxu3 %v1667_v23  ;;  %v1665_v27 = vld [vmem:[%s8003_s3 + $0x1b0] sm:$0xff]  ;;  %v1614_v22 = vld [vmem:[%s8003_s3 + $0x18] sm:$0xff] }
  0x1e   :  { %95 = vmatpush.msra.mxu0 %v45_v28  ;;  %163 = vmatpush.msra.mxu1 %v46_v29  ;;  %v1617_v16 = vld [vmem:[%s8003_s3 + $0x30] sm:$0xff]  ;;  %v1646_v23 = vld [vmem:[%s8003_s3 + $0x118] sm:$0xff] }
  0x1f   :  { %1685 = vmatpush.msra.mxu2 %v1633_v26  ;;  %1753 = vmatpush.msra.mxu3 %v1665_v27 }
  0x20   :  { %96 = vmatpush.msra.mxu0 %v43_v30  ;;  %164 = vmatpush.msra.mxu1 %v44_v31  ;;  %v1618_v30 = vld [vmem:[%s8003_s3 + $0x38] sm:$0xff] }
  0x21   :  { %97 = vmatmul.f32.vlgmr.msra.gmra.mxu0 %v26_v32  ;;  %165 = vmatmul.f32.vlgmr.msra.gmra.mxu1 %v26_v32  ;;  %v1650_v31 = vld [vmem:[%s8003_s3 + $0x138] sm:$0xff]  ;;  %v1631_v32 = vld [vmem:[%s8003_s3 + $0xa0] sm:$0xff] }
  0x22   :  { %1817 = vmatpush.msrb.mxu0 %v1642_v35  ;;  %1885 = vmatpush.msrb.mxu1 %v1674_v37 }
  0x23   :  { %1686 = vmatpush.msra.mxu2 %v1631_v32 }
  0x24   :  { %1818 = vmatpush.msrb.mxu0 %v1640_v39  ;;  %1886 = vmatpush.msrb.mxu1 %v1672_v40  ;;  %v1661_v39 = vld [vmem:[%s8003_s3 + $0x190] sm:$0xff] }
  0x26   :  { %1819 = vmatpush.msrb.mxu0 %v1638_v42  ;;  %1887 = vmatpush.msrb.mxu1 %v1670_v43 }
  0x28   :  { %1820 = vmatpush.msrb.mxu0 %v1636_v45  ;;  %1888 = vmatpush.msrb.mxu1 %v1668_v46  ;;  %v1659_v45 = vld [vmem:[%s8003_s3 + $0x180] sm:$0xff] }
  0x29   :  { %100 = vmatmul.f32.gmra.mxu0 %v27_v33  ;;  %168 = vmatmul.f32.gmra.mxu1 %v27_v33  ;;  %v1663_v33 = vld [vmem:[%s8003_s3 + $0x1a0] sm:$0xff] }
  0x2a   :  { %1821 = vmatpush.msrb.mxu0 %v1634_v48  ;;  %1889 = vmatpush.msrb.mxu1 %v1666_v49 }
  0x2b   :  { %1754 = vmatpush.msra.mxu3 %v1663_v33 }
  0x2c   :  { %1822 = vmatpush.msrb.mxu0 %v1632_v51  ;;  %1890 = vmatpush.msrb.mxu1 %v1664_v52  ;;  %v1657_v51 = vld [vmem:[%s8003_s3 + $0x170] sm:$0xff] }
  0x2d   :  { %1755 = vmatpush.msra.mxu3 %v1661_v39  ;;  %v1613_v39 = vld [vmem:[%s8003_s3 + $0x10] sm:$0xff] }
  0x2e   :  { %1823 = vmatpush.msrb.mxu0 %v1630_v54  ;;  %1891 = vmatpush.msrb.mxu1 %v1662_v55  ;;  %v1648_v54 = vld [vmem:[%s8003_s3 + $0x128] sm:$0xff]  ;;  %v1623_v55 = vld [vmem:[%s8003_s3 + $0x60] sm:$0xff] }
  0x2f   :  { %1756 = vmatpush.msra.mxu3 %v1659_v45 }
  0x30   :  { %1824 = vmatpush.msrb.mxu0 %v1628_v57  ;;  %1892 = vmatpush.msrb.mxu1 %v1660_v58 }
  0x31   :  { %103 = vmatmul.f32.gmra.mxu0 %v28_v34  ;;  %171 = vmatmul.f32.gmra.mxu1 %v28_v34 }
  0x32   :  { %1825 = vmatpush.msrb.mxu0 %v1626_v60  ;;  %1893 = vmatpush.msrb.mxu1 %v1658_v62  ;;  %v1621_v62 = vld [vmem:[%s8003_s3 + $0x50] sm:$0xff] }
  0x33   :  { %1757 = vmatpush.msra.mxu3 %v1657_v51 }
  0x34   :  { %1826 = vmatpush.msrb.mxu0 %v1624_v63  ;;  %1894 = vmatpush.msrb.mxu1 %v1656_v1  ;;  %v1653_v63 = vld [vmem:[%s8003_s3 + $0x150] sm:$0xff] }
  0x36   :  { %1827 = vmatpush.msrb.mxu0 %v1622_v2  ;;  %1895 = vmatpush.msrb.mxu1 %v1654_v4  ;;  %v1619_v4 = vld [vmem:[%s8003_s3 + $0x40] sm:$0xff] }
  0x38   :  { %1828 = vmatpush.msrb.mxu0 %v1620_v13  ;;  %1896 = vmatpush.msrb.mxu1 %v1652_v14 }
  0x39   :  { %106 = vmatmul.f32.gmra.mxu0 %v29_v36  ;;  %174 = vmatmul.f32.gmra.mxu1 %v29_v36 }
  0x3a   :  { %1829 = vmatpush.msrb.mxu0 %v1618_v30  ;;  %1897 = vmatpush.msrb.mxu1 %v1650_v31  ;;  %v1615_v30 = vld [vmem:[%s8003_s3 + $0x20] sm:$0xff] }
  0x3b   :  { %v1647_v31 = vld [vmem:[%s8003_s3 + $0x120] sm:$0xff] }
  0x3c   :  { %1898 = vmatpush.msrb.mxu1 %v1648_v54 }
  0x3e   :  { %1899 = vmatpush.msrb.mxu1 %v1646_v23 }
  0x41   :  { %109 = vmatmul.f32.gmra.mxu0 %v30_v38  ;;  %177 = vmatmul.f32.gmra.mxu1 %v30_v38  ;;  %v1629_v38 = vld [vmem:[%s8003_s3 + $0x90] sm:$0xff] }
  0x42   :  { %1687 = vmatpush.msra.mxu2 %v1629_v38 }
  0x49   :  { %112 = vmatmul.f32.gmra.mxu0 %v31_v41  ;;  %180 = vmatmul.f32.gmra.mxu1 %v31_v41 }
  0x51   :  { %115 = vmatmul.f32.gmra.mxu0 %v32_v44  ;;  %183 = vmatmul.f32.gmra.mxu1 %v32_v44  ;;  %v1627_v44 = vld [vmem:[%s8003_s3 + $0x80] sm:$0xff] }
  0x52   :  { %1688 = vmatpush.msra.mxu2 %v1627_v44 }
  0x59   :  { %118 = vmatmul.f32.gmra.mxu0 %v33_v47  ;;  %186 = vmatmul.f32.gmra.mxu1 %v33_v47 }
  0x61   :  { %121 = vmatmul.f32.gmra.mxu0 %v34_v50  ;;  %189 = vmatmul.f32.gmra.mxu1 %v34_v50  ;;  %v1625_v50 = vld [vmem:[%s8003_s3 + $0x70] sm:$0xff] }
  0x62   :  { %1689 = vmatpush.msra.mxu2 %v1625_v50  ;;  %v1644_v50 = vld [vmem:[%s8003_s3 + $0x108] sm:$0xff] }
  0x63   :  { %1900 = vmatpush.msrb.mxu1 %v1644_v50 }
  0x64   :  { %1690 = vmatpush.msra.mxu2 %v1623_v55 }
  0x66   :  { %1691 = vmatpush.msra.mxu2 %v1621_v62 }
  0x68   :  { %1692 = vmatpush.msra.mxu2 %v1619_v4 }
  0x69   :  { %124 = vmatmul.f32.gmra.mxu0 %v35_v53  ;;  %192 = vmatmul.f32.gmra.mxu1 %v35_v53  ;;  %v1616_v53 = vld [vmem:[%s8003_s3 + $0x28] sm:$0xff] }
  0x6a   :  { %1830 = vmatpush.msrb.mxu0 %v1616_v53  ;;  %1693 = vmatpush.msra.mxu2 %v1617_v16 }
  0x6c   :  { %1831 = vmatpush.msrb.mxu0 %v1614_v22  ;;  %1694 = vmatpush.msra.mxu2 %v1615_v30 }
  0x6e   :  { %1695 = vmatpush.msra.mxu2 %v1613_v39 }
  0x71   :  { %127 = vmatmul.f32.gmra.mxu0 %v36_v56  ;;  %195 = vmatmul.f32.gmra.mxu1 %v36_v56  ;;  %v1655_v56 = vld [vmem:[%s8003_s3 + $0x160] sm:$0xff] }
  0x72   :  { %1758 = vmatpush.msra.mxu3 %v1655_v56  ;;  %v1611_v56 = vld [vmem:[%s8003_s3] sm:$0xff] }
  0x73   :  { %1696 = vmatpush.msra.mxu2 %v1611_v56 }
  0x74   :  { %1759 = vmatpush.msra.mxu3 %v1653_v63 }
  0x79   :  { %130 = vmatmul.f32.gmra.mxu0 %v37_v59  ;;  %198 = vmatmul.f32.gmra.mxu1 %v37_v59 }
  0x81   :  { %133 = vmatmul.f32.gmra.mxu0 %v38_v61  ;;  %201 = vmatmul.f32.gmra.mxu1 %v38_v61 }
  0x89   :  { %136 = vmatmul.f32.gmra.mxu0 %v39_v0  ;;  %204 = vmatmul.f32.gmra.mxu1 %v39_v0 }
  0x91   :  { %139 = vmatmul.f32.gmra.mxu0 %v40_v3  ;;  %207 = vmatmul.f32.gmra.mxu1 %v40_v3 }
  0x99   :  { %142 = vmatmul.f32.gmra.mxu0 %v41_v5  ;;  %210 = vmatmul.f32.gmra.mxu1 %v41_v5  ;;  %v1651_v5 = vld [vmem:[%s8003_s3 + $0x140] sm:$0xff] }
  0x9a   :  { %1760 = vmatpush.msra.mxu3 %v1651_v5 }
  0x9e   :  { %v98_v17 = vpop.f32.mrf.mxu0  ;;  %v166_v18 = vpop.f32.mrf.mxu1 }
  0x9f   :  { %v4490_v20 = vadd.f32 %v98_v17, %v4470_v11  ;;  %v4493_v21 = vadd.f32 %v166_v18, %v4472_v12  ;;  %v1649_v17 = vld [vmem:[%s8003_s3 + $0x130] sm:$0xff] }
  0xa0   :  { %1761 = vmatpush.msra.mxu3 %v1649_v17 }
  0xa1   :  { %v4502_v24 = vmul.f32 0.70710677, %v4490_v20  ;;  %v4505_v25 = vmul.f32 0.70710677, %v4493_v21  ;;  %145 = vmatmul.f32.gmra.mxu0 %v42_v19  ;;  %213 = vmatmul.f32.gmra.mxu1 %v42_v19  ;;  %v4595_v1 = vmul.f32 0.5, %v4490_v20  ;;  %v4598_v2 = vmul.f32 0.5, %v4493_v21 }
  0xa2   :  { %1762 = vmatpush.msra.mxu3 %v1647_v31 }
  0xa3   :  { %v319_v28 = vsub.f32 0.0, %v4502_v24  ;;  %v320_v29 = vsub.f32 0.0, %v4505_v25  ;;  %vm285_vm0 = vcmp.ge.f32.partialorder %v4502_v24, 0.0  ;;  %vm286_vm1 = vcmp.ge.f32.partialorder %v4505_v25, 0.0 }
  0xa5   :  { %v353_v34 = vsel %vm285_vm0, %v4502_v24, %v319_v28  ;;  %v354_v35 = vsel %vm286_vm1, %v4505_v25, %v320_v29 }
  0xa6   :  { %v101_v36 = vpop.f32.mrf.mxu0  ;;  %v169_v37 = vpop.f32.mrf.mxu1  ;;  %v387_v40 = vmul.f32 0.3275911, %v353_v34  ;;  %v388_v43 = vmul.f32 0.3275911, %v354_v35  ;;  %v1271_v57 = vsub.f32 0.0, %v353_v34  ;;  %v1272_v58 = vsub.f32 0.0, %v354_v35 }
  0xa7   :  { %v102_v41 = vadd.f32 %v101_v36, %v4470_v11  ;;  %v4543_v42 = vadd.f32 %v169_v37, %v4472_v12 }
  0xa8   :  { %v4551_v46 = vadd.f32 1.0, %v387_v40  ;;  %v4555_v48 = vadd.f32 1.0, %v388_v43  ;;  %v1305_v6 = vmul.f32 %v1271_v57, %v353_v34  ;;  %v1306_v7 = vmul.f32 %v1272_v58, %v354_v35  ;;  %v1645_v40 = vld [vmem:[%s8003_s3 + $0x110] sm:$0xff]  ;;  %v1643_v57 = vld [vmem:[%s8003_s3 + $0x100] sm:$0xff] }
  0xa9   :  { %v4553_v47 = vmul.f32 0.70710677, %v102_v41  ;;  %v4558_v49 = vmul.f32 0.70710677, %v4543_v42  ;;  %v4609_v8 = vmul.f32 0.5, %v102_v41  ;;  %v1612_v41 = vld [vmem:[%s8003_s3 + $0x8] sm:$0xff]  ;;  %1763 = vmatpush.msra.mxu3 %v1645_v40 }
  0xaa   :  { %3865 = vrcp.f32 %v4551_v46  ;;  %vm460_vm4 = vweird.f32 %v4551_v46  ;;  %v464_v15 = vand.u32 2147483647, %v4551_v46  ;;  %v466_v18 = vand.u32 2147483648, %v4551_v46  ;;  %1832 = vmatpush.msrb.mxu0 %v1612_v41 }
  0xab   :  { %v321_v52 = vsub.f32 0.0, %v4553_v47  ;;  %3867 = vrcp.f32 %v4555_v48  ;;  %vm287_vm2 = vcmp.ge.f32.partialorder %v4553_v47, 0.0  ;;  %v322_v59 = vsub.f32 0.0, %v4558_v49  ;;  %1764 = vmatpush.msra.mxu3 %v1643_v57 }
  0xac   :  { %vm288_vm3 = vcmp.ge.f32.partialorder %v4558_v49, 0.0  ;;  %vm475_vm5 = vweird.f32 %v4555_v48  ;;  %v479_v27 = vand.u32 2147483647, %v4555_v48  ;;  %v481_v28 = vand.u32 2147483648, %v4555_v48 }
  0xad   :  { %v4592_v0 = vsel %vm287_vm2, %v4553_v47, %v321_v52  ;;  %v4635_v21 = vsel %vm288_vm3, %v4558_v49, %v322_v59  ;;  %vm4674_vm7 = vcmp.eq.f32.partialorder %v464_v15, 8.507059e+37  ;;  %v467_v44 = vor.u32 1.1754944e-38, %v466_v18 }
  0xae   :  { %v104_v60 = vpop.f32.mrf.mxu0  ;;  %v172_v61 = vpop.f32.mrf.mxu1  ;;  %v389_v9 = vmul.f32 0.3275911, %v4592_v0  ;;  %v1273_v33 = vsub.f32 0.0, %v4592_v0  ;;  %v390_v36 = vmul.f32 0.3275911, %v4635_v21  ;;  %v4685_v54 = vmul.f32 0.5, %v4543_v42 }
  0xaf   :  { %v4615_v13 = vadd.f32 %v104_v60, %v4470_v11  ;;  %v4647_v29 = vadd.f32 %v172_v61, %v4472_v12  ;;  %v1339_v52 = vmul.f32 1.442695, %v1305_v6  ;;  %v1341_v53 = vmul.f32 1.442695, %v1306_v7 }
  0xb0   :  { %v4601_v3 = vpop.eup %3865  ;;  %v4630_v20 = vadd.f32 1.0, %v389_v9  ;;  %v482_v58 = vor.u32 1.1754944e-38, %v481_v28  ;;  %v4701_v59 = vadd.f32 1.0, %v390_v36  ;;  %vm480_vm11 = vcmp.eq.f32.partialorder %v479_v27, 8.507059e+37 }
  0xb1   :  { %v4612_v10 = vpop.eup %3867  ;;  %v456_v14 = vmul.f32 %v4601_v3, %v4551_v46  ;;  %v4658_v34 = vmul.f32 0.70710677, %v4615_v13  ;;  %vm461_vm6 = vweird.f32 %v4601_v3  ;;  %v4688_v55 = vmul.f32 0.70710677, %v4647_v29 }
  0xb2   :  { %v471_v19 = vmul.f32 %v4612_v10, %v4555_v48  ;;  %3869 = vrcp.f32 %v4630_v20  ;;  %vm476_vm8 = vweird.f32 %v4612_v10  ;;  %vm462_vm9 = vmor %vm460_vm4, %vm461_vm6  ;;  %v1307_v46 = vmul.f32 %v1273_v33, %v4592_v0 }
  0xb3   :  { %v457_v26 = vsub.f32 1.0, %v456_v14  ;;  %v323_v60 = vsub.f32 0.0, %v4658_v34  ;;  %vm477_vm10 = vmor %vm475_vm5, %vm476_vm8  ;;  %3871 = vrcp.f32 %v4701_v59  ;;  %vm289_vm12 = vcmp.ge.f32.partialorder %v4658_v34, 0.0 }
  0xb4   :  { %v472_v32 = vsub.f32 1.0, %v471_v19  ;;  %3873 = vpow2.f32 %v1339_v52  ;;  %v494_v0 = vand.u32 2147483647, %v4630_v20  ;;  %v324_v5 = vsub.f32 0.0, %v4688_v55 }
  0xb5   :  { %v458_v35 = vmul.f32 %v4601_v3, %v457_v26  ;;  %3875 = vpow2.f32 %v1341_v53  ;;  %vm490_vm13 = vweird.f32 %v4630_v20  ;;  %v4728_v14 = vsel %vm289_vm12, %v4658_v34, %v323_v60 }
  0xb6   :  { %v107_v37 = vpop.f32.mrf.mxu0  ;;  %v4663_v38 = vpop.f32.mrf.mxu1  ;;  %v473_v45 = vmul.f32 %v4612_v10, %v472_v32  ;;  %v496_v19 = vand.u32 2147483648, %v4630_v20  ;;  %v391_v22 = vmul.f32 0.3275911, %v4728_v14  ;;  %vm4736_vm14 = vcmp.eq.f32.partialorder %v494_v0, 8.507059e+37 }
  0xb7   :  { %v459_v51 = vadd.f32 %v4601_v3, %v458_v35  ;;  %v4733_v23 = vadd.f32 %v107_v37, %v4470_v11  ;;  %v1274_v28 = vsub.f32 0.0, %v4635_v21  ;;  %v4746_v36 = vadd.f32 %v4663_v38, %v4472_v12 }
  0xb8   :  { %v474_v42 = vadd.f32 %v4612_v10, %v473_v45  ;;  %v3870_v62 = vpop.eup %3869  ;;  %v4742_v33 = vadd.f32 1.0, %v391_v22  ;;  %v4750_v40 = vmul.f32 0.5, %v4615_v13  ;;  %v497_v45 = vor.u32 1.1754944e-38, %v496_v19 }
  0xb9   :  { %v463_v61 = vsel %vm462_vm9, %v4601_v3, %v459_v51  ;;  %v486_v7 = vmul.f32 %v3870_v62, %v4630_v20  ;;  %v3872_v30 = vpop.eup %3871  ;;  %vm491_vm15 = vweird.f32 %v3870_v62  ;;  %v4754_v50 = vmul.f32 0.70710677, %v4733_v23 }
  0xba   :  { %v4712_v63 = vsel %vm4674_vm7, %v467_v44, %v463_v61  ;;  %v478_v4 = vsel %vm477_vm10, %v4612_v10, %v474_v42  ;;  %v1343_v10 = vmul.f32 1.442695, %v1307_v46  ;;  %v3874_v35 = vpop.eup %3873  ;;  %v501_v39 = vmul.f32 %v3872_v30, %v4701_v59  ;;  %vm492_vm4 = vmor %vm490_vm13, %vm491_vm15 }
  0xbb   :  { %v965_v3 = vmul.f32 1.0614054, %v4712_v63  ;;  %v4718_v48 = vsel %vm480_vm11, %v482_v58, %v478_v4  ;;  %v487_v18 = vsub.f32 1.0, %v486_v7  ;;  %v3876_v41 = vpop.eup %3875  ;;  %3877 = vrcp.f32 %v4742_v33 }
  0xbc   :  { %v966_v6 = vmul.f32 1.0614054, %v4718_v48  ;;  %v502_v38 = vsub.f32 1.0, %v501_v39  ;;  %v1308_v52 = vmul.f32 %v1274_v28, %v4635_v21  ;;  %v509_v56 = vand.u32 2147483647, %v4701_v59 }
  0xbd   :  { %v999_v9 = vadd.f32 -1.4531521, %v965_v3  ;;  %v488_v32 = vmul.f32 %v3870_v62, %v487_v18  ;;  %v511_v57 = vand.u32 2147483648, %v4701_v59  ;;  %vm506_vm5 = vweird.f32 %v3872_v30 }
  0xbe   :  { %v110_v15 = vpop.f32.mrf.mxu0  ;;  %v178_v16 = vpop.f32.mrf.mxu1  ;;  %v1000_v17 = vadd.f32 -1.4531521, %v966_v6  ;;  %v503_v60 = vmul.f32 %v3872_v30, %v502_v38  ;;  %v4768_v20 = vmul.f32 0.70710677, %v4746_v36  ;;  %3879 = vpow2.f32 %v1343_v10 }
  0xbf   :  { %v1033_v26 = vmul.f32 %v999_v9, %v4712_v63  ;;  %v489_v44 = vadd.f32 %v3870_v62, %v488_v32  ;;  %vm505_vm6 = vweird.f32 %v4701_v59  ;;  %v1345_v0 = vmul.f32 1.442695, %v1308_v52 }
  0xc0   :  { %v1034_v31 = vmul.f32 %v1000_v17, %v4718_v48  ;;  %v504_v3 = vadd.f32 %v3872_v30, %v503_v60  ;;  %v325_v7 = vsub.f32 0.0, %v4754_v50  ;;  %vm507_vm7 = vmor %vm505_vm6, %vm506_vm5  ;;  %v512_v18 = vor.u32 1.1754944e-38, %v511_v57 }
  0xc1   :  { %v1067_v37 = vadd.f32 1.4214138, %v1033_v26  ;;  %v493_v53 = vsel %vm492_vm4, %v3870_v62, %v489_v44  ;;  %v3878_v6 = vpop.eup %3877  ;;  %v4779_v19 = vadd.f32 %v110_v15, %v4470_v11  ;;  %vm510_vm8 = vcmp.eq.f32.partialorder %v509_v56, 8.507059e+37 }
  0xc2   :  { %v1068_v43 = vadd.f32 1.4214138, %v1034_v31  ;;  %v4765_v58 = vsel %vm4736_vm14, %v497_v45, %v493_v53  ;;  %v508_v10 = vsel %vm507_vm7, %v3872_v30, %v504_v3  ;;  %v516_v28 = vmul.f32 %v3878_v6, %v4742_v33 }
  0xc3   :  { %v1101_v51 = vmul.f32 %v1067_v37, %v4712_v63  ;;  %v967_v62 = vmul.f32 1.0614054, %v4765_v58  ;;  %v4782_v59 = vsel %vm510_vm8, %v512_v18, %v508_v10  ;;  %v4786_v31 = vadd.f32 %v178_v16, %v4472_v12 }
  0xc4   :  { %v1102_v13 = vmul.f32 %v1068_v43, %v4718_v48  ;;  %v968_v37 = vmul.f32 1.0614054, %v4782_v59  ;;  %3881 = vpow2.f32 %v1345_v0  ;;  %v3880_v15 = vpop.eup %3879  ;;  %v517_v43 = vsub.f32 1.0, %v516_v28 }
  0xc5   :  { %v1135_v42 = vadd.f32 -0.28449672, %v1101_v51  ;;  %v1001_v17 = vadd.f32 -1.4531521, %v967_v62  ;;  %v524_v44 = vand.u32 2147483647, %v4742_v33  ;;  %vm521_vm9 = vweird.f32 %v3878_v6 }
  0xc6   :  { %v113_v61 = vpop.f32.mrf.mxu0  ;;  %v4770_v46 = vpop.f32.mrf.mxu1  ;;  %v1136_v21 = vadd.f32 -0.28449672, %v1102_v13  ;;  %v1002_v51 = vadd.f32 -1.4531521, %v968_v37  ;;  %v526_v38 = vand.u32 2147483648, %v4742_v33  ;;  %v518_v53 = vmul.f32 %v3878_v6, %v517_v43 }
  0xc7   :  { %v1169_v4 = vmul.f32 %v1135_v42, %v4712_v63  ;;  %v1035_v27 = vmul.f32 %v1001_v17, %v4765_v58  ;;  %vm290_vm10 = vcmp.ge.f32.partialorder %v4688_v55, 0.0  ;;  %v4796_v56 = vmul.f32 0.70710677, %v4779_v19 }
  0xc8   :  { %v1170_v9 = vmul.f32 %v1136_v21, %v4718_v48  ;;  %v1036_v57 = vmul.f32 %v1002_v51, %v4782_v59  ;;  %vm520_vm11 = vweird.f32 %v4742_v33  ;;  %v519_v60 = vadd.f32 %v3878_v6, %v518_v53 }
  0xc9   :  { %v1203_v22 = vadd.f32 0.2548296, %v1169_v4  ;;  %v1069_v30 = vadd.f32 1.4214138, %v1035_v27  ;;  %vm525_vm13 = vcmp.eq.f32.partialorder %v524_v44, 8.507059e+37  ;;  %vm522_vm14 = vmor %vm520_vm11, %vm521_vm9  ;;  %v527_v62 = vor.u32 1.1754944e-38, %v526_v38 }
  0xca   :  { %v1204_v26 = vadd.f32 0.2548296, %v1170_v9  ;;  %v4800_v21 = vpop.eup %3881  ;;  %v1275_v4 = vsub.f32 0.0, %v4728_v14  ;;  %v4809_v3 = vsel %vm290_vm10, %v4688_v55, %v324_v5  ;;  %v1070_v9 = vadd.f32 1.4214138, %v1036_v57 }
  0xcb   :  { %v1237_v32 = vmul.f32 %v1203_v22, %v4712_v63  ;;  %v1103_v63 = vmul.f32 %v1069_v30, %v4765_v58  ;;  %v523_v17 = vsel %vm522_vm14, %v3878_v6, %v519_v60  ;;  %v4813_v18 = vmul.f32 0.70710677, %v4786_v31 }
  0xcc   :  { %v1238_v39 = vmul.f32 %v1204_v26, %v4718_v48  ;;  %v4816_v22 = vadd.f32 %v113_v61, %v4470_v11  ;;  %v4820_v26 = vsel %vm525_vm13, %v527_v62, %v523_v17  ;;  %v4827_v6 = vadd.f32 %v4770_v46, %v4472_v12 }
  0xcd   :  { %v1407_v45 = vmul.f32 %v3874_v35, %v1237_v32  ;;  %v1137_v42 = vadd.f32 -0.28449672, %v1103_v63  ;;  %v1104_v32 = vmul.f32 %v1070_v9, %v4782_v59  ;;  %v969_v61 = vmul.f32 1.0614054, %v4820_v26 }
  0xce   :  { %v116_v52 = vpop.f32.mrf.mxu0  ;;  %v184_v16 = vpop.f32.mrf.mxu1  ;;  %v1408_v13 = vmul.f32 %v3876_v41, %v1238_v39  ;;  %v392_v39 = vmul.f32 0.3275911, %v4809_v3  ;;  %v4835_v51 = vmul.f32 0.70710677, %v4816_v22  ;;  %v1276_v17 = vsub.f32 0.0, %v4809_v3 }
  0xcf   :  { %v1441_v48 = vsub.f32 1.0, %v1407_v45  ;;  %v1171_v0 = vmul.f32 %v1137_v42, %v4765_v58  ;;  %v1138_v25 = vadd.f32 -0.28449672, %v1104_v32  ;;  %v1309_v45 = vmul.f32 %v1275_v4, %v4728_v14 }
  0xd0   :  { %v1442_v35 = vsub.f32 1.0, %v1408_v13  ;;  %v4838_v46 = vadd.f32 %v116_v52, %v4470_v11  ;;  %v1003_v13 = vadd.f32 -1.4531521, %v969_v61  ;;  %v4842_v63 = vadd.f32 %v184_v16, %v4472_v12 }
  0xd1   :  { %v1475_v41 = vsub.f32 0.0, %v1441_v48  ;;  %v1205_v28 = vadd.f32 0.2548296, %v1171_v0  ;;  %v4845_v53 = vadd.f32 1.0, %v392_v39  ;;  %v326_v14 = vsub.f32 0.0, %v4768_v20 }
  0xd2   :  { %v1476_v33 = vsub.f32 0.0, %v1442_v35  ;;  %v4850_v52 = vmul.f32 0.70710677, %v4827_v6  ;;  %v1347_v60 = vmul.f32 1.442695, %v1309_v45  ;;  %v4893_v45 = vmul.f32 0.5, %v4733_v23 }
  0xd3   :  { %v1509_v10 = vsel %vm285_vm0, %v1441_v48, %v1475_v41  ;;  %v1239_v44 = vmul.f32 %v1205_v28, %v4765_v58  ;;  %v1172_v58 = vmul.f32 %v1138_v25, %v4782_v59  ;;  %v327_v48 = vsub.f32 0.0, %v4796_v56 }
  0xd4   :  { %v1543_v27 = vadd.f32 1.0, %v1509_v10  ;;  %v1510_v5 = vsel %vm286_vm1, %v1442_v35, %v1476_v33  ;;  %3883 = vrcp.f32 %v4845_v53  ;;  %vm291_vm0 = vcmp.ge.f32.partialorder %v4754_v50, 0.0 }
  0xd5   :  { %v1544_v37 = vadd.f32 1.0, %v1510_v5  ;;  %v1206_v57 = vadd.f32 0.2548296, %v1172_v58  ;;  %v4858_v41 = vmul.f32 0.70710677, %v4838_v46  ;;  %v4872_v10 = vsel %vm291_vm0, %v4754_v50, %v325_v7 }
  0xd6   :  { %v119_v24 = vpop.f32.mrf.mxu0  ;;  %v187_v30 = vpop.f32.mrf.mxu1  ;;  %v1577_v43 = vmul.f32 %v1543_v27, %v4595_v1  ;;  %v1409_v1 = vmul.f32 %v3880_v15, %v1239_v44  ;;  %v328_v15 = vsub.f32 0.0, %v4813_v18  ;;  %v4861_v62 = vmul.f32 0.70710677, %v4842_v63 }
  0xd7   :  { %v1578_v38 = vmul.f32 %v1544_v37, %v4598_v2  ;;  %v1037_v2 = vmul.f32 %v1003_v13, %v4820_v26  ;;  %v1240_v33 = vmul.f32 %v1206_v57, %v4782_v59  ;;  %v4875_v27 = vadd.f32 %v119_v24, %v4470_v11 }
  0xd8   :  { %1697 = vmatmul.f32.vlgmr.msra.gmra.mxu2 %v1577_v43  ;;  %1833 = vmatmul.f32.vlgmr.msrb.gmra.mxu0 %v1577_v43  ;;  %v1443_v16 = vsub.f32 1.0, %v1409_v1  ;;  %v4881_v28 = vmul.f32 0.5, %v4647_v29  ;;  %v4884_v32 = vadd.f32 %v187_v30, %v4472_v12  ;;  %3885 = vpow2.f32 %v1347_v60 }
  0xd9   :  { %1765 = vmatmul.f32.vlgmr.msra.gmra.mxu3 %v1578_v38  ;;  %1901 = vmatmul.f32.vlgmr.msrb.gmra.mxu1 %v1578_v38  ;;  %v1071_v42 = vadd.f32 1.4214138, %v1037_v2  ;;  %v1410_v59 = vmul.f32 %v4800_v21, %v1240_v33  ;;  %v393_v25 = vmul.f32 0.3275911, %v4872_v10  ;;  %v1310_v30 = vmul.f32 %v1276_v17, %v4809_v3 }
  0xda   :  { %v1477_v4 = vsub.f32 0.0, %v1443_v16  ;;  %v3884_v7 = vpop.eup %3883  ;;  %v4896_v38 = vmul.f32 0.70710677, %v4875_v27  ;;  %v4902_v2 = vmul.f32 0.70710677, %v4884_v32  ;;  %vm292_vm1 = vcmp.ge.f32.partialorder %v4768_v20, 0.0 }
  0xdb   :  { %v1105_v9 = vmul.f32 %v1071_v42, %v4820_v26  ;;  %v1444_v47 = vsub.f32 1.0, %v1410_v59  ;;  %v531_v1 = vmul.f32 %v3884_v7, %v4845_v53  ;;  %v4899_v58 = vadd.f32 1.0, %v393_v25 }
  0xdc   :  { %v1511_v5 = vsel %vm287_vm2, %v1443_v16, %v1477_v4  ;;  %v539_v33 = vand.u32 2147483647, %v4845_v53  ;;  %vm536_vm2 = vweird.f32 %v3884_v7  ;;  %v1277_v59 = vsub.f32 0.0, %v4872_v10 }
  0xdd   :  { %v1545_v61 = vadd.f32 1.0, %v1511_v5  ;;  %v1139_v39 = vadd.f32 -0.28449672, %v1105_v9  ;;  %v1478_v13 = vsub.f32 0.0, %v1444_v47  ;;  %v532_v57 = vsub.f32 1.0, %v531_v1 }
  0xde   :  { %v122_v37 = vpop.f32.mrf.mxu0  ;;  %v190_v44 = vpop.f32.mrf.mxu1  ;;  %3887 = vrcp.f32 %v4899_v58  ;;  %v541_v9 = vand.u32 2147483648, %v4845_v53  ;;  %v1349_v5 = vmul.f32 1.442695, %v1310_v30  ;;  %vm540_vm4 = vcmp.eq.f32.partialorder %v539_v33, 8.507059e+37 }
  0xdf   :  { %v1579_v21 = vmul.f32 %v1545_v61, %v4609_v8  ;;  %v1173_v29 = vmul.f32 %v1139_v39, %v4820_v26  ;;  %v4905_v8 = vadd.f32 %v122_v37, %v4470_v11  ;;  %v4908_v16 = vadd.f32 %v190_v44, %v4472_v12  ;;  %v3886_v42 = vpop.eup %3885 }
  0xe0   :  { %v1512_v3 = vsel %vm288_vm3, %v1444_v47, %v1478_v13  ;;  %v533_v17 = vmul.f32 %v3884_v7, %v532_v57  ;;  %vm535_vm3 = vweird.f32 %v4845_v53  ;;  %3889 = vpow2.f32 %v1349_v5 }
  0xe1   :  { %1700 = vmatmul.f32.gmra.mxu2 %v1579_v21  ;;  %1836 = vmatmul.f32.gmra.mxu0 %v1579_v21  ;;  %v1207_v23 = vadd.f32 0.2548296, %v1173_v29  ;;  %v1546_v60 = vadd.f32 1.0, %v1512_v3  ;;  %v4919_v49 = vmul.f32 0.70710677, %v4905_v8  ;;  %vm537_vm15 = vmor %vm535_vm3, %vm536_vm2  ;;  %v542_v29 = vor.u32 1.1754944e-38, %v541_v9 }
  0xe2   :  { %v4931_v44 = vmul.f32 0.70710677, %v4908_v16  ;;  %v534_v47 = vadd.f32 %v3884_v7, %v533_v17  ;;  %v4937_v1 = vmul.f32 0.5, %v4746_v36  ;;  %v554_v17 = vand.u32 2147483647, %v4899_v58 }
  0xe3   :  { %v1241_v4 = vmul.f32 %v1207_v23, %v4820_v26  ;;  %v1580_v37 = vmul.f32 %v1546_v60, %v4685_v54  ;;  %v4927_v26 = vsel %vm292_vm1, %v4768_v20, %v326_v14  ;;  %vm293_vm5 = vcmp.ge.f32.partialorder %v4796_v56, 0.0 }
  0xe4   :  { %v3888_v14 = vpop.eup %3887  ;;  %v538_v13 = vsel %vm537_vm15, %v3884_v7, %v534_v47  ;;  %v394_v23 = vmul.f32 0.3275911, %v4927_v26  ;;  %vm294_vm7 = vcmp.ge.f32.partialorder %v4813_v18, 0.0  ;;  %vm555_vm8 = vcmp.eq.f32.partialorder %v554_v17, 8.507059e+37 }
  0xe5   :  { %v1411_v61 = vmul.f32 %v3886_v42, %v1241_v4  ;;  %1768 = vmatmul.f32.gmra.mxu3 %v1580_v37  ;;  %1904 = vmatmul.f32.gmra.mxu1 %v1580_v37  ;;  %v4941_v57 = vsel %vm540_vm4, %v542_v29, %v538_v13  ;;  %v1311_v42 = vmul.f32 %v1277_v59, %v4872_v10  ;;  %vm551_vm6 = vweird.f32 %v3888_v14 }
  0xe6   :  { %v125_v54 = vpop.f32.mrf.mxu0  ;;  %v193_v30 = vpop.f32.mrf.mxu1  ;;  %v970_v4 = vmul.f32 1.0614054, %v4941_v57  ;;  %v546_v33 = vmul.f32 %v3888_v14, %v4899_v58  ;;  %v4947_v7 = vadd.f32 1.0, %v394_v23  ;;  %v4970_v13 = vsel %vm293_vm5, %v4796_v56, %v327_v48 }
  0xe7   :  { %v1445_v21 = vsub.f32 1.0, %v1411_v61  ;;  %v4950_v36 = vadd.f32 %v125_v54, %v4470_v11  ;;  %v4958_v37 = vadd.f32 %v193_v30, %v4472_v12  ;;  %v556_v61 = vand.u32 2147483648, %v4899_v58  ;;  %v4961_v54 = vpop.eup %3889 }
  0xe8   :  { %v1004_v10 = vadd.f32 -1.4531521, %v970_v4  ;;  %v547_v59 = vsub.f32 1.0, %v546_v33  ;;  %3891 = vrcp.f32 %v4947_v7  ;;  %v1351_v47 = vmul.f32 1.442695, %v1311_v42 }
  0xe9   :  { %v1479_v3 = vsub.f32 0.0, %v1445_v21  ;;  %v4973_v30 = vmul.f32 0.70710677, %v4950_v36  ;;  %v1278_v23 = vsub.f32 0.0, %v4927_v26  ;;  %v4979_v42 = vmul.f32 0.5, %v4779_v19 }
  0xea   :  { %v548_v29 = vmul.f32 %v3888_v14, %v547_v59  ;;  %v4982_v48 = vmul.f32 0.70710677, %v4958_v37  ;;  %v557_v33 = vor.u32 1.1754944e-38, %v556_v61  ;;  %3893 = vpow2.f32 %v1351_v47 }
  0xeb   :  { %v1513_v9 = vsel %vm289_vm12, %v1445_v21, %v1479_v3  ;;  %v1038_v21 = vmul.f32 %v1004_v10, %v4941_v57  ;;  %vm550_vm12 = vweird.f32 %v4899_v58  ;;  %v395_v58 = vmul.f32 0.3275911, %v4970_v13 }
  0xec   :  { %v1547_v5 = vadd.f32 1.0, %v1513_v9  ;;  %v549_v3 = vadd.f32 %v3888_v14, %v548_v29  ;;  %vm552_vm9 = vmor %vm550_vm12, %vm551_vm6  ;;  %v4988_v17 = vmul.f32 0.5, %v4786_v31  ;;  %v4995_v19 = vsel %vm294_vm7, %v4813_v18, %v328_v15 }
  0xed   :  { %v571_v15 = vand.u32 2147483648, %v4947_v7  ;;  %v396_v61 = vmul.f32 0.3275911, %v4995_v19  ;;  %vm565_vm11 = vweird.f32 %v4947_v7  ;;  %v1279_v24 = vsub.f32 0.0, %v4970_v13 }
  0xee   :  { %v1581_v34 = vmul.f32 %v1547_v5, %v4750_v40  ;;  %v1072_v40 = vadd.f32 1.4214138, %v1038_v21  ;;  %v128_v4 = vpop.f32.mrf.mxu0  ;;  %v3892_v9 = vpop.eup %3891  ;;  %v553_v59 = vsel %vm552_vm9, %v3888_v14, %v549_v3  ;;  %v1312_v21 = vmul.f32 %v1278_v23, %v4927_v26 }
  0xef   :  { %v196_v10 = vpop.f32.mrf.mxu1  ;;  %v4998_v47 = vsel %vm555_vm8, %v557_v33, %v553_v59  ;;  %v129_v14 = vadd.f32 %v128_v4, %v4470_v11  ;;  %vm566_vm13 = vweird.f32 %v3892_v9  ;;  %v569_v4 = vand.u32 2147483647, %v4947_v7 }
  0xf0   :  { %1703 = vmatmul.f32.gmra.mxu2 %v1581_v34  ;;  %1839 = vmatmul.f32.gmra.mxu0 %v1581_v34  ;;  %v1106_v5 = vmul.f32 %v1072_v40, %v4941_v57  ;;  %v561_v34 = vmul.f32 %v3892_v9, %v4947_v7  ;;  %v971_v31 = vmul.f32 1.0614054, %v4998_v47  ;;  %v5004_v40 = vadd.f32 1.0, %v395_v58  ;;  %v5012_v26 = vpop.eup %3893  ;;  %vm567_vm14 = vmor %vm565_vm11, %vm566_vm13 }
  0xf1   :  { %v197_v3 = vadd.f32 %v196_v10, %v4472_v12  ;;  %v1353_v25 = vmul.f32 1.442695, %v1312_v21  ;;  %v5026_v7 = vmul.f32 0.5, %v129_v14  ;;  %vm570_vm2 = vcmp.eq.f32.partialorder %v569_v4, 8.507059e+37 }
  0xf2   :  { %v1140_v29 = vadd.f32 -0.28449672, %v1106_v5  ;;  %v562_v60 = vsub.f32 1.0, %v561_v34  ;;  %v1005_v53 = vadd.f32 -1.4531521, %v971_v31  ;;  %3895 = vrcp.f32 %v5004_v40 }
  0xf3   :  { %v5016_v5 = vmul.f32 0.70710677, %v129_v14  ;;  %v5019_v34 = vadd.f32 1.0, %v396_v61  ;;  %v5021_v33 = vmul.f32 0.70710677, %v197_v3  ;;  %v572_v31 = vor.u32 1.1754944e-38, %v571_v15 }
  0xf4   :  { %v1174_v59 = vmul.f32 %v1140_v29, %v4941_v57  ;;  %v563_v23 = vmul.f32 %v3892_v9, %v562_v60  ;;  %v1039_v10 = vmul.f32 %v1005_v53, %v4998_v47  ;;  %8066 = vst [vmem:[#allocation2_spill] sm:$0xff] %v5026_v7  ;;  %v1313_v4 = vmul.f32 %v1279_v24, %v4970_v13 }
  0xf5   :  { %3897 = vrcp.f32 %v5019_v34  ;;  %vm580_vm3 = vweird.f32 %v5004_v40  ;;  %v601_v24 = vand.u32 2147483648, %v5019_v34  ;;  %vm295_vm4 = vcmp.ge.f32.partialorder %v4835_v51, 0.0 }
  0xf6   :  { %v1208_v58 = vadd.f32 0.2548296, %v1174_v59  ;;  %v564_v29 = vadd.f32 %v3892_v9, %v563_v23  ;;  %v1073_v60 = vadd.f32 1.4214138, %v1039_v10  ;;  %v5028_v59 = vmul.f32 0.5, %v197_v3 }
  0xf7   :  { %3899 = vpow2.f32 %v1353_v25  ;;  %vm595_vm8 = vweird.f32 %v5019_v34  ;;  %vm296_vm13 = vcmp.ge.f32.partialorder %v4850_v52, 0.0 }
  0xf8   :  { %v1242_v39 = vmul.f32 %v1208_v58, %v4941_v57  ;;  %8067 = vst [vmem:[#allocation3_spill] sm:$0xff] %v5028_v59  ;;  %v568_v53 = vsel %vm567_vm14, %v3892_v9, %v564_v29  ;;  %v3896_v61 = vpop.eup %3895  ;;  %v1107_v15 = vmul.f32 %v1073_v60, %v4998_v47  ;;  %v586_v57 = vand.u32 2147483648, %v5004_v40 }
  0xf9   :  { %v5032_v21 = vsel %vm570_vm2, %v572_v31, %v568_v53  ;;  %v576_v9 = vmul.f32 %v3896_v61, %v5004_v40  ;;  %v1280_v29 = vsub.f32 0.0, %v4995_v19  ;;  %vm581_vm15 = vweird.f32 %v3896_v61 }
  0xfa   :  { %v1412_v43 = vmul.f32 %v4961_v54, %v1242_v39  ;;  %v972_v14 = vmul.f32 1.0614054, %v5032_v21  ;;  %v1141_v10 = vadd.f32 -0.28449672, %v1107_v15  ;;  %v584_v54 = vand.u32 2147483647, %v5004_v40 }
  0xfb   :  { %v3898_v31 = vpop.eup %3897  ;;  %v577_v58 = vsub.f32 1.0, %v576_v9  ;;  %v587_v23 = vor.u32 1.1754944e-38, %v586_v57  ;;  %v599_v15 = vand.u32 2147483647, %v5019_v34  ;;  %vm297_vm14 = vcmp.ge.f32.partialorder %v4858_v41, 0.0 }
  0xfc   :  { %v1446_v3 = vsub.f32 1.0, %v1412_v43  ;;  %v1006_v39 = vadd.f32 -1.4531521, %v972_v14  ;;  %v1175_v53 = vmul.f32 %v1141_v10, %v4998_v47  ;;  %v591_v25 = vmul.f32 %v3898_v31, %v5019_v34 }
  0xfd   :  { %v578_v0 = vmul.f32 %v3896_v61, %v577_v58  ;;  %v3900_v35 = vpop.eup %3899  ;;  %vm596_vm6 = vweird.f32 %v3898_v31  ;;  %vm585_vm12 = vcmp.eq.f32.partialorder %v584_v54, 8.507059e+37  ;;  %v199_v54 = vpop.f32.mrf.mxu1  ;;  %vm600_vm11 = vcmp.eq.f32.partialorder %v599_v15, 8.507059e+37 }
  0xfe   :  { %v1480_v60 = vsub.f32 0.0, %v1446_v3  ;;  %v1040_v43 = vmul.f32 %v1006_v39, %v5032_v21  ;;  %v1209_v14 = vadd.f32 0.2548296, %v1175_v53  ;;  %v592_v10 = vsub.f32 1.0, %v591_v25  ;;  %vm597_vm9 = vmor %vm595_vm8, %vm596_vm6 }
  0xff   :  { %v579_v9 = vadd.f32 %v3896_v61, %v578_v0  ;;  %v8068_v39 = vsub.f32 0.0, %v4835_v51  ;;  %vm299_vm8 = vcmp.ge.f32.partialorder %v4896_v38, 0.0 }
 0x100   :  { %v1514_v13 = vsel %vm290_vm10, %v1446_v3, %v1480_v60  ;;  %v1074_v7 = vadd.f32 1.4214138, %v1040_v43  ;;  %v1243_v57 = vmul.f32 %v1209_v14, %v4998_v47  ;;  %vm582_vm10 = vmor %vm580_vm3, %vm581_vm15  ;;  %v593_v60 = vmul.f32 %v3898_v31, %v592_v10  ;;  %v131_v47 = vpop.f32.mrf.mxu0 }
 0x101   :  { %v1548_v59 = vadd.f32 1.0, %v1514_v13  ;;  %v5057_v55 = vsel %vm295_vm4, %v4835_v51, %v8068_v39  ;;  %v583_v43 = vsel %vm582_vm10, %v3896_v61, %v579_v9  ;;  %v602_v14 = vor.u32 1.1754944e-38, %v601_v24 }
 0x102   :  { %v1108_v3 = vmul.f32 %v1074_v7, %v5032_v21  ;;  %v397_v53 = vmul.f32 0.3275911, %v5057_v55  ;;  %v1413_v0 = vmul.f32 %v5012_v26, %v1243_v57  ;;  %v5066_v13 = vsel %vm585_vm12, %v587_v23, %v583_v43 }
 0x103   :  { %v1582_v58 = vmul.f32 %v1548_v59, %v4881_v28  ;;  %v594_v28 = vadd.f32 %v3898_v31, %v593_v60  ;;  %v973_v59 = vmul.f32 1.0614054, %v5066_v13  ;;  %v1314_v26 = vmul.f32 %v1280_v29, %v4995_v19 }
 0x104   :  { %v1142_v25 = vadd.f32 -0.28449672, %v1108_v3  ;;  %v5068_v7 = vadd.f32 1.0, %v397_v53  ;;  %v1447_v40 = vsub.f32 1.0, %v1413_v0  ;;  %v132_v34 = vadd.f32 %v131_v47, %v4470_v11 }
 0x105   :  { %1771 = vmatmul.f32.gmra.mxu3 %v1582_v58  ;;  %1907 = vmatmul.f32.gmra.mxu1 %v1582_v58  ;;  %v598_v10 = vsel %vm597_vm9, %v3898_v31, %v594_v28  ;;  %v1007_v57 = vadd.f32 -1.4531521, %v973_v59  ;;  %v1355_v58 = vmul.f32 1.442695, %v1313_v4  ;;  %v200_v29 = vadd.f32 %v199_v54, %v4472_v12 }
 0x106   :  { %v1176_v61 = vmul.f32 %v1142_v25, %v5032_v21  ;;  %v1481_v23 = vsub.f32 0.0, %v1447_v40  ;;  %v5075_v9 = vsel %vm600_vm11, %v602_v14, %v598_v10  ;;  %3901 = vrcp.f32 %v5068_v7 }
 0x107   :  { %v974_v3 = vmul.f32 1.0614054, %v5075_v9  ;;  %v1041_v24 = vmul.f32 %v1007_v57, %v5066_v13  ;;  %v5084_v31 = vmul.f32 0.5, %v4816_v22  ;;  %v5088_v0 = vmul.f32 0.70710677, %v132_v34 }
 0x108   :  { %v1210_v39 = vadd.f32 0.2548296, %v1176_v61  ;;  %v1515_v19 = vsel %vm291_vm0, %v1447_v40, %v1481_v23  ;;  %v1357_v47 = vmul.f32 1.442695, %v1314_v26  ;;  %3903 = vpow2.f32 %v1355_v58 }
 0x109   :  { %v1549_v15 = vadd.f32 1.0, %v1515_v19  ;;  %v1008_v53 = vadd.f32 -1.4531521, %v974_v3  ;;  %v1075_v4 = vadd.f32 1.4214138, %v1041_v24  ;;  %v5092_v40 = vmul.f32 0.5, %v132_v34  ;;  %v134_v19 = vpop.f32.mrf.mxu0 }
 0x10a   :  { %v1244_v60 = vmul.f32 %v1210_v39, %v5032_v21  ;;  %v5094_v22 = vmul.f32 0.5, %v200_v29  ;;  %v8069_v59 = vsub.f32 0.0, %v4850_v52  ;;  %3905 = vpow2.f32 %v1357_v47 }
 0x10b   :  { %v1583_v50 = vmul.f32 %v1549_v15, %v4893_v45  ;;  %v1042_v25 = vmul.f32 %v1008_v53, %v5075_v9  ;;  %v1109_v21 = vmul.f32 %v1075_v4, %v5066_v13  ;;  %v614_v58 = vand.u32 2147483647, %v5068_v7 }
 0x10c   :  { %v1414_v43 = vmul.f32 %v3900_v35, %v1244_v60  ;;  %v3902_v28 = vpop.eup %3901  ;;  %v5102_v14 = vsel %vm296_vm13, %v4850_v52, %v8069_v59  ;;  %v5104_v35 = vmul.f32 0.70710677, %v200_v29  ;;  %v616_v29 = vand.u32 2147483648, %v5068_v7 }
 0x10d   :  { %1706 = vmatmul.f32.gmra.mxu2 %v1583_v50  ;;  %1842 = vmatmul.f32.gmra.mxu0 %v1583_v50  ;;  %v1076_v26 = vadd.f32 1.4214138, %v1042_v25  ;;  %v606_v61 = vmul.f32 %v3902_v28, %v5068_v7  ;;  %v1143_v54 = vadd.f32 -0.28449672, %v1109_v21  ;;  %v398_v10 = vmul.f32 0.3275911, %v5102_v14 }
 0x10e   :  { %v1448_v45 = vsub.f32 1.0, %v1414_v43  ;;  %vm611_vm0 = vweird.f32 %v3902_v28  ;;  %v3904_v15 = vpop.eup %3903  ;;  %v1281_v43 = vsub.f32 0.0, %v5057_v55  ;;  %v135_v21 = vadd.f32 %v134_v19, %v4470_v11 }
 0x10f   :  { %v1110_v57 = vmul.f32 %v1076_v26, %v5075_v9  ;;  %v607_v39 = vsub.f32 1.0, %v606_v61  ;;  %v1177_v3 = vmul.f32 %v1143_v54, %v5066_v13  ;;  %v5113_v24 = vadd.f32 1.0, %v398_v10 }
 0x110   :  { %v1482_v23 = vsub.f32 0.0, %v1448_v45  ;;  %vm610_vm2 = vweird.f32 %v5068_v7  ;;  %v3906_v26 = vpop.eup %3905  ;;  %v617_v61 = vor.u32 1.1754944e-38, %v616_v29  ;;  %v8070_v54 = vsub.f32 0.0, %v4858_v41 }
 0x111   :  { %v1144_v53 = vadd.f32 -0.28449672, %v1110_v57  ;;  %v608_v4 = vmul.f32 %v3902_v28, %v607_v39  ;;  %v1211_v50 = vadd.f32 0.2548296, %v1177_v3  ;;  %3907 = vrcp.f32 %v5113_v24  ;;  %v202_v39 = vpop.f32.mrf.mxu1 }
 0x112   :  { %v1516_v60 = vsel %vm292_vm1, %v1448_v45, %v1482_v23  ;;  %vm612_vm1 = vmor %vm610_vm2, %vm611_vm0  ;;  %v5131_v10 = vsel %vm297_vm14, %v4858_v41, %v8070_v54  ;;  %vm615_vm3 = vcmp.eq.f32.partialorder %v614_v58, 8.507059e+37  ;;  %v1282_v3 = vsub.f32 0.0, %v5102_v14 }
 0x113   :  { %v1550_v47 = vadd.f32 1.0, %v1516_v60  ;;  %v1178_v25 = vmul.f32 %v1144_v53, %v5075_v9  ;;  %v609_v59 = vadd.f32 %v3902_v28, %v608_v4  ;;  %v1245_v45 = vmul.f32 %v1211_v50, %v5066_v13 }
 0x114   :  { %v399_v19 = vmul.f32 0.3275911, %v5131_v10  ;;  %v1315_v53 = vmul.f32 %v1281_v43, %v5057_v55  ;;  %v5142_v4 = vmul.f32 0.5, %v4827_v6  ;;  %vm298_vm15 = vcmp.ge.f32.partialorder %v4861_v62, 0.0 }
 0x115   :  { %v1584_v20 = vmul.f32 %v1550_v47, %v4937_v1  ;;  %v1212_v57 = vadd.f32 0.2548296, %v1178_v25  ;;  %v613_v7 = vsel %vm612_vm1, %v3902_v28, %v609_v59  ;;  %v1415_v1 = vmul.f32 %v3904_v15, %v1245_v45 }
 0x116   :  { %v5134_v13 = vsel %vm615_vm3, %v617_v61, %v613_v7  ;;  %v5144_v47 = vmul.f32 0.5, %v135_v21  ;;  %v203_v15 = vadd.f32 %v202_v39, %v4472_v12  ;;  %v5147_v50 = vadd.f32 1.0, %v399_v19 }
 0x117   :  { %1774 = vmatmul.f32.gmra.mxu3 %v1584_v20  ;;  %1910 = vmatmul.f32.gmra.mxu1 %v1584_v20  ;;  %v1246_v29 = vmul.f32 %v1212_v57, %v5075_v9  ;;  %v975_v60 = vmul.f32 1.0614054, %v5134_v13  ;;  %v3908_v28 = vpop.eup %3907  ;;  %v1449_v58 = vsub.f32 1.0, %v1415_v1  ;;  %v5151_v45 = vmul.f32 0.70710677, %v135_v21 }
 0x118   :  { %v621_v20 = vmul.f32 %v3908_v28, %v5113_v24  ;;  %v1316_v6 = vmul.f32 %v1282_v3, %v5102_v14  ;;  %3909 = vrcp.f32 %v5147_v50  ;;  %v629_v54 = vand.u32 2147483647, %v5113_v24 }
 0x119   :  { %v1416_v25 = vmul.f32 %v3906_v26, %v1246_v29  ;;  %v1009_v59 = vadd.f32 -1.4531521, %v975_v60  ;;  %v1483_v9 = vsub.f32 0.0, %v1449_v58  ;;  %vm626_vm6 = vweird.f32 %v3908_v28 }
 0x11a   :  { %v622_v61 = vsub.f32 1.0, %v621_v20  ;;  %v631_v57 = vand.u32 2147483648, %v5113_v24  ;;  %v8071_v39 = vsub.f32 0.0, %v4861_v62  ;;  %v5167_v19 = vmul.f32 0.70710677, %v203_v15 }
 0x11b   :  { %v1450_v55 = vsub.f32 1.0, %v1416_v25  ;;  %v1043_v43 = vmul.f32 %v1009_v59, %v5134_v13  ;;  %v1517_v26 = vsel %vm293_vm5, %v1449_v58, %v1483_v9  ;;  %v1359_v29 = vmul.f32 1.442695, %v1315_v53 }
 0x11c   :  { %v5165_v14 = vsel %vm298_vm15, %v4861_v62, %v8071_v39  ;;  %v1551_v21 = vadd.f32 1.0, %v1517_v26  ;;  %v623_v3 = vmul.f32 %v3908_v28, %v622_v61  ;;  %vm625_vm10 = vweird.f32 %v5113_v24 }
 0x11d   :  { %v1484_v7 = vsub.f32 0.0, %v1450_v55  ;;  %v1077_v1 = vadd.f32 1.4214138, %v1043_v43  ;;  %v400_v56 = vmul.f32 0.3275911, %v5165_v14  ;;  %v5175_v26 = vmul.f32 0.5, %v203_v15  ;;  %vm627_vm5 = vmor %vm625_vm10, %vm626_vm6 }
 0x11e   :  { %v1585_v60 = vmul.f32 %v1551_v21, %v4979_v42  ;;  %v624_v59 = vadd.f32 %v3908_v28, %v623_v3  ;;  %v3910_v20 = vpop.eup %3909  ;;  %v632_v43 = vor.u32 1.1754944e-38, %v631_v57  ;;  %vm630_vm12 = vcmp.eq.f32.partialorder %v629_v54, 8.507059e+37 }
 0x11f   :  { %v1518_v58 = vsel %vm294_vm7, %v1450_v55, %v1484_v7  ;;  %v1111_v25 = vmul.f32 %v1077_v1, %v5134_v13  ;;  %v5178_v53 = vadd.f32 1.0, %v400_v56  ;;  %v1361_v42 = vmul.f32 1.442695, %v1316_v6 }
 0x120   :  { %v1552_v9 = vadd.f32 1.0, %v1518_v58  ;;  %1709 = vmatmul.f32.gmra.mxu2 %v1585_v60  ;;  %1845 = vmatmul.f32.gmra.mxu0 %v1585_v60  ;;  %v628_v61 = vsel %vm627_vm5, %v3908_v28, %v624_v59  ;;  %3911 = vpow2.f32 %v1359_v29  ;;  %v636_v39 = vmul.f32 %v3910_v20, %v5147_v50 }
 0x121   :  { %v1145_v24 = vadd.f32 -0.28449672, %v1111_v25  ;;  %v5181_v55 = vsel %vm630_vm12, %v632_v43, %v628_v61  ;;  %v5189_v28 = vmul.f32 0.5, %v4838_v46  ;;  %3913 = vrcp.f32 %v5178_v53  ;;  %v137_v61 = vpop.f32.mrf.mxu0 }
 0x122   :  { %v1586_v18 = vmul.f32 %v1552_v9, %v4988_v17  ;;  %v976_v7 = vmul.f32 1.0614054, %v5181_v55  ;;  %v637_v6 = vsub.f32 1.0, %v636_v39  ;;  %v644_v17 = vand.u32 2147483647, %v5147_v50 }
 0x123   :  { %v1179_v57 = vmul.f32 %v1145_v24, %v5134_v13  ;;  %3915 = vpow2.f32 %v1361_v42  ;;  %v646_v3 = vand.u32 2147483648, %v5147_v50  ;;  %vm641_vm7 = vweird.f32 %v3910_v20  ;;  %v205_v42 = vpop.f32.mrf.mxu1 }
 0x124   :  { %1777 = vmatmul.f32.gmra.mxu3 %v1586_v18  ;;  %1913 = vmatmul.f32.gmra.mxu1 %v1586_v18  ;;  %v1010_v1 = vadd.f32 -1.4531521, %v976_v7  ;;  %v638_v29 = vmul.f32 %v3910_v20, %v637_v6  ;;  %v1283_v56 = vsub.f32 0.0, %v5131_v10  ;;  %v5196_v60 = vmul.f32 0.5, %v4842_v63 }
 0x125   :  { %v1213_v54 = vadd.f32 0.2548296, %v1179_v57  ;;  %v5201_v25 = vmul.f32 0.5, %v4875_v27  ;;  %vm640_vm9 = vweird.f32 %v5147_v50  ;;  %vm5205_vm11 = vcmp.eq.f32.partialorder %v644_v17, 8.507059e+37 }
 0x126   :  { %v1044_v58 = vmul.f32 %v1010_v1, %v5181_v55  ;;  %v3912_v59 = vpop.eup %3911  ;;  %v639_v9 = vadd.f32 %v3910_v20, %v638_v29  ;;  %v8074_v63 = vsub.f32 0.0, %v4896_v38  ;;  %vm642_vm0 = vmor %vm640_vm9, %vm641_vm7  ;;  %v647_v18 = vor.u32 1.1754944e-38, %v646_v3 }
 0x127   :  { %v1247_v46 = vmul.f32 %v1213_v54, %v5134_v13  ;;  %v3914_v39 = vpop.eup %3913  ;;  %v1317_v7 = vmul.f32 %v1283_v56, %v5131_v10  ;;  %v1284_v6 = vsub.f32 0.0, %v5165_v14  ;;  %vm300_vm2 = vcmp.ge.f32.partialorder %v4902_v2, 0.0 }
 0x128   :  { %v5214_v13 = vsel %vm299_vm8, %v4896_v38, %v8074_v63  ;;  %v1078_v27 = vadd.f32 1.4214138, %v1044_v58  ;;  %v643_v57 = vsel %vm642_vm0, %v3910_v20, %v639_v9  ;;  %v651_v3 = vmul.f32 %v3914_v39, %v5178_v53 }
 0x129   :  { %v1417_v24 = vmul.f32 %v3912_v59, %v1247_v46  ;;  %v401_v50 = vmul.f32 0.3275911, %v5214_v13  ;;  %v3916_v17 = vpop.eup %3915  ;;  %v5224_v29 = vsel %vm5205_vm11, %v647_v18, %v643_v57  ;;  %v138_v46 = vadd.f32 %v137_v61, %v4470_v11 }
 0x12a   :  { %v1112_v1 = vmul.f32 %v1078_v27, %v5181_v55  ;;  %v206_v20 = vadd.f32 %v205_v42, %v4472_v12  ;;  %v977_v10 = vmul.f32 1.0614054, %v5224_v29  ;;  %v652_v9 = vsub.f32 1.0, %v651_v3 }
 0x12b   :  { %v1451_v54 = vsub.f32 1.0, %v1417_v24  ;;  %v5230_v56 = vadd.f32 1.0, %v401_v50  ;;  %v659_v63 = vand.u32 2147483647, %v5178_v53  ;;  %v661_v43 = vand.u32 2147483648, %v5178_v53 }
 0x12c   :  { %v1146_v59 = vadd.f32 -0.28449672, %v1112_v1  ;;  %v1011_v24 = vadd.f32 -1.4531521, %v977_v10  ;;  %v8075_v27 = vsub.f32 0.0, %v4902_v2  ;;  %v653_v50 = vmul.f32 %v3914_v39, %v652_v9 }
 0x12d   :  { %v1485_v58 = vsub.f32 0.0, %v1451_v54  ;;  %3917 = vrcp.f32 %v5230_v56  ;;  %vm656_vm1 = vweird.f32 %v3914_v39  ;;  %v1363_v3 = vmul.f32 1.442695, %v1317_v7 }
 0x12e   :  { %v5240_v61 = vsel %vm300_vm2, %v4902_v2, %v8075_v27  ;;  %v1180_v18 = vmul.f32 %v1146_v59, %v5181_v55  ;;  %v1045_v1 = vmul.f32 %v1011_v24, %v5224_v29  ;;  %v1318_v10 = vmul.f32 %v1284_v6, %v5165_v14  ;;  %v3362_v59 = vld [vmem:[%s8005_s5 + $0x78] sm:$0xff] }
 0x12f   :  { %v1519_v42 = vsel %vm295_vm4, %v1451_v54, %v1485_v58  ;;  %v654_v15 = vadd.f32 %v3914_v39, %v653_v50  ;;  %vm655_vm3 = vweird.f32 %v5178_v53  ;;  %v402_v27 = vmul.f32 0.3275911, %v5240_v61  ;;  %3383 = vmatpush.msrb.mxu2 %v3362_v59 }
 0x130   :  { %v1553_v57 = vadd.f32 1.0, %v1519_v42  ;;  %v1214_v21 = vadd.f32 0.2548296, %v1180_v18  ;;  %v5250_v51 = vmul.f32 0.70710677, %v138_v46  ;;  %vm657_vm4 = vmor %vm655_vm3, %vm656_vm1  ;;  %v662_v58 = vor.u32 1.1754944e-38, %v661_v43 }
 0x131   :  { %v1079_v54 = vadd.f32 1.4214138, %v1045_v1  ;;  %v5256_v14 = vmul.f32 0.70710677, %v206_v20  ;;  %v658_v6 = vsel %vm657_vm4, %v3914_v39, %v654_v15  ;;  %vm660_vm6 = vcmp.eq.f32.partialorder %v659_v63, 8.507059e+37 }
 0x132   :  { %v1587_v23 = vmul.f32 %v1553_v57, %v5084_v31  ;;  %v1248_v7 = vmul.f32 %v1214_v21, %v5181_v55  ;;  %3919 = vpow2.f32 %v1363_v3  ;;  %v5259_v9 = vsel %vm660_vm6, %v662_v58, %v658_v6 }
 0x133   :  { %v3918_v53 = vpop.eup %3917  ;;  %v1113_v31 = vmul.f32 %v1079_v54, %v5224_v29  ;;  %v5261_v24 = vadd.f32 1.0, %v402_v27  ;;  %v5263_v42 = vmul.f32 0.5, %v138_v46  ;;  %v978_v55 = vmul.f32 1.0614054, %v5259_v9 }
 0x134   :  { %1712 = vmatmul.f32.gmra.mxu2 %v1587_v23  ;;  %1848 = vmatmul.f32.gmra.mxu0 %v1587_v23  ;;  %v1418_v43 = vmul.f32 %v3916_v17, %v1248_v7  ;;  %v1285_v21 = vsub.f32 0.0, %v5214_v13  ;;  %v5267_v15 = vmul.f32 0.5, %v206_v20  ;;  %v1365_v63 = vmul.f32 1.442695, %v1318_v10 }
 0x135   :  { %v1147_v39 = vadd.f32 -0.28449672, %v1113_v31  ;;  %v666_v23 = vmul.f32 %v3918_v53, %v5230_v56  ;;  %v1012_v1 = vadd.f32 -1.4531521, %v978_v55  ;;  %v674_v3 = vand.u32 2147483647, %v5230_v56 }
 0x136   :  { %v1452_v18 = vsub.f32 1.0, %v1418_v43  ;;  %3921 = vrcp.f32 %v5261_v24  ;;  %v676_v10 = vand.u32 2147483648, %v5230_v56  ;;  %v1319_v54 = vmul.f32 %v1285_v21, %v5214_v13  ;;  %v208_v21 = vpop.f32.mrf.mxu1 }
 0x137   :  { %v1181_v17 = vmul.f32 %v1147_v39, %v5224_v29  ;;  %v667_v46 = vsub.f32 1.0, %v666_v23  ;;  %v1046_v20 = vmul.f32 %v1012_v1, %v5259_v9  ;;  %3923 = vpow2.f32 %v1365_v63  ;;  %v140_v23 = vpop.f32.mrf.mxu0 }
 0x138   :  { %v1486_v27 = vsub.f32 0.0, %v1452_v18  ;;  %v3920_v58 = vpop.eup %3919  ;;  %vm671_vm10 = vweird.f32 %v3918_v53  ;;  %vm670_vm5 = vweird.f32 %v5230_v56  ;;  %v5282_v43 = vmul.f32 0.5, %v4884_v32 }
 0x139   :  { %v1215_v59 = vadd.f32 0.2548296, %v1181_v17  ;;  %v668_v7 = vmul.f32 %v3918_v53, %v667_v46  ;;  %v1080_v31 = vadd.f32 1.4214138, %v1046_v20  ;;  %vm675_vm12 = vcmp.eq.f32.partialorder %v674_v3, 8.507059e+37  ;;  %vm672_vm7 = vmor %vm670_vm5, %vm671_vm10 }
 0x13a   :  { %v1520_v6 = vsel %vm296_vm13, %v1452_v18, %v1486_v27  ;;  %v677_v63 = vor.u32 1.1754944e-38, %v676_v10  ;;  %v1367_v17 = vmul.f32 1.442695, %v1319_v54  ;;  %vm301_vm13 = vcmp.ge.f32.partialorder %v4919_v49, 0.0 }
 0x13b   :  { %v1554_v55 = vadd.f32 1.0, %v1520_v6  ;;  %v1249_v39 = vmul.f32 %v1215_v59, %v5224_v29  ;;  %v669_v1 = vadd.f32 %v3918_v53, %v668_v7  ;;  %v1114_v13 = vmul.f32 %v1080_v31, %v5259_v9 }
 0x13c   :  { %v3922_v52 = vpop.eup %3921  ;;  %v8076_v46 = vsub.f32 0.0, %v4919_v49  ;;  %v5296_v27 = vadd.f32 %v140_v23, %v4470_v11  ;;  %v689_v31 = vand.u32 2147483647, %v5261_v24  ;;  %vm685_vm11 = vweird.f32 %v5261_v24 }
 0x13d   :  { %v1588_v56 = vmul.f32 %v1554_v55, %v5142_v4  ;;  %v1419_v18 = vmul.f32 %v3920_v58, %v1249_v39  ;;  %v673_v32 = vsel %vm672_vm7, %v3918_v53, %v669_v1  ;;  %v1148_v3 = vadd.f32 -0.28449672, %v1114_v13  ;;  %v3924_v54 = vpop.eup %3923 }
 0x13e   :  { %v5293_v29 = vsel %vm301_vm13, %v4919_v49, %v8076_v46  ;;  %v5298_v20 = vsel %vm675_vm12, %v677_v63, %v673_v32  ;;  %v681_v10 = vmul.f32 %v3922_v52, %v5261_v24  ;;  %v5302_v53 = vadd.f32 %v208_v21, %v4472_v12  ;;  %v211_v57 = vpop.f32.mrf.mxu1  ;;  %v3376_v49 = vld [vmem:[%s8005_s5 + $0xe8] sm:$0xff] }
 0x13f   :  { %1780 = vmatmul.f32.gmra.mxu3 %v1588_v56  ;;  %1916 = vmatmul.f32.gmra.mxu1 %v1588_v56  ;;  %v1453_v4 = vsub.f32 1.0, %v1419_v18  ;;  %v979_v58 = vmul.f32 1.0614054, %v5298_v20  ;;  %v403_v59 = vmul.f32 0.3275911, %v5293_v29  ;;  %v1182_v7 = vmul.f32 %v1148_v3, %v5259_v9 }
 0x140   :  { %v682_v6 = vsub.f32 1.0, %v681_v10  ;;  %v1286_v55 = vsub.f32 0.0, %v5240_v61  ;;  %v691_v1 = vand.u32 2147483648, %v5261_v24  ;;  %v5313_v21 = vmul.f32 0.70710677, %v5296_v27 }
 0x141   :  { %v1487_v39 = vsub.f32 0.0, %v1453_v4  ;;  %v1013_v23 = vadd.f32 -1.4531521, %v979_v58  ;;  %v5310_v13 = vadd.f32 1.0, %v403_v59  ;;  %v1216_v63 = vadd.f32 0.2548296, %v1182_v7 }
 0x142   :  { %v683_v56 = vmul.f32 %v3922_v52, %v682_v6  ;;  %vm686_vm9 = vweird.f32 %v3922_v52  ;;  %v5318_v32 = vmul.f32 0.70710677, %v5302_v53  ;;  %vm690_vm1 = vcmp.eq.f32.partialorder %v689_v31, 8.507059e+37 }
 0x143   :  { %v1521_v18 = vsel %vm297_vm14, %v1453_v4, %v1487_v39  ;;  %v1047_v46 = vmul.f32 %v1013_v23, %v5298_v20  ;;  %3925 = vrcp.f32 %v5310_v13  ;;  %v1250_v10 = vmul.f32 %v1216_v63, %v5259_v9  ;;  %vm687_vm0 = vmor %vm685_vm11, %vm686_vm9  ;;  %v3378_v4 = vld [vmem:[%s8005_s5 + $0xf8] sm:$0xff] }
 0x144   :  { %v1555_v3 = vadd.f32 1.0, %v1521_v18  ;;  %v684_v58 = vadd.f32 %v3922_v52, %v683_v56  ;;  %v692_v7 = vor.u32 1.1754944e-38, %v691_v1  ;;  %v1320_v41 = vmul.f32 %v1286_v55, %v5240_v61  ;;  %3451 = vmatpush.msrb.mxu3 %v3378_v4 }
 0x145   :  { %v1081_v59 = vadd.f32 1.4214138, %v1047_v46  ;;  %v1420_v39 = vmul.f32 %v3924_v54, %v1250_v10  ;;  %vm302_vm14 = vcmp.ge.f32.partialorder %v4931_v44, 0.0  ;;  %v1287_v31 = vsub.f32 0.0, %v5293_v29 }
 0x146   :  { %v1589_v6 = vmul.f32 %v1555_v3, %v5189_v28  ;;  %v688_v23 = vsel %vm687_vm0, %v3922_v52, %v684_v58  ;;  %vm303_vm3 = vcmp.ge.f32.partialorder %v4973_v30, 0.0  ;;  %3927 = vpow2.f32 %v1367_v17 }
 0x147   :  { %v1115_v9 = vmul.f32 %v1081_v59, %v5298_v20  ;;  %v5331_v24 = vsel %vm690_vm1, %v692_v7, %v688_v23  ;;  %v1454_v61 = vsub.f32 1.0, %v1420_v39  ;;  %v1369_v63 = vmul.f32 1.442695, %v1320_v41 }
 0x148   :  { %1715 = vmatmul.f32.gmra.mxu2 %v1589_v6  ;;  %1851 = vmatmul.f32.gmra.mxu0 %v1589_v6  ;;  %v980_v28 = vmul.f32 1.0614054, %v5331_v24  ;;  %v8077_v56 = vsub.f32 0.0, %v4931_v44  ;;  %v8078_v58 = vsub.f32 0.0, %v4973_v30  ;;  %vm700_vm4 = vweird.f32 %v5310_v13 }
 0x149   :  { %v3926_v52 = vpop.eup %3925  ;;  %v1149_v1 = vadd.f32 -0.28449672, %v1115_v9  ;;  %v1488_v46 = vsub.f32 0.0, %v1454_v61  ;;  %v704_v7 = vand.u32 2147483647, %v5310_v13  ;;  %v1321_v41 = vmul.f32 %v1287_v31, %v5293_v29 }
 0x14a   :  { %v370_v18 = vsel %vm302_vm14, %v4931_v44, %v8077_v56  ;;  %v1014_v3 = vadd.f32 -1.4531521, %v980_v28  ;;  %v696_v10 = vmul.f32 %v3926_v52, %v5310_v13  ;;  %v5349_v17 = vsel %vm303_vm3, %v4973_v30, %v8078_v58  ;;  %v143_v56 = vpop.f32.mrf.mxu0 }
 0x14b   :  { %v1183_v59 = vmul.f32 %v1149_v1, %v5298_v20  ;;  %v1522_v4 = vsel %vm298_vm15, %v1454_v61, %v1488_v46  ;;  %v404_v23 = vmul.f32 0.3275911, %v370_v18  ;;  %v706_v58 = vand.u32 2147483648, %v5310_v13 }
 0x14c   :  { %v1048_v6 = vmul.f32 %v1014_v3, %v5331_v24  ;;  %v697_v39 = vsub.f32 1.0, %v696_v10  ;;  %v1556_v9 = vadd.f32 1.0, %v1522_v4  ;;  %v405_v1 = vmul.f32 0.3275911, %v5349_v17  ;;  %v3928_v54 = vpop.eup %3927 }
 0x14d   :  { %v1217_v28 = vadd.f32 0.2548296, %v1183_v59  ;;  %vm701_vm6 = vweird.f32 %v3926_v52  ;;  %v5360_v29 = vadd.f32 1.0, %v404_v23  ;;  %v1371_v61 = vmul.f32 1.442695, %v1321_v41 }
 0x14e   :  { %v1082_v55 = vadd.f32 1.4214138, %v1048_v6  ;;  %v698_v50 = vmul.f32 %v3926_v52, %v697_v39  ;;  %v1590_v62 = vmul.f32 %v1556_v9, %v5196_v60  ;;  %v5364_v46 = vadd.f32 1.0, %v405_v1  ;;  %vm702_vm15 = vmor %vm700_vm4, %vm701_vm6 }
 0x14f   :  { %v1251_v31 = vmul.f32 %v1217_v28, %v5298_v20  ;;  %v5368_v10 = vadd.f32 %v143_v56, %v4470_v11  ;;  %3929 = vrcp.f32 %v5360_v29  ;;  %v5372_v6 = vadd.f32 %v211_v57, %v4472_v12 }
 0x150   :  { %v1116_v3 = vmul.f32 %v1082_v55, %v5331_v24  ;;  %v699_v59 = vadd.f32 %v3926_v52, %v698_v50  ;;  %1783 = vmatmul.f32.gmra.mxu3 %v1590_v62  ;;  %1919 = vmatmul.f32.gmra.mxu1 %v1590_v62  ;;  %vm705_vm10 = vcmp.eq.f32.partialorder %v704_v7, 8.507059e+37  ;;  %v707_v60 = vor.u32 1.1754944e-38, %v706_v58 }
 0x151   :  { %v1421_v4 = vmul.f32 %v3928_v54, %v1251_v31  ;;  %v1288_v55 = vsub.f32 0.0, %v370_v18  ;;  %3931 = vrcp.f32 %v5364_v46  ;;  %v5378_v50 = vmul.f32 0.5, %v4905_v8 }
 0x152   :  { %v1150_v20 = vadd.f32 -0.28449672, %v1116_v3  ;;  %v703_v41 = vsel %vm702_vm15, %v3926_v52, %v699_v59  ;;  %3933 = vpow2.f32 %v1369_v63  ;;  %v5385_v13 = vmul.f32 0.5, %v4908_v16 }
 0x153   :  { %v1455_v39 = vsub.f32 1.0, %v1421_v4  ;;  %v5380_v23 = vsel %vm705_vm10, %v707_v60, %v703_v41  ;;  %v5388_v7 = vmul.f32 0.5, %v4950_v36  ;;  %v5391_v9 = vmul.f32 0.70710677, %v5368_v10 }
 0x154   :  { %v1184_v57 = vmul.f32 %v1150_v20, %v5331_v24  ;;  %v981_v54 = vmul.f32 1.0614054, %v5380_v23  ;;  %v5394_v63 = vmul.f32 0.70710677, %v5372_v6  ;;  %3935 = vpow2.f32 %v1371_v61 }
 0x155   :  { %v1489_v52 = vsub.f32 0.0, %v1455_v39  ;;  %v3930_v8 = vpop.eup %3929  ;;  %v1322_v58 = vmul.f32 %v1288_v55, %v370_v18  ;;  %vm304_vm5 = vcmp.ge.f32.partialorder %v4982_v48, 0.0  ;;  %vm715_vm12 = vweird.f32 %v5360_v29 }
 0x156   :  { %v1218_v28 = vadd.f32 0.2548296, %v1184_v57  ;;  %v1015_v56 = vadd.f32 -1.4531521, %v981_v54  ;;  %v711_v36 = vmul.f32 %v3930_v8, %v5360_v29  ;;  %v1289_v1 = vsub.f32 0.0, %v5349_v17 }
 0x157   :  { %v1523_v16 = vsel %vm299_vm8, %v1455_v39, %v1489_v52  ;;  %v3932_v62 = vpop.eup %3931  ;;  %v719_v59 = vand.u32 2147483647, %v5360_v29  ;;  %v721_v60 = vand.u32 2147483648, %v5360_v29  ;;  %v8079_v20 = vsub.f32 0.0, %v4982_v48 }
 0x158   :  { %v1557_v31 = vadd.f32 1.0, %v1523_v16  ;;  %v1252_v3 = vmul.f32 %v1218_v28, %v5331_v24  ;;  %v1049_v61 = vmul.f32 %v1015_v56, %v5380_v23  ;;  %v3934_v18 = vpop.eup %3933  ;;  %v712_v4 = vsub.f32 1.0, %v711_v36 }
 0x159   :  { %v726_v38 = vmul.f32 %v3932_v62, %v5364_v46  ;;  %v5412_v41 = vsel %vm304_vm5, %v4982_v48, %v8079_v20  ;;  %v1373_v57 = vmul.f32 1.442695, %v1322_v58  ;;  %vm716_vm8 = vweird.f32 %v3930_v8 }
 0x15a   :  { %v1591_v55 = vmul.f32 %v1557_v31, %v5201_v25  ;;  %v1422_v24 = vmul.f32 %v3934_v18, %v1252_v3  ;;  %v1083_v39 = vadd.f32 1.4214138, %v1049_v61  ;;  %v3936_v54 = vpop.eup %3935  ;;  %v713_v52 = vmul.f32 %v3930_v8, %v712_v4  ;;  %vm717_vm9 = vmor %vm715_vm12, %vm716_vm8  ;;  %v3361_v4 = vld [vmem:[%s8005_s5 + $0x70] sm:$0xff] }
 0x15b   :  { %v727_v28 = vsub.f32 1.0, %v726_v38  ;;  %v406_v56 = vmul.f32 0.3275911, %v5412_v41  ;;  %vm730_vm7 = vweird.f32 %v5364_v46  ;;  %v734_v20 = vand.u32 2147483647, %v5364_v46  ;;  %v3377_v38 = vld [vmem:[%s8005_s5 + $0xf0] sm:$0xff]  ;;  %3384 = vmatpush.msrb.mxu2 %v3361_v4 }
 0x15c   :  { %1718 = vmatmul.f32.gmra.mxu2 %v1591_v55  ;;  %v1456_v16 = vsub.f32 1.0, %v1422_v24  ;;  %1854 = vmatmul.f32.gmra.mxu0 %v1591_v55  ;;  %v1117_v36 = vmul.f32 %v1083_v39, %v5380_v23  ;;  %v714_v34 = vadd.f32 %v3930_v8, %v713_v52  ;;  %v736_v31 = vand.u32 2147483648, %v5364_v46 }
 0x15d   :  { %v728_v25 = vmul.f32 %v3932_v62, %v727_v28  ;;  %v5420_v58 = vadd.f32 1.0, %v406_v56  ;;  %v722_v18 = vor.u32 1.1754944e-38, %v721_v60  ;;  %vm731_vm11 = vweird.f32 %v3932_v62  ;;  %3452 = vmatpush.msrb.mxu3 %v3377_v38 }
 0x15e   :  { %v1490_v3 = vsub.f32 0.0, %v1456_v16  ;;  %v1151_v61 = vadd.f32 -0.28449672, %v1117_v36  ;;  %v718_v55 = vsel %vm717_vm9, %v3930_v8, %v714_v34  ;;  %vm720_vm0 = vcmp.eq.f32.partialorder %v719_v59, 8.507059e+37  ;;  %vm732_vm1 = vmor %vm730_vm7, %vm731_vm11 }
 0x15f   :  { %v1323_v24 = vmul.f32 %v1289_v1, %v5349_v17  ;;  %3937 = vrcp.f32 %v5420_v58  ;;  %v5436_v39 = vsel %vm720_vm0, %v722_v18, %v718_v55  ;;  %v729_v52 = vadd.f32 %v3932_v62, %v728_v25  ;;  %3453 = vmatpush.msrb.mxu3 %v3376_v49 }
 0x160   :  { %v1524_v29 = vsel %vm300_vm2, %v1456_v16, %v1490_v3  ;;  %v1185_v60 = vmul.f32 %v1151_v61, %v5380_v23  ;;  %v982_v56 = vmul.f32 1.0614054, %v5436_v39  ;;  %vm735_vm4 = vcmp.eq.f32.partialorder %v734_v20, 8.507059e+37 }
 0x161   :  { %v1558_v28 = vadd.f32 1.0, %v1524_v29  ;;  %v737_v34 = vor.u32 1.1754944e-38, %v736_v31  ;;  %v733_v17 = vsel %vm732_vm1, %v3932_v62, %v729_v52  ;;  %v1290_v1 = vsub.f32 0.0, %v5412_v41 }
 0x162   :  { %v1219_v8 = vadd.f32 0.2548296, %v1185_v60  ;;  %vm305_vm6 = vcmp.ge.f32.partialorder %v5016_v5, 0.0  ;;  %v1016_v59 = vadd.f32 -1.4531521, %v982_v56  ;;  %vm306_vm2 = vcmp.ge.f32.partialorder %v5021_v33, 0.0 }
 0x163   :  { %v1592_v2 = vmul.f32 %v1558_v28, %v5282_v43  ;;  %v5444_v16 = vsel %vm735_vm4, %v737_v34, %v733_v17  ;;  %v349_v36 = vsub.f32 0.0, %v5391_v9  ;;  %v350_v46 = vsub.f32 0.0, %v5394_v63 }
 0x164   :  { %v1253_v20 = vmul.f32 %v1219_v8, %v5380_v23  ;;  %v983_v25 = vmul.f32 1.0614054, %v5444_v16  ;;  %v1050_v31 = vmul.f32 %v1016_v59, %v5436_v39  ;;  %3939 = vpow2.f32 %v1373_v57 }
 0x165   :  { %v3938_v62 = vpop.eup %3937  ;;  %1786 = vmatmul.f32.gmra.mxu3 %v1592_v2  ;;  %1922 = vmatmul.f32.gmra.mxu1 %v1592_v2  ;;  %v5453_v43 = vmul.f32 0.5, %v4958_v37  ;;  %v8080_v3 = vsub.f32 0.0, %v5016_v5  ;;  %v8081_v38 = vsub.f32 0.0, %v5021_v33  ;;  %v1375_v37 = vmul.f32 1.442695, %v1323_v24 }
 0x166   :  { %v1423_v18 = vmul.f32 %v3936_v54, %v1253_v20  ;;  %v1017_v4 = vadd.f32 -1.4531521, %v983_v25  ;;  %v741_v23 = vmul.f32 %v3938_v62, %v5420_v58  ;;  %v1084_v57 = vadd.f32 1.4214138, %v1050_v31 }
 0x167   :  { %v373_v61 = vsel %vm305_vm6, %v5016_v5, %v8080_v3  ;;  %v5466_v55 = vsel %vm306_vm2, %v5021_v33, %v8081_v38  ;;  %v749_v29 = vand.u32 2147483647, %v5420_v58  ;;  %v1324_v60 = vmul.f32 %v1290_v1, %v5412_v41 }
 0x168   :  { %v1457_v52 = vsub.f32 1.0, %v1423_v18  ;;  %v1051_v28 = vmul.f32 %v1017_v4, %v5444_v16  ;;  %v742_v54 = vsub.f32 1.0, %v741_v23  ;;  %v407_v56 = vmul.f32 0.3275911, %v373_v61 }
 0x169   :  { %v1118_v34 = vmul.f32 %v1084_v57, %v5436_v39  ;;  %vm746_vm15 = vweird.f32 %v3938_v62  ;;  %v751_v8 = vand.u32 2147483648, %v5420_v58  ;;  %v408_v17 = vmul.f32 0.3275911, %v5466_v55  ;;  %v3360_v57 = vld [vmem:[%s8005_s5 + $0x68] sm:$0xff] }
 0x16a   :  { %v1491_v2 = vsub.f32 0.0, %v1457_v52  ;;  %v1085_v59 = vadd.f32 1.4214138, %v1051_v28  ;;  %v743_v20 = vmul.f32 %v3938_v62, %v742_v54  ;;  %v5474_v24 = vadd.f32 1.0, %v407_v56  ;;  %v3940_v25 = vpop.eup %3939  ;;  %3385 = vmatpush.msrb.mxu2 %v3360_v57 }
 0x16b   :  { %v1152_v31 = vadd.f32 -0.28449672, %v1118_v34  ;;  %3941 = vpow2.f32 %v1375_v37  ;;  %vm745_vm10 = vweird.f32 %v5420_v58  ;;  %v1291_v41 = vsub.f32 0.0, %v373_v61  ;;  %v146_v37 = vpop.f32.mrf.mxu0 }
 0x16c   :  { %v1525_v1 = vsel %vm301_vm13, %v1457_v52, %v1491_v2  ;;  %v1119_v3 = vmul.f32 %v1085_v59, %v5444_v16  ;;  %v744_v18 = vadd.f32 %v3938_v62, %v743_v20  ;;  %3943 = vrcp.f32 %v5474_v24  ;;  %vm747_vm12 = vmor %vm745_vm10, %vm746_vm15 }
 0x16d   :  { %v1559_v4 = vadd.f32 1.0, %v1525_v1  ;;  %v1186_v23 = vmul.f32 %v1152_v31, %v5436_v39  ;;  %v752_v38 = vor.u32 1.1754944e-38, %v751_v8  ;;  %v5489_v58 = vadd.f32 1.0, %v408_v17 }
 0x16e   :  { %v1153_v52 = vadd.f32 -0.28449672, %v1119_v3  ;;  %v748_v28 = vsel %vm747_vm12, %v3938_v62, %v744_v18  ;;  %vm750_vm13 = vcmp.eq.f32.partialorder %v749_v29, 8.507059e+37  ;;  %v1377_v54 = vmul.f32 1.442695, %v1324_v60 }
 0x16f   :  { %v1593_v56 = vmul.f32 %v1559_v4, %v5378_v50  ;;  %v1220_v34 = vadd.f32 0.2548296, %v1186_v23  ;;  %v5492_v8 = vsel %vm750_vm13, %v752_v38, %v748_v28  ;;  %v1292_v2 = vsub.f32 0.0, %v5466_v55 }
 0x170   :  { %v1187_v59 = vmul.f32 %v1153_v52, %v5444_v16  ;;  %v984_v20 = vmul.f32 1.0614054, %v5492_v8  ;;  %v764_v17 = vand.u32 2147483647, %v5474_v24  ;;  %v1325_v31 = vmul.f32 %v1291_v41, %v373_v61 }
 0x171   :  { %v3942_v1 = vpop.eup %3941  ;;  %1721 = vmatmul.f32.gmra.mxu2 %v1593_v56  ;;  %v1254_v62 = vmul.f32 %v1220_v34, %v5436_v39  ;;  %1857 = vmatmul.f32.gmra.mxu0 %v1593_v56  ;;  %v5500_v29 = vadd.f32 %v146_v37, %v4470_v11  ;;  %v766_v50 = vand.u32 2147483648, %v5474_v24  ;;  %3945 = vrcp.f32 %v5489_v58 }
 0x172   :  { %v3944_v60 = vpop.eup %3943  ;;  %v1221_v3 = vadd.f32 0.2548296, %v1187_v59  ;;  %v1018_v18 = vadd.f32 -1.4531521, %v984_v20  ;;  %3947 = vpow2.f32 %v1377_v54  ;;  %vm307_vm8 = vcmp.ge.f32.partialorder %v5088_v0, 0.0 }
 0x173   :  { %v1424_v4 = vmul.f32 %v3940_v25, %v1254_v62  ;;  %v756_v61 = vmul.f32 %v3944_v60, %v5474_v24  ;;  %vm760_vm7 = vweird.f32 %v5474_v24  ;;  %v1326_v39 = vmul.f32 %v1292_v2, %v5466_v55 }
 0x174   :  { %v1255_v11 = vmul.f32 %v1221_v3, %v5444_v16  ;;  %v1052_v41 = vmul.f32 %v1018_v18, %v5492_v8  ;;  %vm5510_vm9 = vcmp.eq.f32.partialorder %v764_v17, 8.507059e+37  ;;  %v1379_v38 = vmul.f32 1.442695, %v1325_v31 }
 0x175   :  { %v1458_v57 = vsub.f32 1.0, %v1424_v4  ;;  %v757_v49 = vsub.f32 1.0, %v756_v61  ;;  %v767_v37 = vor.u32 1.1754944e-38, %v766_v50  ;;  %v8084_v25 = vsub.f32 0.0, %v5088_v0 }
 0x176   :  { %v1425_v28 = vmul.f32 %v3942_v1, %v1255_v11  ;;  %v1086_v55 = vadd.f32 1.4214138, %v1052_v41  ;;  %v779_v16 = vand.u32 2147483647, %v5489_v58  ;;  %vm761_vm11 = vweird.f32 %v3944_v60 }
 0x177   :  { %v375_v52 = vsel %vm307_vm8, %v5088_v0, %v8084_v25  ;;  %v3946_v56 = vpop.eup %3945  ;;  %v1492_v34 = vsub.f32 0.0, %v1458_v57  ;;  %v758_v2 = vmul.f32 %v3944_v60, %v757_v49  ;;  %v781_v59 = vand.u32 2147483648, %v5489_v58  ;;  %vm762_vm1 = vmor %vm760_vm7, %vm761_vm11 }
 0x178   :  { %v409_v54 = vmul.f32 0.3275911, %v375_v52  ;;  %v3948_v20 = vpop.eup %3947  ;;  %v1459_v17 = vsub.f32 1.0, %v1425_v28  ;;  %v1120_v31 = vmul.f32 %v1086_v55, %v5492_v8  ;;  %v771_v62 = vmul.f32 %v3946_v56, %v5489_v58 }
 0x179   :  { %vm308_vm0 = vcmp.ge.f32.partialorder %v5104_v35, 0.0  ;;  %v1526_v1 = vsel %vm302_vm14, %v1458_v57, %v1492_v34  ;;  %v759_v50 = vadd.f32 %v3944_v60, %v758_v2  ;;  %v1381_v3 = vmul.f32 1.442695, %v1326_v39 }
 0x17a   :  { %v5526_v18 = vadd.f32 1.0, %v409_v54  ;;  %v1560_v4 = vadd.f32 1.0, %v1526_v1  ;;  %v1493_v61 = vsub.f32 0.0, %v1459_v17  ;;  %v1154_v11 = vadd.f32 -0.28449672, %v1120_v31 }
 0x17b   :  { %v772_v41 = vsub.f32 1.0, %v771_v62  ;;  %v763_v49 = vsel %vm762_vm1, %v3944_v60, %v759_v50  ;;  %v1293_v25 = vsub.f32 0.0, %v375_v52  ;;  %v8085_v28 = vsub.f32 0.0, %v5104_v35 }
 0x17c   :  { %3949 = vrcp.f32 %v5526_v18  ;;  %v1594_v39 = vmul.f32 %v1560_v4, %v5385_v13  ;;  %v1527_v57 = vsel %vm303_vm3, %v1459_v17, %v1493_v61  ;;  %v1188_v24 = vmul.f32 %v1154_v11, %v5492_v8 }
 0x17d   :  { %v5536_v44 = vsel %vm308_vm0, %v5104_v35, %v8085_v28  ;;  %v5544_v60 = vsel %vm5510_vm9, %v767_v37, %v763_v49  ;;  %v1561_v55 = vadd.f32 1.0, %v1527_v57  ;;  %v773_v34 = vmul.f32 %v3946_v56, %v772_v41 }
 0x17e   :  { %v985_v54 = vmul.f32 1.0614054, %v5544_v60  ;;  %vm776_vm14 = vweird.f32 %v3946_v56  ;;  %1789 = vmatmul.f32.gmra.mxu3 %v1594_v39  ;;  %1925 = vmatmul.f32.gmra.mxu1 %v1594_v39  ;;  %v1222_v2 = vadd.f32 0.2548296, %v1188_v24  ;;  %3951 = vpow2.f32 %v1379_v38  ;;  %v3359_v38 = vld [vmem:[%s8005_s5 + $0x60] sm:$0xff] }
 0x17f   :  { %vm775_vm4 = vweird.f32 %v5489_v58  ;;  %vm5548_vm15 = vcmp.eq.f32.partialorder %v779_v16, 8.507059e+37  ;;  %v1595_v13 = vmul.f32 %v1561_v55, %v5388_v7  ;;  %v774_v37 = vadd.f32 %v3946_v56, %v773_v34  ;;  %v3375_v58 = vld [vmem:[%s8005_s5 + $0xe0] sm:$0xff]  ;;  %3386 = vmatpush.msrb.mxu2 %v3359_v38 }
 0x180   :  { %v1019_v23 = vadd.f32 -1.4531521, %v985_v54  ;;  %v410_v17 = vmul.f32 0.3275911, %v5536_v44  ;;  %v1256_v31 = vmul.f32 %v1222_v2, %v5492_v8  ;;  %vm777_vm3 = vmor %vm775_vm4, %vm776_vm14  ;;  %v782_v62 = vor.u32 1.1754944e-38, %v781_v59  ;;  %3454 = vmatpush.msrb.mxu3 %v3375_v58 }
 0x181   :  { %3953 = vpow2.f32 %v1381_v3  ;;  %v1327_v16 = vmul.f32 %v1293_v25, %v375_v52  ;;  %1724 = vmatmul.f32.gmra.mxu2 %v1595_v13  ;;  %1860 = vmatmul.f32.gmra.mxu0 %v1595_v13  ;;  %v778_v50 = vsel %vm777_vm3, %v3946_v56, %v774_v37  ;;  %v794_v8 = vand.u32 2147483647, %v5526_v18 }
 0x182   :  { %v3950_v1 = vpop.eup %3949  ;;  %v1053_v7 = vmul.f32 %v1019_v23, %v5544_v60  ;;  %v5563_v4 = vadd.f32 1.0, %v410_v17  ;;  %v1426_v59 = vmul.f32 %v3948_v20, %v1256_v31  ;;  %v5567_v3 = vsel %vm5548_vm15, %v782_v62, %v778_v50 }
 0x183   :  { %v786_v61 = vmul.f32 %v3950_v1, %v5526_v18  ;;  %vm309_vm10 = vcmp.ge.f32.partialorder %v5151_v45, 0.0  ;;  %v986_v11 = vmul.f32 1.0614054, %v5567_v3  ;;  %v796_v56 = vand.u32 2147483648, %v5526_v18 }
 0x184   :  { %v1087_v52 = vadd.f32 1.4214138, %v1053_v7  ;;  %3955 = vrcp.f32 %v5563_v4  ;;  %v3952_v41 = vpop.eup %3951  ;;  %v1460_v49 = vsub.f32 1.0, %v1426_v59  ;;  %v1383_v25 = vmul.f32 1.442695, %v1327_v16 }
 0x185   :  { %v787_v20 = vsub.f32 1.0, %v786_v61  ;;  %v1294_v28 = vsub.f32 0.0, %v5536_v44  ;;  %v1020_v57 = vadd.f32 -1.4531521, %v986_v11  ;;  %vm790_vm12 = vweird.f32 %v5526_v18 }
 0x186   :  { %v1121_v39 = vmul.f32 %v1087_v52, %v5544_v60  ;;  %v8088_v24 = vsub.f32 0.0, %v5151_v45  ;;  %v1494_v34 = vsub.f32 0.0, %v1460_v49  ;;  %vm791_vm13 = vweird.f32 %v3950_v1 }
 0x187   :  { %v5582_v54 = vpop.eup %3953  ;;  %v788_v2 = vmul.f32 %v3950_v1, %v787_v20  ;;  %vm5584_vm7 = vcmp.eq.f32.partialorder %v794_v8, 8.507059e+37  ;;  %v1054_v23 = vmul.f32 %v1020_v57, %v5567_v3  ;;  %v797_v37 = vor.u32 1.1754944e-38, %v796_v56  ;;  %vm792_vm9 = vmor %vm790_vm12, %vm791_vm13 }
 0x188   :  { %v377_v55 = vsel %vm309_vm10, %v5151_v45, %v8088_v24  ;;  %v1155_v13 = vadd.f32 -0.28449672, %v1121_v39  ;;  %v1528_v31 = vsel %vm304_vm5, %v1460_v49, %v1494_v34  ;;  %3957 = vpow2.f32 %v1383_v25  ;;  %v3372_v45 = vld [vmem:[%s8005_s5 + $0xc8] sm:$0xff] }
 0x189   :  { %v411_v17 = vmul.f32 0.3275911, %v377_v55  ;;  %v789_v62 = vadd.f32 %v3950_v1, %v788_v2  ;;  %v1328_v38 = vmul.f32 %v1294_v28, %v5536_v44  ;;  %v1562_v16 = vadd.f32 1.0, %v1528_v31 }
 0x18a   :  { %v3956_v58 = vpop.eup %3955  ;;  %v1189_v7 = vmul.f32 %v1155_v13, %v5544_v60  ;;  %v1088_v50 = vadd.f32 1.4214138, %v1054_v23  ;;  %v809_v48 = vand.u32 2147483647, %v5563_v4  ;;  %vm310_vm5 = vcmp.ge.f32.partialorder %v5167_v19, 0.0 }
 0x18b   :  { %v5595_v8 = vadd.f32 1.0, %v411_v17  ;;  %v793_v59 = vsel %vm792_vm9, %v3950_v1, %v789_v62  ;;  %v801_v61 = vmul.f32 %v3956_v58, %v5563_v4  ;;  %v1596_v52 = vmul.f32 %v1562_v16, %v5453_v43 }
 0x18c   :  { %v1223_v44 = vadd.f32 0.2548296, %v1189_v7  ;;  %v1122_v11 = vmul.f32 %v1088_v50, %v5567_v3  ;;  %v5604_v56 = vsel %vm5584_vm7, %v797_v37, %v793_v59  ;;  %v811_v1 = vand.u32 2147483648, %v5563_v4 }
 0x18d   :  { %v987_v18 = vmul.f32 1.0614054, %v5604_v56  ;;  %v802_v49 = vsub.f32 1.0, %v801_v61  ;;  %3959 = vrcp.f32 %v5595_v8  ;;  %1792 = vmatmul.f32.gmra.mxu3 %v1596_v52  ;;  %1928 = vmatmul.f32.gmra.mxu1 %v1596_v52  ;;  %v1385_v43 = vmul.f32 1.442695, %v1328_v38 }
 0x18e   :  { %v1257_v20 = vmul.f32 %v1223_v44, %v5544_v60  ;;  %v1156_v25 = vadd.f32 -0.28449672, %v1122_v11  ;;  %v1295_v28 = vsub.f32 0.0, %v377_v55  ;;  %v5610_v39 = vpop.eup %3957  ;;  %vm806_vm11 = vweird.f32 %v3956_v58 }
 0x18f   :  { %v1021_v57 = vadd.f32 -1.4531521, %v987_v18  ;;  %v803_v24 = vmul.f32 %v3956_v58, %v802_v49  ;;  %v8091_v34 = vsub.f32 0.0, %v5167_v19  ;;  %vm805_vm1 = vweird.f32 %v5563_v4  ;;  %v3374_v4 = vld [vmem:[%s8005_s5 + $0xd8] sm:$0xff] }
 0x190   :  { %v1427_v30 = vmul.f32 %v3952_v41, %v1257_v20  ;;  %v1190_v13 = vmul.f32 %v1156_v25, %v5567_v3  ;;  %vm5621_vm14 = vcmp.eq.f32.partialorder %v809_v48, 8.507059e+37  ;;  %v812_v17 = vor.u32 1.1754944e-38, %v811_v1  ;;  %vm807_vm4 = vmor %vm805_vm1, %vm806_vm11  ;;  %v3358_v41 = vld [vmem:[%s8005_s5 + $0x58] sm:$0xff]  ;;  %3455 = vmatpush.msrb.mxu3 %v3374_v4 }
 0x191   :  { %v5617_v2 = vsel %vm310_vm5, %v5167_v19, %v8091_v34  ;;  %v1055_v23 = vmul.f32 %v1021_v57, %v5604_v56  ;;  %v804_v37 = vadd.f32 %v3956_v58, %v803_v24  ;;  %3961 = vpow2.f32 %v1385_v43  ;;  %3387 = vmatpush.msrb.mxu2 %v3358_v41 }
 0x192   :  { %v412_v31 = vmul.f32 0.3275911, %v5617_v2  ;;  %v1461_v62 = vsub.f32 1.0, %v1427_v30  ;;  %v1224_v38 = vadd.f32 0.2548296, %v1190_v13  ;;  %v1329_v16 = vmul.f32 %v1295_v28, %v377_v55  ;;  %v8094_v13 = vld [vmem:[#allocation2_spill] sm:$0xff] }
 0x193   :  { %v3960_v7 = vpop.eup %3959  ;;  %v1089_v50 = vadd.f32 1.4214138, %v1055_v23  ;;  %v808_v59 = vsel %vm807_vm4, %v3956_v58, %v804_v37  ;;  %v824_v61 = vand.u32 2147483647, %v5595_v8  ;;  %v826_v58 = vand.u32 2147483648, %v5595_v8 }
 0x194   :  { %v5634_v48 = vadd.f32 1.0, %v412_v31  ;;  %v1495_v52 = vsub.f32 0.0, %v1461_v62  ;;  %v1258_v44 = vmul.f32 %v1224_v38, %v5567_v3  ;;  %v5639_v11 = vsel %vm5621_vm14, %v812_v17, %v808_v59 }
 0x195   :  { %v816_v18 = vmul.f32 %v3960_v7, %v5595_v8  ;;  %v1123_v55 = vmul.f32 %v1089_v50, %v5604_v56  ;;  %v988_v49 = vmul.f32 1.0614054, %v5639_v11  ;;  %v5649_v25 = vmul.f32 1.442695, %v1329_v16 }
 0x196   :  { %3963 = vrcp.f32 %v5634_v48  ;;  %v1529_v1 = vsel %vm305_vm6, %v1461_v62, %v1495_v52  ;;  %v1428_v20 = vmul.f32 %v5582_v54, %v1258_v44  ;;  %vm820_vm15 = vweird.f32 %v5595_v8 }
 0x197   :  { %v817_v3 = vsub.f32 1.0, %v816_v18  ;;  %v1563_v43 = vadd.f32 1.0, %v1529_v1  ;;  %v1157_v28 = vadd.f32 -0.28449672, %v1123_v55  ;;  %v1022_v57 = vadd.f32 -1.4531521, %v988_v49  ;;  %v5652_v24 = vpop.eup %3961 }
 0x198   :  { %v1462_v34 = vsub.f32 1.0, %v1428_v20  ;;  %vm821_vm3 = vweird.f32 %v3960_v7  ;;  %vm311_vm12 = vcmp.ge.f32.partialorder %v5250_v51, 0.0  ;;  %vm5658_vm6 = vcmp.eq.f32.partialorder %v824_v61, 8.507059e+37 }
 0x199   :  { %v818_v30 = vmul.f32 %v3960_v7, %v817_v3  ;;  %v1597_v5 = vmul.f32 %v1563_v43, %v8094_v13  ;;  %v1191_v60 = vmul.f32 %v1157_v28, %v5604_v56  ;;  %v1056_v54 = vmul.f32 %v1022_v57, %v5639_v11  ;;  %vm822_vm13 = vmor %vm820_vm15, %vm821_vm3  ;;  %v214_v57 = vpop.f32.mrf.mxu1 }
 0x19a   :  { %v1496_v37 = vsub.f32 0.0, %v1462_v34  ;;  %v827_v31 = vor.u32 1.1754944e-38, %v826_v58  ;;  %v1296_v62 = vsub.f32 0.0, %v5617_v2  ;;  %v839_v16 = vand.u32 2147483647, %v5634_v48 }
 0x19b   :  { %v819_v17 = vadd.f32 %v3960_v7, %v818_v30  ;;  %1727 = vmatmul.f32.gmra.mxu2 %v1597_v5  ;;  %1863 = vmatmul.f32.gmra.mxu0 %v1597_v5  ;;  %v1225_v41 = vadd.f32 0.2548296, %v1191_v60  ;;  %v1090_v4 = vadd.f32 1.4214138, %v1056_v54  ;;  %v8097_v50 = vsub.f32 0.0, %v5250_v51 }
 0x19c   :  { %v3964_v38 = vpop.eup %3963  ;;  %v1530_v61 = vsel %vm306_vm2, %v1462_v34, %v1496_v37  ;;  %vm312_vm7 = vcmp.ge.f32.partialorder %v5256_v14, 0.0  ;;  %v841_v33 = vand.u32 2147483648, %v5634_v48  ;;  %v8099_v13 = vsub.f32 0.0, %v5256_v14 }
 0x19d   :  { %v379_v59 = vsel %vm311_vm12, %v5250_v51, %v8097_v50  ;;  %v823_v52 = vsel %vm822_vm13, %v3960_v7, %v819_v17  ;;  %v831_v44 = vmul.f32 %v3964_v38, %v5634_v48  ;;  %v1564_v18 = vadd.f32 1.0, %v1530_v61  ;;  %v8098_v7 = vld [vmem:[#allocation3_spill] sm:$0xff] }
 0x19e   :  { %v1259_v8 = vmul.f32 %v1225_v41, %v5604_v56  ;;  %v1124_v55 = vmul.f32 %v1090_v4, %v5639_v11  ;;  %v5680_v49 = vsel %vm5658_vm6, %v827_v31, %v823_v52  ;;  %v413_v20 = vmul.f32 0.3275911, %v379_v59 }
 0x19f   :  { %v989_v58 = vmul.f32 1.0614054, %v5680_v49  ;;  %v832_v1 = vsub.f32 1.0, %v831_v44  ;;  %v1598_v3 = vmul.f32 %v1564_v18, %v8098_v7  ;;  %vm836_vm2 = vweird.f32 %v3964_v38 }
 0x1a0   :  { %v1429_v43 = vmul.f32 %v5610_v39, %v1259_v8  ;;  %v1158_v28 = vadd.f32 -0.28449672, %v1124_v55  ;;  %v5686_v30 = vadd.f32 1.0, %v413_v20  ;;  %v5693_v5 = vsel %vm312_vm7, %v5256_v14, %v8099_v13 }
 0x1a1   :  { %v1023_v56 = vadd.f32 -1.4531521, %v989_v58  ;;  %v833_v34 = vmul.f32 %v3964_v38, %v832_v1  ;;  %1795 = vmatmul.f32.gmra.mxu3 %v1598_v3  ;;  %1931 = vmatmul.f32.gmra.mxu1 %v1598_v3  ;;  %vm835_vm9 = vweird.f32 %v5634_v48  ;;  %v1330_v39 = vmul.f32 %v1296_v62, %v5617_v2  ;;  %v3357_v48 = vld [vmem:[%s8005_s5 + $0x50] sm:$0xff] }
 0x1a2   :  { %v1463_v60 = vsub.f32 1.0, %v1429_v43  ;;  %v1192_v54 = vmul.f32 %v1158_v28, %v5639_v11  ;;  %3965 = vrcp.f32 %v5686_v30  ;;  %v414_v17 = vmul.f32 0.3275911, %v5693_v5  ;;  %vm837_vm11 = vmor %vm835_vm9, %vm836_vm2  ;;  %v3373_v2 = vld [vmem:[%s8005_s5 + $0xd0] sm:$0xff]  ;;  %3388 = vmatpush.msrb.mxu2 %v3357_v48 }
 0x1a3   :  { %v1057_v23 = vmul.f32 %v1023_v56, %v5680_v49  ;;  %v834_v37 = vadd.f32 %v3964_v38, %v833_v34  ;;  %v5702_v31 = vadd.f32 %v214_v57, %v4472_v12  ;;  %v842_v50 = vor.u32 1.1754944e-38, %v841_v33  ;;  %3456 = vmatpush.msrb.mxu3 %v3373_v2 }
 0x1a4   :  { %v1497_v41 = vsub.f32 0.0, %v1463_v60  ;;  %v1226_v4 = vadd.f32 0.2548296, %v1192_v54  ;;  %vm840_vm1 = vcmp.eq.f32.partialorder %v839_v16, 8.507059e+37  ;;  %v1297_v12 = vsub.f32 0.0, %v379_v59 }
 0x1a5   :  { %v1091_v62 = vadd.f32 1.4214138, %v1057_v23  ;;  %v838_v61 = vsel %vm837_vm11, %v3964_v38, %v834_v37  ;;  %v5712_v52 = vmul.f32 0.70710677, %v5500_v29  ;;  %v1389_v38 = vmul.f32 1.442695, %v1330_v39  ;;  %3457 = vmatpush.msrb.mxu3 %v3372_v45 }
 0x1a6   :  { %v1531_v44 = vsel %vm307_vm8, %v1463_v60, %v1497_v41  ;;  %v1260_v18 = vmul.f32 %v1226_v4, %v5639_v11  ;;  %v5717_v8 = vsel %vm840_vm1, %v842_v50, %v838_v61  ;;  %v5722_v16 = vmul.f32 0.70710677, %v5702_v31 }
 0x1a7   :  { %v1565_v55 = vadd.f32 1.0, %v1531_v44  ;;  %v1125_v58 = vmul.f32 %v1091_v62, %v5680_v49  ;;  %v990_v1 = vmul.f32 1.0614054, %v5717_v8  ;;  %3967 = vpow2.f32 %v5649_v25 }
 0x1a8   :  { %v1430_v33 = vmul.f32 %v5652_v24, %v1260_v18  ;;  %v5726_v20 = vadd.f32 1.0, %v414_v17  ;;  %v3966_v0 = vpop.eup %3965  ;;  %v1331_v43 = vmul.f32 %v1297_v12, %v379_v59  ;;  %vm313_vm8 = vcmp.ge.f32.partialorder %v5313_v21, 0.0 }
 0x1a9   :  { %v1599_v11 = vmul.f32 %v1565_v55, %v5092_v40  ;;  %v1159_v7 = vadd.f32 -0.28449672, %v1125_v58  ;;  %v1024_v3 = vadd.f32 -1.4531521, %v990_v1  ;;  %v846_v57 = vmul.f32 %v3966_v0, %v5686_v30 }
 0x1aa   :  { %v1464_v28 = vsub.f32 1.0, %v1430_v33  ;;  %3969 = vrcp.f32 %v5726_v20  ;;  %v351_v56 = vsub.f32 0.0, %v5712_v52  ;;  %v854_v59 = vand.u32 2147483647, %v5686_v30 }
 0x1ab   :  { %1730 = vmatmul.f32.gmra.mxu2 %v1599_v11  ;;  %1866 = vmatmul.f32.gmra.mxu0 %v1599_v11  ;;  %v1193_v25 = vmul.f32 %v1159_v7, %v5680_v49  ;;  %v1058_v24 = vmul.f32 %v1024_v3, %v5717_v8  ;;  %3971 = vpow2.f32 %v1389_v38  ;;  %v847_v34 = vsub.f32 1.0, %v846_v57 }
 0x1ac   :  { %v1498_v40 = vsub.f32 0.0, %v1464_v28  ;;  %v856_v13 = vand.u32 2147483648, %v5686_v30  ;;  %vm850_vm14 = vweird.f32 %v5686_v30  ;;  %v8100_v39 = vsub.f32 0.0, %v5313_v21 }
 0x1ad   :  { %v1227_v60 = vadd.f32 0.2548296, %v1193_v25  ;;  %v1092_v54 = vadd.f32 1.4214138, %v1058_v24  ;;  %v3968_v37 = vpop.eup %3967  ;;  %v848_v41 = vmul.f32 %v3966_v0, %v847_v34  ;;  %vm851_vm4 = vweird.f32 %v3966_v0 }
 0x1ae   :  { %v5743_v23 = vsel %vm313_vm8, %v5313_v21, %v8100_v39  ;;  %v1532_v17 = vsel %vm308_vm0, %v1464_v28, %v1498_v40  ;;  %v1391_v4 = vmul.f32 1.442695, %v1331_v43  ;;  %vm5750_vm15 = vcmp.eq.f32.partialorder %v854_v59, 8.507059e+37  ;;  %vm852_vm0 = vmor %vm850_vm14, %vm851_vm4 }
 0x1af   :  { %v1566_v50 = vadd.f32 1.0, %v1532_v17  ;;  %v1261_v48 = vmul.f32 %v1227_v60, %v5680_v49  ;;  %v1126_v2 = vmul.f32 %v1092_v54, %v5717_v8  ;;  %v415_v62 = vmul.f32 0.3275911, %v5743_v23 }
 0x1b0   :  { %v3970_v61 = vpop.eup %3969  ;;  %v849_v12 = vadd.f32 %v3966_v0, %v848_v41  ;;  %v857_v18 = vor.u32 1.1754944e-38, %v856_v13  ;;  %v1298_v35 = vsub.f32 0.0, %v5693_v5  ;;  %v869_v11 = vand.u32 2147483647, %v5726_v20  ;;  %v3356_v41 = vld [vmem:[%s8005_s5 + $0x48] sm:$0xff] }
 0x1b1   :  { %v3972_v55 = vpop.eup %3971  ;;  %v1600_v58 = vmul.f32 %v1566_v50, %v5094_v22  ;;  %v1431_v1 = vmul.f32 %v3968_v37, %v1261_v48  ;;  %v1160_v38 = vadd.f32 -0.28449672, %v1126_v2  ;;  %v861_v49 = vmul.f32 %v3970_v61, %v5726_v20  ;;  %3389 = vmatpush.msrb.mxu2 %v3356_v41 }
 0x1b2   :  { %v853_v33 = vsel %vm852_vm0, %v3966_v0, %v849_v12  ;;  %v5761_v7 = vadd.f32 1.0, %v415_v62  ;;  %vm314_vm3 = vcmp.ge.f32.partialorder %v5318_v32, 0.0  ;;  %v871_v0 = vand.u32 2147483648, %v5726_v20 }
 0x1b3   :  { %1798 = vmatmul.f32.gmra.mxu3 %v1600_v58  ;;  %1934 = vmatmul.f32.gmra.mxu1 %v1600_v58  ;;  %v1465_v3 = vsub.f32 1.0, %v1431_v1  ;;  %v1194_v22 = vmul.f32 %v1160_v38, %v5717_v8  ;;  %v5767_v43 = vsel %vm5750_vm15, %v857_v18, %v853_v33  ;;  %v862_v30 = vsub.f32 1.0, %v861_v49 }
 0x1b4   :  { %v991_v28 = vmul.f32 1.0614054, %v5767_v43  ;;  %v1332_v57 = vmul.f32 %v1298_v35, %v5693_v5  ;;  %3973 = vrcp.f32 %v5761_v7  ;;  %vm866_vm6 = vweird.f32 %v3970_v61 }
 0x1b5   :  { %v1499_v25 = vsub.f32 0.0, %v1465_v3  ;;  %v1228_v24 = vadd.f32 0.2548296, %v1194_v22  ;;  %v863_v40 = vmul.f32 %v3970_v61, %v862_v30  ;;  %3975 = vpow2.f32 %v1391_v4 }
 0x1b6   :  { %v1025_v34 = vadd.f32 -1.4531521, %v991_v28  ;;  %vm865_vm13 = vweird.f32 %v5726_v20  ;;  %v8103_v59 = vsub.f32 0.0, %v5318_v32  ;;  %vm5784_vm2 = vcmp.eq.f32.partialorder %v869_v11, 8.507059e+37 }
 0x1b7   :  { %v1533_v5 = vsel %vm309_vm10, %v1465_v3, %v1499_v25  ;;  %v1262_v60 = vmul.f32 %v1228_v24, %v5717_v8  ;;  %v864_v54 = vadd.f32 %v3970_v61, %v863_v40  ;;  %vm867_vm9 = vmor %vm865_vm13, %vm866_vm6  ;;  %v872_v17 = vor.u32 1.1754944e-38, %v871_v0 }
 0x1b8   :  { %v5779_v13 = vsel %vm314_vm3, %v5318_v32, %v8103_v59  ;;  %v1567_v37 = vadd.f32 1.0, %v1533_v5  ;;  %v1059_v20 = vmul.f32 %v1025_v34, %v5767_v43  ;;  %v1393_v48 = vmul.f32 1.442695, %v1332_v57 }
 0x1b9   :  { %v416_v8 = vmul.f32 0.3275911, %v5779_v13  ;;  %v1432_v4 = vmul.f32 %v3972_v55, %v1262_v60  ;;  %v868_v50 = vsel %vm867_vm9, %v3970_v61, %v864_v54  ;;  %v1299_v2 = vsub.f32 0.0, %v5743_v23 }
 0x1ba   :  { %v3974_v62 = vpop.eup %3973  ;;  %v1601_v12 = vmul.f32 %v1567_v37, %v5144_v47  ;;  %v1093_v44 = vadd.f32 1.4214138, %v1059_v20  ;;  %v5800_v18 = vsel %vm5784_vm2, %v872_v17, %v868_v50  ;;  %vm315_vm10 = vcmp.ge.f32.partialorder %v5391_v9, 0.0 }
 0x1bb   :  { %v5802_v35 = vadd.f32 1.0, %v416_v8  ;;  %v1466_v58 = vsub.f32 1.0, %v1432_v4  ;;  %v992_v1 = vmul.f32 1.0614054, %v5800_v18  ;;  %v876_v61 = vmul.f32 %v3974_v62, %v5761_v7  ;;  %v3976_v55 = vpop.eup %3975 }
 0x1bc   :  { %v352_v38 = vsub.f32 0.0, %v5722_v16  ;;  %1733 = vmatmul.f32.gmra.mxu2 %v1601_v12  ;;  %1869 = vmatmul.f32.gmra.mxu0 %v1601_v12  ;;  %v1127_v47 = vmul.f32 %v1093_v44, %v5767_v43  ;;  %v884_v49 = vand.u32 2147483647, %v5761_v7  ;;  %v886_v22 = vand.u32 2147483648, %v5761_v7 }
 0x1bd   :  { %3977 = vrcp.f32 %v5802_v35  ;;  %v1500_v33 = vsub.f32 0.0, %v1466_v58  ;;  %v1026_v11 = vadd.f32 -1.4531521, %v992_v1  ;;  %v877_v3 = vsub.f32 1.0, %v876_v61 }
 0x1be   :  { %v1161_v30 = vadd.f32 -0.28449672, %v1127_v47  ;;  %3979 = vpow2.f32 %v1393_v48  ;;  %v1333_v28 = vmul.f32 %v1299_v2, %v5743_v23  ;;  %v5818_v0 = vsel %vm315_vm10, %v5391_v9, %v349_v36 }
 0x1bf   :  { %v1534_v57 = vsel %vm310_vm5, %v1466_v58, %v1500_v33  ;;  %v1060_v25 = vmul.f32 %v1026_v11, %v5800_v18  ;;  %v878_v24 = vmul.f32 %v3974_v62, %v877_v3  ;;  %vm881_vm11 = vweird.f32 %v3974_v62 }
 0x1c0   :  { %v1568_v40 = vadd.f32 1.0, %v1534_v57  ;;  %v1195_v34 = vmul.f32 %v1161_v30, %v5767_v43  ;;  %vm880_vm1 = vweird.f32 %v5761_v7  ;;  %v417_v23 = vmul.f32 0.3275911, %v5818_v0  ;;  %v3371_v57 = vld [vmem:[%s8005_s5 + $0xc0] sm:$0xff] }
 0x1c1   :  { %v1094_v59 = vadd.f32 1.4214138, %v1060_v25  ;;  %v879_v5 = vadd.f32 %v3974_v62, %v878_v24  ;;  %vm5826_vm14 = vcmp.eq.f32.partialorder %v884_v49, 8.507059e+37  ;;  %v887_v36 = vor.u32 1.1754944e-38, %v886_v22  ;;  %vm882_vm5 = vmor %vm880_vm1, %vm881_vm11  ;;  %3458 = vmatpush.msrb.mxu3 %v3371_v57 }
 0x1c2   :  { %v1602_v54 = vmul.f32 %v1568_v40, %v5175_v26  ;;  %v1229_v39 = vadd.f32 0.2548296, %v1195_v34  ;;  %v1300_v37 = vsub.f32 0.0, %v5779_v13  ;;  %v5832_v20 = vadd.f32 1.0, %v417_v23 }
 0x1c3   :  { %v3978_v19 = vpop.eup %3977  ;;  %v1128_v7 = vmul.f32 %v1094_v59, %v5800_v18  ;;  %v883_v17 = vsel %vm882_vm5, %v3974_v62, %v879_v5  ;;  %vm316_vm4 = vcmp.ge.f32.partialorder %v5394_v63, 0.0  ;;  %v899_v4 = vand.u32 2147483647, %v5802_v35 }
 0x1c4   :  { %v891_v41 = vmul.f32 %v3978_v19, %v5802_v35  ;;  %v3980_v45 = vpop.eup %3979  ;;  %1801 = vmatmul.f32.gmra.mxu3 %v1602_v54  ;;  %1937 = vmatmul.f32.gmra.mxu1 %v1602_v54  ;;  %v1263_v8 = vmul.f32 %v1229_v39, %v5767_v43  ;;  %v5840_v26 = vsel %vm5826_vm14, %v887_v36, %v883_v17  ;;  %3981 = vrcp.f32 %v5832_v20 }
 0x1c5   :  { %v1162_v50 = vadd.f32 -0.28449672, %v1128_v7  ;;  %v993_v48 = vmul.f32 1.0614054, %v5840_v26  ;;  %v901_v62 = vand.u32 2147483648, %v5802_v35  ;;  %v1334_v58 = vmul.f32 %v1300_v37, %v5779_v13 }
 0x1c6   :  { %v892_v2 = vsub.f32 1.0, %v891_v41  ;;  %v1433_v12 = vmul.f32 %v3976_v55, %v1263_v8  ;;  %v1395_v44 = vmul.f32 1.442695, %v1333_v28  ;;  %v5852_v43 = vsel %vm316_vm4, %v5394_v63, %v350_v46 }
 0x1c7   :  { %v1196_v1 = vmul.f32 %v1162_v50, %v5800_v18  ;;  %v1027_v61 = vadd.f32 -1.4531521, %v993_v48  ;;  %vm896_vm15 = vweird.f32 %v3978_v19  ;;  %vm895_vm0 = vweird.f32 %v5802_v35  ;;  %v3355_v35 = vld [vmem:[%s8005_s5 + $0x40] sm:$0xff] }
 0x1c8   :  { %v893_v47 = vmul.f32 %v3978_v19, %v892_v2  ;;  %v1467_v49 = vsub.f32 1.0, %v1433_v12  ;;  %vm5856_vm6 = vcmp.eq.f32.partialorder %v899_v4, 8.507059e+37  ;;  %v418_v13 = vmul.f32 0.3275911, %v5852_v43  ;;  %vm897_vm13 = vmor %vm895_vm0, %vm896_vm15  ;;  %3390 = vmatpush.msrb.mxu2 %v3355_v35 }
 0x1c9   :  { %v1230_v33 = vadd.f32 0.2548296, %v1196_v1  ;;  %v1061_v11 = vmul.f32 %v1027_v61, %v5840_v26  ;;  %v902_v46 = vor.u32 1.1754944e-38, %v901_v62  ;;  %3983 = vpow2.f32 %v1395_v44 }
 0x1ca   :  { %v894_v3 = vadd.f32 %v3978_v19, %v893_v47  ;;  %v3982_v22 = vpop.eup %3981  ;;  %v1501_v30 = vsub.f32 0.0, %v1467_v49  ;;  %v1397_v28 = vmul.f32 1.442695, %v1334_v58  ;;  %v5868_v25 = vadd.f32 1.0, %v418_v13 }
 0x1cb   :  { %v1264_v24 = vmul.f32 %v1230_v33, %v5800_v18  ;;  %v1095_v40 = vadd.f32 1.4214138, %v1061_v11  ;;  %v906_v23 = vmul.f32 %v3982_v22, %v5832_v20  ;;  %v1301_v60 = vsub.f32 0.0, %v5818_v0 }
 0x1cc   :  { %v898_v34 = vsel %vm897_vm13, %v3978_v19, %v894_v3  ;;  %v1535_v59 = vsel %vm311_vm12, %v1467_v49, %v1501_v30  ;;  %3985 = vrcp.f32 %v5868_v25  ;;  %v914_v37 = vand.u32 2147483647, %v5832_v20 }
 0x1cd   :  { %v5876_v5 = vsel %vm5856_vm6, %v902_v46, %v898_v34  ;;  %v1569_v36 = vadd.f32 1.0, %v1535_v59  ;;  %v1434_v54 = vmul.f32 %v3980_v45, %v1264_v24  ;;  %v1129_v18 = vmul.f32 %v1095_v40, %v5840_v26 }
 0x1ce   :  { %v994_v19 = vmul.f32 1.0614054, %v5876_v5  ;;  %v907_v39 = vsub.f32 1.0, %v906_v23  ;;  %v916_v51 = vand.u32 2147483648, %v5832_v20  ;;  %vm317_vm12 = vcmp.ge.f32.partialorder %v5712_v52, 0.0 }
 0x1cf   :  { %v1603_v7 = vmul.f32 %v1569_v36, %v5263_v42  ;;  %v1468_v17 = vsub.f32 1.0, %v1434_v54  ;;  %v1163_v41 = vadd.f32 -0.28449672, %v1129_v18  ;;  %v3984_v4 = vpop.eup %3983  ;;  %3987 = vpow2.f32 %v1397_v28  ;;  %v5931_v54 = vld [vmem:[%s8006_s4] sm:$0x3]  ;;  %v3370_v18 = vld [vmem:[%s8005_s5 + $0xb8] sm:$0xff] }
 0x1d0   :  { %v1028_v8 = vadd.f32 -1.4531521, %v994_v19  ;;  %v908_v50 = vmul.f32 %v3982_v22, %v907_v39  ;;  %vm910_vm2 = vweird.f32 %v5832_v20  ;;  %vm911_vm9 = vweird.f32 %v3982_v22  ;;  %3459 = vmatpush.msrb.mxu3 %v3370_v18 }
 0x1d1   :  { %1736 = vmatmul.f32.gmra.mxu2 %v1603_v7  ;;  %v1502_v45 = vsub.f32 0.0, %v1468_v17  ;;  %1872 = vmatmul.f32.gmra.mxu0 %v1603_v7  ;;  %v1197_v48 = vmul.f32 %v1163_v41, %v5840_v26  ;;  %v5894_v42 = vsel %vm317_vm12, %v5712_v52, %v351_v56  ;;  %vm915_vm11 = vcmp.eq.f32.partialorder %v914_v37, 8.507059e+37  ;;  %vm912_vm1 = vmor %vm910_vm2, %vm911_vm9 }
 0x1d2   :  { %v1062_v2 = vmul.f32 %v1028_v8, %v5876_v5  ;;  %v3986_v62 = vpop.eup %3985  ;;  %v909_v12 = vadd.f32 %v3982_v22, %v908_v50  ;;  %v917_v44 = vor.u32 1.1754944e-38, %v916_v51  ;;  %v419_v58 = vmul.f32 0.3275911, %v5894_v42 }
 0x1d3   :  { %v1536_v1 = vsel %vm312_vm7, %v1468_v17, %v1502_v45  ;;  %v1231_v61 = vadd.f32 0.2548296, %v1197_v48  ;;  %v921_v49 = vmul.f32 %v3986_v62, %v5868_v25  ;;  %v929_v13 = vand.u32 2147483647, %v5868_v25  ;;  %v1834_v48 = vpop.f32.mrf.mxu0 }
 0x1d4   :  { %v1096_v47 = vadd.f32 1.4214138, %v1062_v2  ;;  %v1570_v55 = vadd.f32 1.0, %v1536_v1  ;;  %v913_v56 = vsel %vm912_vm1, %v3982_v22, %v909_v12  ;;  %v931_v33 = vand.u32 2147483648, %v5868_v25 }
 0x1d5   :  { %v1265_v11 = vmul.f32 %v1231_v61, %v5840_v26  ;;  %v5907_v14 = vsel %vm915_vm11, %v917_v44, %v913_v56  ;;  %v922_v46 = vsub.f32 1.0, %v921_v49  ;;  %v3988_v30 = vpop.eup %3987  ;;  %vm926_vm7 = vweird.f32 %v3986_v62 }
 0x1d6   :  { %v1130_v3 = vmul.f32 %v1096_v47, %v5876_v5  ;;  %v1604_v28 = vmul.f32 %v1570_v55, %v5267_v15  ;;  %v995_v20 = vmul.f32 1.0614054, %v5907_v14  ;;  %v5911_v35 = vadd.f32 1.0, %v419_v58 }
 0x1d7   :  { %v1435_v22 = vmul.f32 %v3984_v4, %v1265_v11  ;;  %v1335_v24 = vmul.f32 %v1301_v60, %v5818_v0  ;;  %v923_v40 = vmul.f32 %v3986_v62, %v922_v46  ;;  %vm925_vm14 = vweird.f32 %v5868_v25  ;;  %v3354_v25 = vld [vmem:[%s8005_s5 + $0x38] sm:$0xff] }
 0x1d8   :  { %v1164_v57 = vadd.f32 -0.28449672, %v1130_v3  ;;  %1804 = vmatmul.f32.gmra.mxu3 %v1604_v28  ;;  %1940 = vmatmul.f32.gmra.mxu1 %v1604_v28  ;;  %v1029_v26 = vadd.f32 -1.4531521, %v995_v20  ;;  %3989 = vrcp.f32 %v5911_v35  ;;  %vm318_vm5 = vcmp.ge.f32.partialorder %v5722_v16, 0.0  ;;  %vm5919_vm15 = vmor %vm925_vm14, %vm926_vm7  ;;  %v1902_v3 = vpop.f32.mrf.mxu1 }
 0x1d9   :  { %v1469_v15 = vsub.f32 1.0, %v1435_v22  ;;  %v924_v23 = vadd.f32 %v3986_v62, %v923_v40  ;;  %v1302_v0 = vsub.f32 0.0, %v5852_v43  ;;  %vm930_vm0 = vcmp.eq.f32.partialorder %v929_v13, 8.507059e+37  ;;  %3391 = vmatpush.msrb.mxu2 %v3354_v25 }
 0x1da   :  { %v1198_v34 = vmul.f32 %v1164_v57, %v5876_v5  ;;  %v1063_v60 = vmul.f32 %v1029_v26, %v5907_v14  ;;  %v932_v36 = vor.u32 1.1754944e-38, %v931_v33  ;;  %v5943_v51 = vsel %vm318_vm5, %v5722_v16, %v352_v38 }
 0x1db   :  { %v1503_v19 = vsub.f32 0.0, %v1469_v15  ;;  %v928_v37 = vsel %vm5919_vm15, %v3986_v62, %v924_v23  ;;  %v5948_v41 = vperm.slane %v5931_v54, 1  ;;  %v1399_v50 = vmul.f32 1.442695, %v1335_v24 }
 0x1dc   :  { %v1232_v39 = vadd.f32 0.2548296, %v1198_v34  ;;  %v1097_v7 = vadd.f32 1.4214138, %v1063_v60  ;;  %v5945_v17 = vsel %vm930_vm0, %v932_v36, %v928_v37  ;;  %v245_v62 = vmul.f32 0.5, %v5296_v27 }
 0x1dd   :  { %v1537_v8 = vsel %vm313_vm8, %v1469_v15, %v1503_v19  ;;  %v996_v45 = vmul.f32 1.0614054, %v5945_v17  ;;  %v420_v44 = vmul.f32 0.3275911, %v5943_v51  ;;  %v1336_v61 = vmul.f32 %v1302_v0, %v5852_v43 }
 0x1de   :  { %v1266_v4 = vmul.f32 %v1232_v39, %v5876_v5  ;;  %v3990_v2 = vpop.eup %3989  ;;  %v1571_v38 = vadd.f32 1.0, %v1537_v8  ;;  %v1131_v12 = vmul.f32 %v1097_v7, %v5907_v14  ;;  %v1835_v49 = vadd.f32 %v1834_v48, %v5948_v41 }
 0x1df   :  { %v1030_v1 = vadd.f32 -1.4531521, %v996_v45  ;;  %v936_v21 = vmul.f32 %v3990_v2, %v5911_v35  ;;  %v5960_v55 = vadd.f32 1.0, %v420_v44  ;;  %3991 = vpow2.f32 %v1399_v50 }
 0x1e0   :  { %v1436_v58 = vmul.f32 %v3988_v30, %v1266_v4  ;;  %v1605_v47 = vmul.f32 %v1571_v38, %v245_v62  ;;  %v1165_v5 = vadd.f32 -0.28449672, %v1131_v12  ;;  %v1401_v30 = vmul.f32 1.442695, %v1336_v61 }
 0x1e1   :  { %v1064_v27 = vmul.f32 %v1030_v1, %v5945_v17  ;;  %v937_v33 = vsub.f32 1.0, %v936_v21  ;;  %3993 = vrcp.f32 %v5960_v55  ;;  %v5965_v28 = vadd.f32 %v1902_v3, %v1835_v49 }
 0x1e2   :  { %v1470_v56 = vsub.f32 1.0, %v1436_v58  ;;  %1739 = vmatmul.f32.gmra.mxu2 %v1605_v47  ;;  %1875 = vmatmul.f32.gmra.mxu0 %v1605_v47  ;;  %v1199_v13 = vmul.f32 %v1165_v5, %v5907_v14  ;;  %vm941_vm8 = vweird.f32 %v3990_v2  ;;  %v946_v24 = vand.u32 2147483648, %v5911_v35 }
 0x1e3   :  { %v1098_v11 = vadd.f32 1.4214138, %v1064_v27  ;;  %v938_v20 = vmul.f32 %v3990_v2, %v937_v33  ;;  %v246_v40 = vmul.f32 0.5, %v5302_v53  ;;  %v944_v34 = vand.u32 2147483647, %v5911_v35  ;;  %v1698_v27 = vpop.f32.mrf.mxu2  ;;  %v3369_v33 = vld [vmem:[%s8005_s5 + $0xb0] sm:$0xff] }
 0x1e4   :  { %v1504_v43 = vsub.f32 0.0, %v1470_v56  ;;  %v1233_v46 = vadd.f32 0.2548296, %v1199_v13  ;;  %vm940_vm6 = vweird.f32 %v5911_v35  ;;  %v1303_v32 = vsub.f32 0.0, %v5894_v42  ;;  %v1766_v13 = vpop.f32.mrf.mxu3  ;;  %3460 = vmatpush.msrb.mxu3 %v3369_v33  ;;  %v3348_v33 = vld [vmem:[%s8005_s5 + $0x8] sm:$0xff] }
 0x1e5   :  { %v1132_v57 = vmul.f32 %v1098_v11, %v5945_v17  ;;  %v3992_v23 = vpop.eup %3991  ;;  %v939_v0 = vadd.f32 %v3990_v2, %v938_v20  ;;  %3995 = vpow2.f32 %v1401_v30  ;;  %v5977_v18 = vmul.f32 0.70710677, %v5965_v28  ;;  %v1837_v30 = vpop.f32.mrf.mxu0 }
 0x1e6   :  { %v1538_v22 = vsel %vm314_vm3, %v1470_v56, %v1504_v43  ;;  %v1267_v15 = vmul.f32 %v1233_v46, %v5907_v14  ;;  %vm942_vm3 = vmor %vm940_vm6, %vm941_vm8  ;;  %v947_v19 = vor.u32 1.1754944e-38, %v946_v24  ;;  %vm945_vm13 = vcmp.eq.f32.partialorder %v944_v34, 8.507059e+37  ;;  %v3352_v43 = vld [vmem:[%s8005_s5 + $0x28] sm:$0xff]  ;;  %v1905_v20 = vpop.f32.mrf.mxu1 }
 0x1e7   :  { %v1572_v26 = vadd.f32 1.0, %v1538_v22  ;;  %v1166_v59 = vadd.f32 -0.28449672, %v1132_v57  ;;  %v3994_v60 = vpop.eup %3993  ;;  %v943_v14 = vsel %vm942_vm3, %v3990_v2, %v939_v0  ;;  %v247_v37 = vmul.f32 0.5, %v5368_v10  ;;  %v3368_v22 = vld [vmem:[%s8005_s5 + $0xa8] sm:$0xff] }
 0x1e8   :  { %v1437_v25 = vmul.f32 %v3992_v23, %v1267_v15  ;;  %v951_v39 = vmul.f32 %v3994_v60, %v5960_v55  ;;  %v5983_v8 = vsel %vm945_vm13, %v947_v19, %v943_v14  ;;  %v2056_v45 = vsub.f32 0.0, %v5977_v18  ;;  %v3367_v15 = vld [vmem:[%s8005_s5 + $0xa0] sm:$0xff]  ;;  %3461 = vmatpush.msrb.mxu3 %v3368_v22 }
 0x1e9   :  { %v1606_v36 = vmul.f32 %v1572_v26, %v246_v40  ;;  %v1200_v53 = vmul.f32 %v1166_v59, %v5945_v17  ;;  %v997_v48 = vmul.f32 1.0614054, %v5983_v8  ;;  %v1337_v2 = vmul.f32 %v1303_v32, %v5894_v42 }
 0x1ea   :  { %v1471_v35 = vsub.f32 1.0, %v1437_v25  ;;  %v952_v4 = vsub.f32 1.0, %v951_v39  ;;  %vm956_vm2 = vweird.f32 %v3994_v60  ;;  %v961_v12 = vand.u32 2147483648, %v5960_v55  ;;  %v3366_v25 = vld [vmem:[%s8005_s5 + $0x98] sm:$0xff]  ;;  %3462 = vmatpush.msrb.mxu3 %v3367_v15 }
 0x1eb   :  { %1807 = vmatmul.f32.gmra.mxu3 %v1606_v36  ;;  %1943 = vmatmul.f32.gmra.mxu1 %v1606_v36  ;;  %v1234_v7 = vadd.f32 0.2548296, %v1200_v53  ;;  %v3996_v44 = vpop.eup %3995  ;;  %vm2022_vm9 = vcmp.ge.f32.partialorder %v5977_v18, 0.0  ;;  %v1031_v58 = vadd.f32 -1.4531521, %v997_v48  ;;  %vm955_vm11 = vweird.f32 %v5960_v55  ;;  %v3350_v36 = vld [vmem:[%s8005_s5 + $0x18] sm:$0xff] }
 0x1ec   :  { %v1505_v50 = vsub.f32 0.0, %v1471_v35  ;;  %v953_v38 = vmul.f32 %v3994_v60, %v952_v4  ;;  %v959_v1 = vand.u32 2147483647, %v5960_v55  ;;  %vm5996_vm1 = vmor %vm955_vm11, %vm956_vm2  ;;  %v6003_v9 = vsel %vm2022_vm9, %v5977_v18, %v2056_v45  ;;  %v3353_v55 = vld [vmem:[%s8005_s5 + $0x30] sm:$0xff]  ;;  %3463 = vmatpush.msrb.mxu3 %v3366_v25  ;;  %v1769_v45 = vpop.f32.mrf.mxu3 }
 0x1ed   :  { %v1268_v62 = vmul.f32 %v1234_v7, %v5945_v17  ;;  %v1065_v42 = vmul.f32 %v1031_v58, %v5983_v8  ;;  %v962_v56 = vor.u32 1.1754944e-38, %v961_v12  ;;  %v6017_v46 = vperm.slane %v5931_v54, 0  ;;  %3392 = vmatpush.msrb.mxu2 %v3353_v55  ;;  %v3351_v54 = vld [vmem:[%s8005_s5 + $0x20] sm:$0xff]  ;;  %v3349_v48 = vld [vmem:[%s8005_s5 + $0x10] sm:$0xff]  ;;  %v6061_v12 = vpop.f32.mrf.mxu0 }
 0x1ee   :  { %v1539_v10 = vsel %vm315_vm10, %v1471_v35, %v1505_v50  ;;  %v954_v47 = vadd.f32 %v3994_v60, %v953_v38  ;;  %vm960_vm10 = vcmp.eq.f32.partialorder %v959_v1, 8.507059e+37  ;;  %v1403_v24 = vmul.f32 1.442695, %v1337_v2  ;;  %v1701_v50 = vpop.f32.mrf.mxu2 }
 0x1ef   :  { %v1573_v61 = vadd.f32 1.0, %v1539_v10  ;;  %v1438_v21 = vmul.f32 %v3996_v44, %v1268_v62  ;;  %v1099_v11 = vadd.f32 1.4214138, %v1065_v42  ;;  %v1304_v26 = vsub.f32 0.0, %v5943_v51  ;;  %3393 = vmatpush.msrb.mxu2 %v3352_v43  ;;  %v6063_v44 = vpop.f32.mrf.mxu1  ;;  %v3364_v43 = vld [vmem:[%s8005_s5 + $0x88] sm:$0xff] }
 0x1f0   :  { %v958_v3 = vsel %vm5996_vm1, %v3994_v60, %v954_v47  ;;  %v1699_v59 = vadd.f32 %v1698_v27, %v6017_v46  ;;  %v248_v0 = vmul.f32 0.5, %v5372_v6  ;;  %v2124_v60 = vmul.f32 0.3275911, %v6003_v9 }
 0x1f1   :  { %v1607_v5 = vmul.f32 %v1573_v61, %v247_v37  ;;  %v1472_v49 = vsub.f32 1.0, %v1438_v21  ;;  %v6022_v40 = vsel %vm960_vm10, %v962_v56, %v958_v3  ;;  %v1133_v34 = vmul.f32 %v1099_v11, %v5983_v8  ;;  %3394 = vmatpush.msrb.mxu2 %v3351_v54 }
 0x1f2   :  { %v998_v23 = vmul.f32 1.0614054, %v6022_v40  ;;  %v6044_v39 = vadd.f32 %v1766_v13, %v1699_v59  ;;  %3997 = vpow2.f32 %v1403_v24  ;;  %v1338_v6 = vmul.f32 %v1304_v26, %v5943_v51  ;;  %v3365_v51 = vld [vmem:[%s8005_s5 + $0x90] sm:$0xff] }
 0x1f3   :  { %1742 = vmatmul.f32.gmra.mxu2 %v1607_v5  ;;  %v1506_v57 = vsub.f32 0.0, %v1472_v49  ;;  %1878 = vmatmul.f32.gmra.mxu0 %v1607_v5  ;;  %v1167_v14 = vadd.f32 -0.28449672, %v1133_v34  ;;  %v6049_v7 = vadd.f32 1.0, %v2124_v60  ;;  %v1838_v38 = vadd.f32 %v1837_v30, %v5948_v41 }
 0x1f4   :  { %v1032_v19 = vadd.f32 -1.4531521, %v998_v23  ;;  %3395 = vmatpush.msrb.mxu2 %v3350_v36  ;;  %v6052_v4 = vmul.f32 0.70710677, %v6044_v39  ;;  %v1405_v10 = vmul.f32 1.442695, %v1338_v6  ;;  %3464 = vmatpush.msrb.mxu3 %v3365_v51  ;;  %v6083_v55 = vpop.f32.mrf.mxu3 }
 0x1f5   :  { %v1540_v32 = vsel %vm316_vm4, %v1472_v49, %v1506_v57  ;;  %v1201_v35 = vmul.f32 %v1167_v14, %v5983_v8  ;;  %3999 = vrcp.f32 %v6049_v7  ;;  %v6076_v49 = vadd.f32 %v1905_v20, %v1838_v38  ;;  %v6095_v22 = vpop.f32.mrf.mxu0 }
 0x1f6   :  { %v1574_v53 = vadd.f32 1.0, %v1540_v32  ;;  %v1066_v37 = vmul.f32 %v1032_v19, %v6022_v40  ;;  %vm2021_vm4 = vcmp.ge.f32.partialorder %v6052_v4, 0.0  ;;  %v2055_v58 = vsub.f32 0.0, %v6052_v4  ;;  %3396 = vmatpush.msrb.mxu2 %v3349_v48  ;;  %v6081_v13 = vpop.f32.mrf.mxu2  ;;  %3465 = vmatpush.msrb.mxu3 %v3364_v43 }
 0x1f7   :  { %v1235_v2 = vadd.f32 0.2548296, %v1201_v35  ;;  %4001 = vpow2.f32 %v1405_v10  ;;  %v6092_v30 = vmul.f32 0.70710677, %v6076_v49  ;;  %v1702_v20 = vadd.f32 %v1701_v50, %v6017_v46  ;;  %v6097_v57 = vpop.f32.mrf.mxu1 }
 0x1f8   :  { %v1608_v63 = vmul.f32 %v1574_v53, %v248_v0  ;;  %v1100_v62 = vadd.f32 1.4214138, %v1066_v37  ;;  %v3998_v21 = vpop.eup %3997  ;;  %v6073_v47 = vsel %vm2021_vm4, %v6052_v4, %v2055_v58  ;;  %3397 = vmatpush.msrb.mxu2 %v3348_v33  ;;  %v249_v34 = vmul.f32 0.5, %v5500_v29 }
 0x1f9   :  { %v1269_v1 = vmul.f32 %v1235_v2, %v5983_v8  ;;  %v2123_v5 = vmul.f32 0.3275911, %v6073_v47  ;;  %v2058_v0 = vsub.f32 0.0, %v6092_v30  ;;  %v6107_v32 = vadd.f32 %v1769_v45, %v1702_v20 }
 0x1fa   :  { %1810 = vmatmul.f32.gmra.mxu3 %v1608_v63  ;;  %1946 = vmatmul.f32.gmra.mxu1 %v1608_v63  ;;  %v1134_v61 = vmul.f32 %v1100_v62, %v6022_v40  ;;  %v3008_v52 = vsub.f32 0.0, %v6003_v9  ;;  %v250_v48 = vmul.f32 0.5, %v5702_v31  ;;  %v2217_v16 = vand.u32 2147483648, %v6049_v7 }
 0x1fb   :  { %v1439_v42 = vmul.f32 %v3998_v21, %v1269_v1  ;;  %v6079_v27 = vadd.f32 1.0, %v2123_v5  ;;  %v6099_v24 = vpop.eup %3999  ;;  %v6118_v14 = vmul.f32 0.70710677, %v6107_v32  ;;  %v2215_v5 = vand.u32 2147483647, %v6049_v7 }
 0x1fc   :  { %v1168_v17 = vadd.f32 -0.28449672, %v1134_v61  ;;  %v2207_v36 = vmul.f32 %v6099_v24, %v6049_v7  ;;  %v3042_v51 = vmul.f32 %v3008_v52, %v6003_v9  ;;  %v1841_v9 = vadd.f32 %v6061_v12, %v5948_v41 }
 0x1fd   :  { %v1473_v56 = vsub.f32 1.0, %v1439_v42  ;;  %v4002_v15 = vpop.eup %4001  ;;  %4003 = vrcp.f32 %v6079_v27  ;;  %v6120_v19 = vpop.f32.mrf.mxu0  ;;  %v2057_v38 = vsub.f32 0.0, %v6118_v14  ;;  %vm2023_vm7 = vcmp.ge.f32.partialorder %v6118_v14, 0.0 }
 0x1fe   :  { %v1202_v8 = vmul.f32 %v1168_v17, %v6022_v40  ;;  %v6113_v29 = vpop.f32.mrf.mxu2  ;;  %v2208_v50 = vsub.f32 1.0, %v2207_v36  ;;  %v3077_v31 = vmul.f32 1.442695, %v3042_v51  ;;  %vm2212_vm14 = vweird.f32 %v6099_v24 }
 0x1ff   :  { %v1507_v11 = vsub.f32 0.0, %v1473_v56  ;;  %v6129_v35 = vpop.f32.mrf.mxu1  ;;  %v2218_v12 = vor.u32 1.1754944e-38, %v2217_v16  ;;  %v6171_v20 = vadd.f32 %v6063_v44, %v1841_v9  ;;  %vm2216_vm0 = vcmp.eq.f32.partialorder %v2215_v5, 8.507059e+37 }
 0x200   :  { %v1236_v3 = vadd.f32 0.2548296, %v1202_v8  ;;  %v2209_v1 = vmul.f32 %v6099_v24, %v2208_v50  ;;  %v6161_v8 = vmul.f32 0.5, %v5965_v28  ;;  %vm2196_vm6 = vweird.f32 %v6079_v27 }
 0x201   :  { %v1541_v26 = vsel %vm317_vm12, %v1473_v56, %v1507_v11  ;;  %vm2024_vm12 = vcmp.ge.f32.partialorder %v6092_v30, 0.0  ;;  %v6158_v56 = vsel %vm2023_vm7, %v6118_v14, %v2057_v38  ;;  %v3007_v11 = vsub.f32 0.0, %v6073_v47 }
 0x202   :  { %v1270_v54 = vmul.f32 %v1236_v3, %v6022_v40  ;;  %v1575_v23 = vadd.f32 1.0, %v1541_v26  ;;  %v6115_v40 = vpop.f32.mrf.mxu3  ;;  %v6125_v6 = vsel %vm2024_vm12, %v6092_v30, %v2058_v0  ;;  %v2210_v33 = vadd.f32 %v6099_v24, %v2209_v1 }
 0x203   :  { %v6127_v63 = vpop.eup %4003  ;;  %v2126_v37 = vmul.f32 0.3275911, %v6125_v6  ;;  %v2125_v43 = vmul.f32 0.3275911, %v6158_v56  ;;  %v6168_v3 = vmul.f32 0.5, %v6076_v49 }
 0x204   :  { %v1440_v59 = vmul.f32 %v4002_v15, %v1270_v54  ;;  %v1609_v60 = vmul.f32 %v1575_v23, %v249_v34  ;;  %v2192_v62 = vmul.f32 %v6127_v63, %v6079_v27  ;;  %v2202_v34 = vand.u32 2147483648, %v6079_v27 }
 0x205   :  { %v6139_v10 = vadd.f32 1.0, %v2126_v37  ;;  %v6152_v17 = vpop.f32.mrf.mxu0  ;;  %v6177_v15 = vadd.f32 1.0, %v2125_v43  ;;  %v1705_v23 = vadd.f32 %v6081_v13, %v6017_v46  ;;  %vm2197_vm8 = vweird.f32 %v6127_v63 }
 0x206   :  { %v1474_v25 = vsub.f32 1.0, %v1440_v59  ;;  %1745 = vmatmul.f32.gmra.mxu2 %v1609_v60  ;;  %1881 = vmatmul.f32.gmra.mxu0 %v1609_v60  ;;  %v6147_v61 = vpop.f32.mrf.mxu2  ;;  %v2193_v21 = vsub.f32 1.0, %v2192_v62  ;;  %v2200_v0 = vand.u32 2147483647, %v6079_v27  ;;  %v6191_v60 = vmul.f32 0.70710677, %v6171_v20  ;;  %vm2198_vm3 = vmor %vm2196_vm6, %vm2197_vm8 }
 0x207   :  { %4005 = vrcp.f32 %v6139_v10  ;;  %v6173_v26 = vpop.f32.mrf.mxu1  ;;  %v1844_v13 = vadd.f32 %v6095_v22, %v5948_v41  ;;  %v2247_v50 = vand.u32 2147483648, %v6139_v10  ;;  %v3363_v22 = vld [vmem:[%s8005_s5 + $0x80] sm:$0xff]  ;;  %v2203_v27 = vor.u32 1.1754944e-38, %v2202_v34 }
 0x208   :  { %v1508_v53 = vsub.f32 0.0, %v1474_v25  ;;  %4007 = vpow2.f32 %v3077_v31  ;;  %v2245_v51 = vand.u32 2147483647, %v6139_v10  ;;  %3466 = vmatpush.msrb.mxu3 %v3363_v22  ;;  %vm2201_vm2 = vcmp.eq.f32.partialorder %v2200_v0, 8.507059e+37 }
 0x209   :  { %4009 = vrcp.f32 %v6177_v15  ;;  %v1912_v1 = vadd.f32 %v6097_v57, %v1844_v13  ;;  %vm2241_vm11 = vweird.f32 %v6139_v10  ;;  %v1708_v34 = vadd.f32 %v6113_v29, %v6017_v46 }
 0x20a   :  { %v1542_v45 = vsel %vm318_vm5, %v1474_v25, %v1508_v53  ;;  %v6150_v42 = vpop.f32.mrf.mxu3  ;;  %vm2211_vm5 = vweird.f32 %v6049_v7  ;;  %v2194_v7 = vmul.f32 %v6127_v63, %v2193_v21  ;;  %vm2246_vm10 = vcmp.eq.f32.partialorder %v2245_v51, 8.507059e+37 }
 0x20b   :  { %v1576_v2 = vadd.f32 1.0, %v1542_v45  ;;  %vm2213_vm15 = vmor %vm2211_vm5, %vm2212_vm14  ;;  %v3010_v13 = vsub.f32 0.0, %v6125_v6  ;;  %v1847_v51 = vadd.f32 %v6120_v19, %v5948_v41  ;;  %vm2026_vm5 = vcmp.ge.f32.partialorder %v6191_v60, 0.0 }
 0x20c   :  { %v2214_v54 = vsel %vm2213_vm15, %v6099_v24, %v2210_v33  ;;  %v3041_v24 = vmul.f32 %v3007_v11, %v6073_v47  ;;  %v2195_v37 = vadd.f32 %v6127_v63, %v2194_v7  ;;  %v3347_v47 = vld [vmem:[%s8005_s5] sm:$0xff]  ;;  %vm2226_vm15 = vweird.f32 %v6177_v15 }
 0x20d   :  { %v1610_v58 = vmul.f32 %v1576_v2, %v250_v48  ;;  %v4006_v28 = vpop.eup %4005  ;;  %v6182_v49 = vsel %vm2216_vm0, %v2218_v12, %v2214_v54  ;;  %v6198_v52 = vpop.f32.mrf.mxu0  ;;  %v6214_v2 = vadd.f32 %v6083_v55, %v1705_v23  ;;  %3398 = vmatpush.msrb.mxu2 %v3347_v47  ;;  %v6227_v55 = vmul.f32 0.5, %v6044_v39 }
 0x20e   :  { %v2237_v44 = vmul.f32 %v4006_v28, %v6139_v10  ;;  %v2702_v59 = vmul.f32 1.0614054, %v6182_v49  ;;  %v6195_v36 = vpop.f32.mrf.mxu2  ;;  %v6202_v45 = vpop.eup %4007  ;;  %vm2242_vm13 = vweird.f32 %v4006_v28  ;;  %v2248_v12 = vor.u32 1.1754944e-38, %v2247_v50 }
 0x20f   :  { %1813 = vmatmul.f32.gmra.mxu3 %v1610_v58  ;;  %1949 = vmatmul.f32.gmra.mxu1 %v1610_v58  ;;  %v2199_v58 = vsel %vm2198_vm3, %v6127_v63, %v2195_v37  ;;  %v6224_v9 = vpop.eup %4009  ;;  %vm2243_vm1 = vmor %vm2241_vm11, %vm2242_vm13  ;;  %v3075_v63 = vmul.f32 1.442695, %v3041_v24  ;;  %v6231_v33 = vpop.f32.mrf.mxu1  ;;  %v6236_v10 = vmul.f32 0.70710677, %v6214_v2  ;;  %v6241_v54 = vmul.f32 0.70710677, %v1912_v1 }
 0x210   :  { %v2238_v25 = vsub.f32 1.0, %v2237_v44  ;;  %v2736_v53 = vadd.f32 -1.4531521, %v2702_v59  ;;  %v6221_v16 = vsel %vm2201_vm2, %v2203_v27, %v2199_v58  ;;  %v2222_v43 = vmul.f32 %v6224_v9, %v6177_v15 }
 0x211   :  { %v2701_v5 = vmul.f32 1.0614054, %v6221_v16  ;;  %v6249_v59 = vmul.f32 0.5, %v6171_v20  ;;  %4011 = vpow2.f32 %v3075_v63  ;;  %v2059_v50 = vsub.f32 0.0, %v6236_v10 }
 0x212   :  { %v2239_v48 = vmul.f32 %v4006_v28, %v2238_v25  ;;  %v6216_v62 = vpop.f32.mrf.mxu3  ;;  %v2770_v38 = vmul.f32 %v2736_v53, %v6182_v49  ;;  %v2223_v44 = vsub.f32 1.0, %v2222_v43  ;;  %v2060_v25 = vsub.f32 0.0, %v6191_v60 }
 0x213   :  { %v2735_v11 = vadd.f32 -1.4531521, %v2701_v5  ;;  %v6256_v47 = vmul.f32 0.5, %v1912_v1  ;;  %v3044_v5 = vmul.f32 %v3010_v13, %v6125_v6  ;;  %vm2227_vm14 = vweird.f32 %v6224_v9 }
 0x214   :  { %v2240_v31 = vadd.f32 %v4006_v28, %v2239_v48  ;;  %v2804_v21 = vadd.f32 1.4214138, %v2770_v38  ;;  %v2224_v29 = vmul.f32 %v6224_v9, %v2223_v44  ;;  %v6261_v48 = vadd.f32 %v6115_v40, %v1708_v34  ;;  %vm6289_vm0 = vmor %vm2226_vm15, %vm2227_vm14 }
 0x215   :  { %v2769_v24 = vmul.f32 %v2735_v11, %v6221_v16  ;;  %v1855_v53 = vpop.f32.mrf.mxu0  ;;  %v2232_v43 = vand.u32 2147483648, %v6177_v15  ;;  %v1915_v11 = vadd.f32 %v6129_v35, %v1847_v51  ;;  %v6296_v35 = vsel %vm2026_vm5, %v6191_v60, %v2060_v25 }
 0x216   :  { %v2244_v57 = vsel %vm2243_vm1, %v4006_v28, %v2240_v31  ;;  %v2838_v39 = vmul.f32 %v2804_v21, %v6182_v49  ;;  %v6245_v23 = vpop.f32.mrf.mxu2  ;;  %v1856_v31 = vadd.f32 %v1855_v53, %v5948_v41  ;;  %v2225_v63 = vadd.f32 %v6224_v9, %v2224_v29 }
 0x217   :  { %v6239_v7 = vsel %vm2246_vm10, %v2248_v12, %v2244_v57  ;;  %v2803_v20 = vadd.f32 1.4214138, %v2769_v24  ;;  %v6276_v57 = vmul.f32 0.5, %v6107_v32  ;;  %v1923_v34 = vpop.f32.mrf.mxu1  ;;  %v3081_v53 = vmul.f32 1.442695, %v3044_v5 }
 0x218   :  { %v2704_v28 = vmul.f32 1.0614054, %v6239_v7  ;;  %v2872_v0 = vadd.f32 -0.28449672, %v2838_v39  ;;  %v4012_v39 = vpop.eup %4011  ;;  %v6283_v44 = vadd.f32 %v1923_v34, %v1856_v31  ;;  %v1850_v29 = vadd.f32 %v6152_v17, %v5948_v41 }
 0x219   :  { %v2837_v1 = vmul.f32 %v2803_v20, %v6221_v16  ;;  %v2233_v20 = vor.u32 1.1754944e-38, %v2232_v43  ;;  %v6308_v51 = vmul.f32 0.5, %v1915_v11  ;;  %v1714_v17 = vadd.f32 %v6195_v36, %v6017_v46 }
 0x21a   :  { %v2738_v37 = vadd.f32 -1.4531521, %v2704_v28  ;;  %v2906_v22 = vmul.f32 %v2872_v0, %v6182_v49  ;;  %v6266_v58 = vpop.f32.mrf.mxu3  ;;  %v2230_v28 = vand.u32 2147483647, %v6177_v15  ;;  %v6299_v15 = vmul.f32 0.70710677, %v6261_v48 }
 0x21b   :  { %v2871_v19 = vadd.f32 -0.28449672, %v2837_v1  ;;  %v6312_v31 = vmul.f32 0.70710677, %v6283_v44  ;;  %v1853_v43 = vadd.f32 %v6198_v52, %v5948_v41  ;;  %4013 = vpow2.f32 %v3081_v53 }
 0x21c   :  { %v2772_v38 = vmul.f32 %v2738_v37, %v6239_v7  ;;  %v2940_v21 = vadd.f32 0.2548296, %v2906_v22  ;;  %v1711_v37 = vadd.f32 %v6147_v61, %v6017_v46  ;;  %vm2231_vm8 = vcmp.eq.f32.partialorder %v2230_v28, 8.507059e+37 }
 0x21d   :  { %v2905_v32 = vmul.f32 %v2871_v19, %v6221_v16  ;;  %8116 = vst [vmem:[#allocation2_spill] sm:$0xff] %v6312_v31  ;;  %v1858_v1 = vpop.f32.mrf.mxu0  ;;  %v6317_v61 = vmul.f32 0.70710677, %v1915_v11  ;;  %v1918_v19 = vadd.f32 %v6173_v26, %v1850_v29  ;;  %v6340_v26 = vadd.f32 %v6216_v62, %v1714_v17 }
 0x21e   :  { %v2806_v12 = vadd.f32 1.4214138, %v2772_v38  ;;  %v2974_v40 = vmul.f32 %v2940_v21, %v6182_v49  ;;  %v1719_v0 = vpop.f32.mrf.mxu2  ;;  %v2128_v38 = vmul.f32 0.3275911, %v6296_v35  ;;  %v1859_v36 = vadd.f32 %v1858_v1, %v5948_v41 }
 0x21f   :  { %v2939_v25 = vadd.f32 0.2548296, %v2905_v32  ;;  %vm2036_vm6 = vcmp.ge.f32.partialorder %v6312_v31, 0.0  ;;  %v6346_v24 = vmul.f32 0.70710677, %v1918_v19  ;;  %v6370_v17 = vmul.f32 0.5, %v1918_v19 }
 0x220   :  { %v2840_v6 = vmul.f32 %v2806_v12, %v6239_v7  ;;  %v3144_v49 = vmul.f32 %v6202_v45, %v2974_v40  ;;  %v2229_v45 = vsel %vm6289_vm0, %v6224_v9, %v2225_v63  ;;  %v1720_v9 = vadd.f32 %v1719_v0, %v6017_v46 }
 0x221   :  { %v6315_v5 = vsel %vm2231_vm8, %v2233_v20, %v2229_v45  ;;  %v2973_v12 = vmul.f32 %v2939_v25, %v6221_v16  ;;  %v6324_v40 = vadd.f32 %v6150_v42, %v1711_v37  ;;  %v6334_v28 = vadd.f32 1.0, %v2128_v38  ;;  %v1926_v37 = vpop.f32.mrf.mxu1 }
 0x222   :  { %v2874_v13 = vadd.f32 -0.28449672, %v2840_v6  ;;  %v3178_v22 = vsub.f32 1.0, %v3144_v49  ;;  %v1787_v34 = vpop.f32.mrf.mxu3  ;;  %v3009_v6 = vsub.f32 0.0, %v6158_v56  ;;  %v2703_v16 = vmul.f32 1.0614054, %v6315_v5 }
 0x223   :  { %v2070_v42 = vsub.f32 0.0, %v6312_v31  ;;  %v6337_v0 = vadd.f32 %v1787_v34, %v1720_v9  ;;  %v3143_v52 = vmul.f32 %v4012_v39, %v2973_v12  ;;  %v6344_v32 = vmul.f32 0.70710677, %v6324_v40  ;;  %v4014_v9 = vpop.eup %4013 }
 0x224   :  { %v3212_v21 = vsub.f32 0.0, %v3178_v22  ;;  %v2908_v63 = vmul.f32 %v2874_v13, %v6239_v7  ;;  %v1921_v13 = vadd.f32 %v6231_v33, %v1853_v43  ;;  %v2737_v53 = vadd.f32 -1.4531521, %v2703_v16 }
 0x225   :  { %v3043_v62 = vmul.f32 %v3009_v6, %v6158_v56  ;;  %4015 = vrcp.f32 %v6334_v28  ;;  %v6357_v39 = vsel %vm2036_vm6, %v6312_v31, %v2070_v42  ;;  %v6360_v20 = vmul.f32 0.70710677, %v6337_v0 }
 0x226   :  { %v3246_v11 = vsel %vm2022_vm9, %v3178_v22, %v3212_v21  ;;  %v2942_v18 = vadd.f32 0.2548296, %v2908_v63  ;;  %v1722_v29 = vpop.f32.mrf.mxu2  ;;  %v6350_v22 = vadd.f32 %v1926_v37, %v1859_v36  ;;  %v3177_v33 = vsub.f32 1.0, %v3143_v52 }
 0x227   :  { %v3280_v49 = vadd.f32 1.0, %v3246_v11  ;;  %8117 = vst [vmem:[#allocation3_spill] sm:$0xff] %v6360_v20  ;;  %v6366_v56 = vmul.f32 0.70710677, %v6340_v26  ;;  %v1723_v21 = vadd.f32 %v1722_v29, %v6017_v46  ;;  %v6372_v12 = vmul.f32 0.70710677, %v1921_v13 }
 0x228   :  { %v1717_v63 = vadd.f32 %v6245_v23, %v6017_v46  ;;  %v2138_v43 = vmul.f32 0.3275911, %v6357_v39  ;;  %v6379_v34 = vmul.f32 0.70710677, %v6350_v22  ;;  %v2771_v6 = vmul.f32 %v2737_v53, %v6315_v5 }
 0x229   :  { %v3314_v45 = vmul.f32 %v3280_v49, %v6161_v8  ;;  %v2976_v8 = vmul.f32 %v2942_v18, %v6239_v7  ;;  %v2069_v11 = vsub.f32 0.0, %v6360_v20  ;;  %v3211_v36 = vsub.f32 0.0, %v3177_v33 }
 0x22a   :  { %8118 = vst [vmem:[#allocation4_spill] sm:$0xff] %v6379_v34  ;;  %v1790_v19 = vpop.f32.mrf.mxu3  ;;  %v3079_v42 = vmul.f32 1.442695, %v3043_v62  ;;  %v6386_v23 = vmul.f32 0.5, %v1921_v13  ;;  %vm2035_vm9 = vcmp.ge.f32.partialorder %v6360_v20, 0.0  ;;  %v6393_v29 = vadd.f32 %v6266_v58, %v1717_v63 }
 0x22b   :  { %3467 = vmatmul.f32.vlgmr.msrb.gmra.mxu3 %v3314_v45  ;;  %v3146_v16 = vmul.f32 %v4014_v9, %v2976_v8  ;;  %v6383_v49 = vpop.eup %4015  ;;  %v6389_v18 = vadd.f32 %v1790_v19, %v1723_v21  ;;  %v1861_v45 = vpop.f32.mrf.mxu0  ;;  %v3245_v53 = vsel %vm2021_vm4, %v3177_v33, %v3211_v36  ;;  %v6397_v8 = vadd.f32 1.0, %v2138_v43 }
 0x22c   :  { %v2072_v9 = vsub.f32 0.0, %v6379_v34  ;;  %v3279_v13 = vadd.f32 1.0, %v3245_v53  ;;  %v2805_v52 = vadd.f32 1.4214138, %v2771_v6  ;;  %v6403_v21 = vsel %vm2035_vm9, %v6360_v20, %v2069_v11 }
 0x22d   :  { %v3180_v62 = vsub.f32 1.0, %v3146_v16  ;;  %vm2038_vm3 = vcmp.ge.f32.partialorder %v6379_v34, 0.0  ;;  %v1862_v58 = vadd.f32 %v1861_v45, %v5948_v41  ;;  %v6409_v33 = vmul.f32 0.70710677, %v6389_v18  ;;  %v1929_v45 = vpop.f32.mrf.mxu1 }
 0x22e   :  { %v3313_v4 = vmul.f32 %v3279_v13, %v6227_v55  ;;  %v2839_v63 = vmul.f32 %v2805_v52, %v6315_v5  ;;  %v2267_v43 = vmul.f32 %v6383_v49, %v6334_v28  ;;  %v6415_v6 = vmul.f32 0.70710677, %v6393_v29 }
 0x22f   :  { %v3214_v19 = vsub.f32 0.0, %v3180_v62  ;;  %8119 = vst [vmem:[#allocation5_spill] sm:$0xff] %v6409_v33  ;;  %v3022_v11 = vsub.f32 0.0, %v6357_v39  ;;  %4017 = vpow2.f32 %v3079_v42  ;;  %v2106_v55 = vsel %vm2038_vm3, %v6379_v34, %v2072_v9 }
 0x230   :  { %3399 = vmatmul.f32.vlgmr.msrb.gmra.mxu2 %v3313_v4  ;;  %vm2271_vm4 = vweird.f32 %v6334_v28  ;;  %v3012_v52 = vsub.f32 0.0, %v6296_v35  ;;  %v6426_v53 = vmul.f32 0.5, %v6283_v44  ;;  %v2137_v13 = vmul.f32 0.3275911, %v6403_v21 }
 0x231   :  { %v3248_v36 = vsel %vm2024_vm12, %v3180_v62, %v3214_v19  ;;  %v6429_v37 = vadd.f32 %v1929_v45, %v1862_v58  ;;  %v2873_v30 = vadd.f32 -0.28449672, %v2839_v63  ;;  %4019 = vrcp.f32 %v6397_v8 }
 0x232   :  { %v3282_v16 = vadd.f32 1.0, %v3248_v36  ;;  %8120 = vst [vmem:[#allocation6_spill] sm:$0xff] %v6426_v53  ;;  %v2071_v62 = vsub.f32 0.0, %v6409_v33  ;;  %v2268_v9 = vsub.f32 1.0, %v2267_v43  ;;  %v3056_v4 = vmul.f32 %v3022_v11, %v6357_v39 }
 0x233   :  { %v2140_v36 = vmul.f32 0.3275911, %v2106_v55  ;;  %vm2037_vm12 = vcmp.ge.f32.partialorder %v6409_v33, 0.0  ;;  %v6438_v44 = vmul.f32 0.5, %v6337_v0  ;;  %v2907_v58 = vmul.f32 %v2873_v30, %v6315_v5 }
 0x234   :  { %v3316_v42 = vmul.f32 %v3282_v16, %v6168_v3  ;;  %v2269_v63 = vmul.f32 %v6383_v49, %v2268_v9  ;;  %v2275_v3 = vand.u32 2147483647, %v6334_v28  ;;  %v6443_v45 = vadd.f32 1.0, %v2137_v13 }
 0x235   :  { %8121 = vst [vmem:[#allocation7_spill] sm:$0xff] %v6438_v44  ;;  %v4018_v16 = vpop.eup %4017  ;;  %v6446_v43 = vmul.f32 0.5, %v6350_v22  ;;  %v6449_v39 = vmul.f32 0.70710677, %v6429_v37  ;;  %vm2272_vm13 = vweird.f32 %v6383_v49  ;;  %v6455_v0 = vsel %vm2037_vm12, %v6409_v33, %v2071_v62 }
 0x236   :  { %3470 = vmatmul.f32.gmra.mxu3 %v3316_v42  ;;  %v2941_v11 = vadd.f32 0.2548296, %v2907_v58  ;;  %v2270_v30 = vadd.f32 %v6383_v49, %v2269_v63  ;;  %v2277_v42 = vand.u32 2147483648, %v6334_v28  ;;  %v2427_v13 = vand.u32 2147483648, %v6397_v8  ;;  %vm2273_vm2 = vmor %vm2271_vm4, %vm2272_vm13 }
 0x237   :  { %8122 = vst [vmem:[#allocation8_spill] sm:$0xff] %v6446_v43  ;;  %v3105_v9 = vmul.f32 1.442695, %v3056_v4  ;;  %v3021_v22 = vsub.f32 0.0, %v6403_v21  ;;  %v6461_v19 = vadd.f32 1.0, %v2140_v36  ;;  %v6465_v7 = vpop.eup %4019  ;;  %v3024_v1 = vsub.f32 0.0, %v2106_v55  ;;  %v1725_v36 = vpop.f32.mrf.mxu2 }
 0x238   :  { %8123 = vst [vmem:[#allocation9_spill] sm:$0xff] %v6449_v39  ;;  %v2975_v62 = vmul.f32 %v2941_v11, %v6315_v5  ;;  %v2274_v58 = vsel %vm2273_vm2, %v6383_v49, %v2270_v30  ;;  %v2278_v63 = vor.u32 1.1754944e-38, %v2277_v42  ;;  %4021 = vrcp.f32 %v6443_v45  ;;  %v1864_v43 = vpop.f32.mrf.mxu0 }
 0x239   :  { %v2139_v38 = vmul.f32 0.3275911, %v6455_v0  ;;  %v2074_v4 = vsub.f32 0.0, %v6449_v39  ;;  %vm2276_vm11 = vcmp.eq.f32.partialorder %v2275_v3, 8.507059e+37  ;;  %vm2040_vm1 = vcmp.ge.f32.partialorder %v6449_v39, 0.0 }
 0x23a   :  { %v3145_v28 = vmul.f32 %v4018_v16, %v2975_v62  ;;  %v6473_v25 = vsel %vm2276_vm11, %v2278_v63, %v2274_v58  ;;  %vm2025_vm10 = vcmp.ge.f32.partialorder %v6236_v10, 0.0  ;;  %v2417_v5 = vmul.f32 %v6465_v7, %v6397_v8 }
 0x23b   :  { %v3055_v49 = vmul.f32 %v3021_v22, %v6403_v21  ;;  %4023 = vrcp.f32 %v6461_v19  ;;  %v2706_v11 = vmul.f32 1.0614054, %v6473_v25  ;;  %v6481_v30 = vor.u32 1.1754944e-38, %v2427_v13 }
 0x23c   :  { %4025 = vpow2.f32 %v3105_v9  ;;  %v3179_v3 = vsub.f32 1.0, %v3145_v28  ;;  %v1726_v42 = vadd.f32 %v1725_v36, %v6017_v46  ;;  %v3058_v16 = vmul.f32 %v3024_v1, %v2106_v55 }
 0x23d   :  { %v2108_v62 = vsel %vm2040_vm1, %v6449_v39, %v2074_v4  ;;  %v2740_v58 = vadd.f32 -1.4531521, %v2706_v11  ;;  %v6492_v21 = vsel %vm2025_vm10, %v6236_v10, %v2059_v50  ;;  %v6494_v22 = vadd.f32 1.0, %v2139_v38  ;;  %v1793_v11 = vpop.f32.mrf.mxu3 }
 0x23e   :  { %v3213_v13 = vsub.f32 0.0, %v3179_v3  ;;  %v3046_v9 = vmul.f32 %v3012_v52, %v6296_v35  ;;  %v2127_v63 = vmul.f32 0.3275911, %v6492_v21  ;;  %v6498_v1 = vpop.eup %4021  ;;  %v2418_v55 = vsub.f32 1.0, %v2417_v5 }
 0x23f   :  { %8124 = vst [vmem:[#allocation10_spill] sm:$0xff] %v6494_v22  ;;  %v3103_v36 = vmul.f32 1.442695, %v3055_v49  ;;  %v2774_v28 = vmul.f32 %v2740_v58, %v6473_v25  ;;  %v2457_v27 = vand.u32 2147483648, %v6461_v19  ;;  %v2142_v50 = vmul.f32 0.3275911, %v2108_v62 }
 0x240   :  { %v3247_v38 = vsel %vm2023_vm7, %v3179_v3, %v3213_v13  ;;  %v6505_v39 = vadd.f32 %v1793_v11, %v1726_v42  ;;  %v3023_v52 = vsub.f32 0.0, %v6455_v0  ;;  %vm2028_vm14 = vcmp.ge.f32.partialorder %v6241_v54, 0.0 }
 0x241   :  { %v6507_v35 = vpop.eup %4023  ;;  %v3281_v33 = vadd.f32 1.0, %v3247_v38  ;;  %v2808_v5 = vadd.f32 1.4214138, %v2774_v28  ;;  %4027 = vrcp.f32 %v6494_v22  ;;  %v3026_v58 = vsub.f32 0.0, %v2108_v62 }
 0x242   :  { %v6511_v49 = vpop.eup %4025  ;;  %v3085_v4 = vmul.f32 1.442695, %v3046_v9  ;;  %v6514_v34 = vadd.f32 1.0, %v2127_v63  ;;  %v2402_v14 = vmul.f32 %v6498_v1, %v6443_v45  ;;  %4029 = vpow2.f32 %v3103_v36 }
 0x243   :  { %8125 = vst [vmem:[#allocation11_spill] sm:$0xff] %v6511_v49  ;;  %v3315_v3 = vmul.f32 %v3281_v33, %v6276_v57  ;;  %v2842_v42 = vmul.f32 %v2808_v5, %v6473_v25  ;;  %v2447_v13 = vmul.f32 %v6507_v35, %v6461_v19  ;;  %v6522_v28 = vadd.f32 1.0, %v2142_v50 }
 0x244   :  { %v6525_v11 = vmul.f32 0.70710677, %v6505_v39  ;;  %v8128_v9 = vsub.f32 0.0, %v6241_v54  ;;  %v3057_v36 = vmul.f32 %v3023_v52, %v6455_v0  ;;  %v1865_v33 = vadd.f32 %v1864_v43, %v5948_v41 }
 0x245   :  { %8126 = vst [vmem:[#allocation12_spill] sm:$0xff] %v6522_v28  ;;  %3402 = vmatmul.f32.gmra.mxu2 %v3315_v3  ;;  %v2876_v57 = vadd.f32 -0.28449672, %v2842_v42  ;;  %4031 = vrcp.f32 %v6514_v34  ;;  %v6538_v50 = vmul.f32 %v6465_v7, %v2418_v55  ;;  %v3109_v38 = vmul.f32 1.442695, %v3058_v16  ;;  %v1932_v16 = vpop.f32.mrf.mxu1 }
 0x246   :  { %8127 = vst [vmem:[#allocation13_spill] sm:$0xff] %v6525_v11  ;;  %v6532_v63 = vsel %vm2028_vm14, %v6241_v54, %v8128_v9  ;;  %v3060_v5 = vmul.f32 %v3026_v58, %v2108_v62  ;;  %4033 = vpow2.f32 %v3085_v4  ;;  %v2403_v44 = vsub.f32 1.0, %v2402_v14 }
 0x247   :  { %v6540_v20 = vor.u32 1.1754944e-38, %v2457_v27  ;;  %v2910_v9 = vmul.f32 %v2876_v57, %v6473_v25  ;;  %v2130_v53 = vmul.f32 0.3275911, %v6532_v63  ;;  %v6544_v0 = vpop.eup %4027  ;;  %v2448_v52 = vsub.f32 1.0, %v2447_v13 }
 0x248   :  { %v6547_v43 = vmul.f32 0.5, %v6389_v18  ;;  %4035 = vrcp.f32 %v6522_v28  ;;  %v2073_v55 = vsub.f32 0.0, %v6525_v11  ;;  %v6551_v62 = vpop.eup %4029  ;;  %v3107_v4 = vmul.f32 1.442695, %v3057_v36 }
 0x249   :  { %8129 = vst [vmem:[#allocation14_spill] sm:$0xff] %v6540_v20  ;;  %v2944_v27 = vadd.f32 0.2548296, %v2910_v9  ;;  %vm8021_vm7 = vcmp.ge.f32.partialorder %v6525_v11, 0.0  ;;  %v6554_v58 = vadd.f32 %v1932_v16, %v1865_v33  ;;  %4037 = vpow2.f32 %v3109_v38 }
 0x24a   :  { %8130 = vst [vmem:[#allocation15_spill] sm:$0xff] %v6547_v43  ;;  %v2487_v14 = vand.u32 2147483648, %v6522_v28  ;;  %v3113_v3 = vmul.f32 1.442695, %v3060_v5  ;;  %v6557_v42 = vadd.f32 1.0, %v2130_v53  ;;  %v6560_v13 = vmul.f32 %v6498_v1, %v2403_v44 }
 0x24b   :  { %8131 = vst [vmem:[#allocation16_spill] sm:$0xff] %v6551_v62  ;;  %v4032_v18 = vpop.eup %4031  ;;  %v6564_v57 = vmul.f32 %v6544_v0, %v6494_v22  ;;  %v6567_v36 = vmul.f32 0.5, %v6429_v37  ;;  %v2978_v33 = vmul.f32 %v2944_v27, %v6473_v25  ;;  %v6571_v38 = vmul.f32 %v6507_v35, %v2448_v52 }
 0x24c   :  { %v4034_v9 = vpop.eup %4033  ;;  %v2107_v53 = vsel %vm8021_vm7, %v6525_v11, %v2073_v55  ;;  %v2252_v44 = vmul.f32 %v4032_v18, %v6514_v34  ;;  %4039 = vrcp.f32 %v6557_v42  ;;  %v6580_v37 = vmul.f32 0.70710677, %v6554_v58 }
 0x24d   :  { %8132 = vst [vmem:[#allocation17_spill] sm:$0xff] %v6567_v36  ;;  %4041 = vpow2.f32 %v3107_v4  ;;  %v3148_v16 = vmul.f32 %v4034_v9, %v2978_v33  ;;  %v6584_v27 = vor.u32 1.1754944e-38, %v2487_v14  ;;  %v6587_v52 = vmul.f32 0.5, %v6214_v2 }
 0x24e   :  { %8133 = vst [vmem:[#allocation18_spill] sm:$0xff] %v6571_v38  ;;  %v6582_v25 = vpop.eup %4035  ;;  %4043 = vpow2.f32 %v3113_v3  ;;  %v2253_v55 = vsub.f32 1.0, %v2252_v44  ;;  %v2141_v43 = vmul.f32 0.3275911, %v2107_v53  ;;  %v2262_v5 = vand.u32 2147483648, %v6514_v34  ;;  %v1728_v38 = vpop.f32.mrf.mxu2 }
 0x24f   :  { %8134 = vst [vmem:[#allocation19_spill] sm:$0xff] %v6580_v37  ;;  %v3182_v36 = vsub.f32 1.0, %v3148_v16  ;;  %v6591_v4 = vpop.eup %4037  ;;  %vm2257_vm15 = vweird.f32 %v4032_v18  ;;  %v2260_v9 = vand.u32 2147483647, %v6514_v34  ;;  %v3011_v14 = vsub.f32 0.0, %v6492_v21 }
 0x250   :  { %8135 = vst [vmem:[#allocation20_spill] sm:$0xff] %v6582_v25  ;;  %v2254_v33 = vmul.f32 %v4032_v18, %v2253_v55  ;;  %v6597_v3 = vmul.f32 %v6582_v25, %v6522_v28  ;;  %v3025_v44 = vsub.f32 0.0, %v2107_v53  ;;  %v2076_v11 = vsub.f32 0.0, %v6580_v37 }
 0x251   :  { %8136 = vst [vmem:[#allocation21_spill] sm:$0xff] %v6584_v27  ;;  %v3216_v2 = vsub.f32 0.0, %v3182_v36  ;;  %vm8020_vm0 = vcmp.ge.f32.partialorder %v6580_v37, 0.0  ;;  %vm2256_vm8 = vweird.f32 %v6514_v34  ;;  %vm2027_vm4 = vcmp.ge.f32.partialorder %v6299_v15, 0.0 }
 0x252   :  { %8137 = vst [vmem:[#allocation22_spill] sm:$0xff] %v6591_v4  ;;  %v4040_v16 = vpop.eup %4039  ;;  %v2255_v27 = vadd.f32 %v4032_v18, %v2254_v33  ;;  %v6607_v62 = vadd.f32 1.0, %v2141_v43  ;;  %vm2258_vm13 = vmor %vm2256_vm8, %vm2257_vm15  ;;  %v2263_v28 = vor.u32 1.1754944e-38, %v2262_v5  ;;  %vm2261_vm2 = vcmp.eq.f32.partialorder %v2260_v9, 8.507059e+37 }
 0x253   :  { %v6603_v55 = vpop.eup %4041  ;;  %v3250_v4 = vsel %vm2026_vm5, %v3182_v36, %v3216_v2  ;;  %v2297_v31 = vmul.f32 %v4040_v16, %v6557_v42  ;;  %vm2030_vm11 = vcmp.ge.f32.partialorder %v6317_v61, 0.0  ;;  %v2110_v34 = vsel %vm8020_vm0, %v6580_v37, %v2076_v11 }
 0x254   :  { %8138 = vst [vmem:[#allocation23_spill] sm:$0xff] %v6603_v55  ;;  %v6611_v22 = vpop.eup %4043  ;;  %v3284_v49 = vadd.f32 1.0, %v3250_v4  ;;  %v2259_v33 = vsel %vm2258_vm13, %v4032_v18, %v2255_v27  ;;  %v8141_v36 = vsub.f32 0.0, %v6299_v15  ;;  %v2307_v27 = vand.u32 2147483648, %v6557_v42 }
 0x255   :  { %8139 = vst [vmem:[#allocation24_spill] sm:$0xff] %v6607_v62  ;;  %v6617_v60 = vsel %vm2261_vm2, %v2263_v28, %v2259_v33  ;;  %v2298_v43 = vsub.f32 1.0, %v2297_v31  ;;  %vm2302_vm5 = vweird.f32 %v4040_v16  ;;  %v2305_v28 = vand.u32 2147483647, %v6557_v42 }
 0x256   :  { %8140 = vst [vmem:[#allocation25_spill] sm:$0xff] %v6611_v22  ;;  %v6624_v5 = vsel %vm2027_vm4, %v6299_v15, %v8141_v36  ;;  %v3318_v4 = vmul.f32 %v3284_v49, %v6249_v59  ;;  %v2705_v18 = vmul.f32 1.0614054, %v6617_v60  ;;  %v8142_v31 = vsub.f32 0.0, %v6317_v61 }
 0x257   :  { %v2129_v9 = vmul.f32 0.3275911, %v6624_v5  ;;  %v2299_v2 = vmul.f32 %v4040_v16, %v2298_v43  ;;  %v2478_v33 = vsub.f32 1.0, %v6597_v3  ;;  %v3045_v49 = vmul.f32 %v3011_v14, %v6492_v21 }
 0x258   :  { %v6636_v11 = vsel %vm2030_vm11, %v6317_v61, %v8142_v31  ;;  %3473 = vmatmul.f32.gmra.mxu3 %v3318_v4  ;;  %v2739_v59 = vadd.f32 -1.4531521, %v2705_v18  ;;  %v3059_v37 = vmul.f32 %v3025_v44, %v2107_v53  ;;  %v3028_v43 = vsub.f32 0.0, %v2110_v34  ;;  %v1867_v53 = vpop.f32.mrf.mxu0 }
 0x259   :  { %v6640_v36 = vadd.f32 1.0, %v2129_v9  ;;  %v2300_v22 = vadd.f32 %v4040_v16, %v2299_v2  ;;  %vm2301_vm15 = vweird.f32 %v6557_v42  ;;  %v2308_v20 = vor.u32 1.1754944e-38, %v2307_v27 }
 0x25a   :  { %v2773_v55 = vmul.f32 %v2739_v59, %v6617_v60  ;;  %vm2303_vm8 = vmor %vm2301_vm15, %vm2302_vm5  ;;  %v2132_v3 = vmul.f32 0.3275911, %v6636_v11  ;;  %vm2306_vm13 = vcmp.eq.f32.partialorder %v2305_v28, 8.507059e+37  ;;  %v1729_v21 = vadd.f32 %v1728_v38, %v6017_v46 }
 0x25b   :  { %4045 = vrcp.f32 %v6640_v36  ;;  %v2304_v4 = vsel %vm2303_vm8, %v4040_v16, %v2300_v22  ;;  %v2144_v14 = vmul.f32 0.3275911, %v2110_v34  ;;  %v3014_v42 = vsub.f32 0.0, %v6532_v63  ;;  %v1796_v16 = vpop.f32.mrf.mxu3 }
 0x25c   :  { %4047 = vrcp.f32 %v6607_v62  ;;  %v2807_v44 = vadd.f32 1.4214138, %v2773_v55  ;;  %v6648_v18 = vsel %vm2306_vm13, %v2308_v20, %v2304_v4  ;;  %v8143_v27 = vsub.f32 1.0, %v6564_v57 }
 0x25d   :  { %v3062_v2 = vmul.f32 %v3028_v43, %v2110_v34  ;;  %v3083_v31 = vmul.f32 1.442695, %v3045_v49  ;;  %v2708_v59 = vmul.f32 1.0614054, %v6648_v18  ;;  %v6658_v22 = vmul.f32 0.5, %v6505_v39 }
 0x25e   :  { %v6654_v9 = vmul.f32 %v6544_v0, %v8143_v27  ;;  %v2841_v38 = vmul.f32 %v2807_v44, %v6617_v60  ;;  %v1868_v20 = vadd.f32 %v1867_v53, %v5948_v41  ;;  %v6662_v55 = vadd.f32 1.0, %v2132_v3 }
 0x25f   :  { %8144 = vst [vmem:[#allocation26_spill] sm:$0xff] %v6658_v22  ;;  %v3111_v28 = vmul.f32 1.442695, %v3059_v37  ;;  %v6665_v57 = vmul.f32 0.5, %v6554_v58  ;;  %v2742_v4 = vadd.f32 -1.4531521, %v2708_v59  ;;  %v6667_v27 = vadd.f32 %v1796_v16, %v1729_v21  ;;  %v1935_v58 = vpop.f32.mrf.mxu1 }
 0x260   :  { %v6670_v49 = vmul.f32 %v6582_v25, %v2478_v33  ;;  %v6672_v39 = vadd.f32 1.0, %v2144_v14  ;;  %v2875_v43 = vadd.f32 -0.28449672, %v2841_v38  ;;  %v3048_v44 = vmul.f32 %v3014_v42, %v6532_v63 }
 0x261   :  { %8145 = vst [vmem:[#allocation27_spill] sm:$0xff] %v6665_v57  ;;  %v4046_v34 = vpop.eup %4045  ;;  %v3117_v3 = vmul.f32 1.442695, %v3062_v2  ;;  %4049 = vpow2.f32 %v3083_v31  ;;  %v2776_v37 = vmul.f32 %v2742_v4, %v6648_v18  ;;  %v6681_v33 = vadd.f32 %v1935_v58, %v1868_v20 }
 0x262   :  { %8146 = vst [vmem:[#allocation28_spill] sm:$0xff] %v6670_v49  ;;  %v6675_v22 = vpop.eup %4047  ;;  %v2282_v53 = vmul.f32 %v4046_v34, %v6640_v36  ;;  %v2909_v59 = vmul.f32 %v2875_v43, %v6617_v60  ;;  %4051 = vrcp.f32 %v6662_v55  ;;  %v6685_v63 = vmul.f32 0.70710677, %v6667_v27 }
 0x263   :  { %8147 = vst [vmem:[#allocation29_spill] sm:$0xff] %v6672_v39  ;;  %4053 = vpow2.f32 %v3111_v28  ;;  %v2810_v14 = vadd.f32 1.4214138, %v2776_v37  ;;  %v2517_v2 = vand.u32 2147483648, %v6672_v39  ;;  %v3089_v38 = vmul.f32 1.442695, %v3048_v44 }
 0x264   :  { %8148 = vst [vmem:[#allocation30_spill] sm:$0xff] %v6675_v22  ;;  %v2283_v42 = vsub.f32 1.0, %v2282_v53  ;;  %4055 = vrcp.f32 %v6672_v39  ;;  %v2943_v31 = vadd.f32 0.2548296, %v2909_v59  ;;  %v6691_v16 = vmul.f32 %v6675_v22, %v6607_v62 }
 0x265   :  { %8149 = vst [vmem:[#allocation31_spill] sm:$0xff] %v6685_v63  ;;  %4057 = vpow2.f32 %v3117_v3  ;;  %v2844_v20 = vmul.f32 %v2810_v14, %v6648_v18  ;;  %v6696_v43 = vmul.f32 0.70710677, %v6681_v33  ;;  %v2290_v37 = vand.u32 2147483647, %v6640_v36 }
 0x266   :  { %v2284_v4 = vmul.f32 %v4046_v34, %v2283_v42  ;;  %v2977_v28 = vmul.f32 %v2943_v31, %v6617_v60  ;;  %v2292_v58 = vand.u32 2147483648, %v6640_v36  ;;  %v2075_v44 = vsub.f32 0.0, %v6685_v63 }
 0x267   :  { %8150 = vst [vmem:[#allocation32_spill] sm:$0xff] %v6696_v43  ;;  %v4050_v53 = vpop.eup %4049  ;;  %v2878_v59 = vadd.f32 -0.28449672, %v2844_v20  ;;  %vm2287_vm2 = vweird.f32 %v4046_v34  ;;  %v6703_v3 = vor.u32 1.1754944e-38, %v2517_v2  ;;  %4059 = vpow2.f32 %v3089_v38 }
 0x268   :  { %v2285_v21 = vadd.f32 %v4046_v34, %v2284_v4  ;;  %v6701_v57 = vpop.eup %4051  ;;  %v3147_v14 = vmul.f32 %v4050_v53, %v2977_v28  ;;  %vm2041_vm5 = vcmp.ge.f32.partialorder %v6685_v63, 0.0  ;;  %vm2286_vm15 = vweird.f32 %v6640_v36 }
 0x269   :  { %8151 = vst [vmem:[#allocation33_spill] sm:$0xff] %v6703_v3  ;;  %v6706_v60 = vpop.eup %4053  ;;  %v2912_v42 = vmul.f32 %v2878_v59, %v6648_v18  ;;  %v3013_v31 = vsub.f32 0.0, %v6624_v5  ;;  %vm2029_vm8 = vcmp.ge.f32.partialorder %v6344_v32, 0.0  ;;  %v2078_v2 = vsub.f32 0.0, %v6696_v43  ;;  %vm2288_vm13 = vmor %vm2286_vm15, %vm2287_vm2 }
 0x26a   :  { %8152 = vst [vmem:[#allocation34_spill] sm:$0xff] %v6706_v60  ;;  %v6712_v20 = vpop.eup %4055  ;;  %v3181_v4 = vsub.f32 1.0, %v3147_v14  ;;  %vm2291_vm0 = vcmp.eq.f32.partialorder %v2290_v37, 8.507059e+37  ;;  %v2293_v38 = vor.u32 1.1754944e-38, %v2292_v58  ;;  %v6720_v59 = vsel %vm2041_vm5, %v6685_v63, %v2075_v44 }
 0x26b   :  { %v6715_v28 = vpop.eup %4057  ;;  %v2946_v53 = vadd.f32 0.2548296, %v2912_v42  ;;  %v2289_v36 = vsel %vm2288_vm13, %v4046_v34, %v2285_v21  ;;  %v2327_v60 = vmul.f32 %v6701_v57, %v6662_v55  ;;  %vm2044_vm7 = vcmp.ge.f32.partialorder %v6696_v43, 0.0 }
 0x26c   :  { %8153 = vst [vmem:[#allocation35_spill] sm:$0xff] %v6715_v28  ;;  %v3215_v14 = vsub.f32 0.0, %v3181_v4  ;;  %v6726_v62 = vsel %vm2291_vm0, %v2293_v38, %v2289_v36  ;;  %v3047_v42 = vmul.f32 %v3013_v31, %v6624_v5  ;;  %v2507_v34 = vmul.f32 %v6712_v20, %v6672_v39  ;;  %v1731_v39 = vpop.f32.mrf.mxu2 }
 0x26d   :  { %v2980_v37 = vmul.f32 %v2946_v53, %v6648_v18  ;;  %v2707_v58 = vmul.f32 1.0614054, %v6726_v62  ;;  %v2328_v28 = vsub.f32 1.0, %v2327_v60  ;;  %v4060_v44 = vpop.eup %4059  ;;  %v2143_v3 = vmul.f32 0.3275911, %v6720_v59 }
 0x26e   :  { %v3249_v21 = vsel %vm2025_vm10, %v3181_v4, %v3215_v14  ;;  %v8154_v63 = vsub.f32 0.0, %v6344_v32  ;;  %v6746_v5 = vsel %vm2044_vm7, %v6696_v43, %v2078_v2  ;;  %v2337_v60 = vand.u32 2147483648, %v6662_v55 }
 0x26f   :  { %v3283_v38 = vadd.f32 1.0, %v3249_v21  ;;  %v3150_v53 = vmul.f32 %v4060_v44, %v2980_v37  ;;  %v2741_v10 = vadd.f32 -1.4531521, %v2707_v58  ;;  %v2329_v31 = vmul.f32 %v6701_v57, %v2328_v28 }
 0x270   :  { %v6741_v18 = vsel %vm2029_vm8, %v6344_v32, %v8154_v63  ;;  %vm2332_vm10 = vweird.f32 %v6701_v57  ;;  %v2335_v4 = vand.u32 2147483647, %v6662_v55  ;;  %v3087_v14 = vmul.f32 1.442695, %v3047_v42 }
 0x271   :  { %v3317_v36 = vmul.f32 %v3283_v38, %v6587_v52  ;;  %v3184_v63 = vsub.f32 1.0, %v3150_v53  ;;  %v3016_v37 = vsub.f32 0.0, %v6636_v11  ;;  %v2146_v44 = vmul.f32 0.3275911, %v6746_v5 }
 0x272   :  { %v2775_v2 = vmul.f32 %v2741_v10, %v6726_v62  ;;  %v2330_v21 = vadd.f32 %v6701_v57, %v2329_v31  ;;  %vm2331_vm0 = vweird.f32 %v6662_v55  ;;  %v6758_v58 = vadd.f32 1.0, %v2143_v3  ;;  %v1870_v10 = vpop.f32.mrf.mxu0 }
 0x273   :  { %3405 = vmatmul.f32.gmra.mxu2 %v3317_v36  ;;  %v3218_v28 = vsub.f32 0.0, %v3184_v63  ;;  %vm2333_vm2 = vmor %vm2331_vm0, %vm2332_vm10  ;;  %v2338_v43 = vor.u32 1.1754944e-38, %v2337_v60  ;;  %v2131_v52 = vmul.f32 0.3275911, %v6741_v18  ;;  %vm2336_vm15 = vcmp.eq.f32.partialorder %v2335_v4, 8.507059e+37  ;;  %v1799_v36 = vpop.f32.mrf.mxu3 }
 0x274   :  { %8155 = vst [vmem:[#allocation36_spill] sm:$0xff] %v6758_v58  ;;  %v2809_v42 = vadd.f32 1.4214138, %v2775_v2  ;;  %v2334_v38 = vsel %vm2333_vm2, %v6701_v57, %v2330_v21  ;;  %v1732_v53 = vadd.f32 %v1731_v39, %v6017_v46  ;;  %v1871_v3 = vadd.f32 %v1870_v10, %v5948_v41 }
 0x275   :  { %v3252_v31 = vsel %vm2028_vm14, %v3184_v63, %v3218_v28  ;;  %v6765_v55 = vsel %vm2336_vm15, %v2338_v43, %v2334_v38  ;;  %v6768_v49 = vadd.f32 1.0, %v2131_v52  ;;  %v2508_v4 = vsub.f32 1.0, %v2507_v34  ;;  %v1938_v43 = vpop.f32.mrf.mxu1 }
 0x276   :  { %v3286_v60 = vadd.f32 1.0, %v3252_v31  ;;  %v2843_v25 = vmul.f32 %v2809_v42, %v6726_v62  ;;  %v2710_v2 = vmul.f32 1.0614054, %v6765_v55  ;;  %v6772_v57 = vadd.f32 %v1799_v36, %v1732_v53 }
 0x277   :  { %v3027_v39 = vsub.f32 0.0, %v6720_v59  ;;  %v6776_v54 = vmul.f32 0.5, %v6261_v48  ;;  %4061 = vrcp.f32 %v6768_v49  ;;  %v6780_v52 = vadd.f32 %v1938_v43, %v1871_v3 }
 0x278   :  { %v3320_v63 = vmul.f32 %v3286_v60, %v6256_v47  ;;  %v2877_v21 = vadd.f32 -0.28449672, %v2843_v25  ;;  %v2744_v28 = vadd.f32 -1.4531521, %v2710_v2  ;;  %v6782_v42 = vadd.f32 1.0, %v2146_v44 }
 0x279   :  { %4063 = vpow2.f32 %v3087_v14  ;;  %v3050_v38 = vmul.f32 %v3016_v37, %v6636_v11  ;;  %v6786_v34 = vmul.f32 0.70710677, %v6772_v57  ;;  %v6792_v47 = vmul.f32 0.5, %v6324_v40 }
 0x27a   :  { %8156 = vst [vmem:[#allocation37_spill] sm:$0xff] %v6782_v42  ;;  %3476 = vmatmul.f32.gmra.mxu3 %v3320_v63  ;;  %4065 = vrcp.f32 %v6758_v58  ;;  %v2911_v48 = vmul.f32 %v2877_v21, %v6726_v62  ;;  %v2778_v53 = vmul.f32 %v2744_v28, %v6765_v55  ;;  %v8158_v25 = vsub.f32 1.0, %v6691_v16 }
 0x27b   :  { %8157 = vst [vmem:[#allocation38_spill] sm:$0xff] %v6786_v34  ;;  %v6800_v11 = vmul.f32 %v6712_v20, %v2508_v4  ;;  %v6803_v14 = vmul.f32 0.5, %v6667_v27  ;;  %v3030_v37 = vsub.f32 0.0, %v6746_v5  ;;  %v3061_v10 = vmul.f32 %v3027_v39, %v6720_v59 }
 0x27c   :  { %v6797_v44 = vmul.f32 %v6675_v22, %v8158_v25  ;;  %v2945_v31 = vadd.f32 0.2548296, %v2911_v48  ;;  %v2812_v36 = vadd.f32 1.4214138, %v2778_v53  ;;  %v6808_v40 = vmul.f32 0.70710677, %v6780_v52 }
 0x27d   :  { %8159 = vst [vmem:[#allocation39_spill] sm:$0xff] %v6800_v11  ;;  %v4062_v3 = vpop.eup %4061  ;;  %4067 = vrcp.f32 %v6782_v42  ;;  %v3093_v16 = vmul.f32 1.442695, %v3050_v38  ;;  %v2077_v60 = vsub.f32 0.0, %v6786_v34  ;;  %v2502_v27 = vand.u32 2147483648, %v6758_v58 }
 0x27e   :  { %8160 = vst [vmem:[#allocation40_spill] sm:$0xff] %v6803_v14  ;;  %v2979_v4 = vmul.f32 %v2945_v31, %v6726_v62  ;;  %v2846_v43 = vmul.f32 %v2812_v36, %v6765_v55  ;;  %vm8042_vm14 = vcmp.ge.f32.partialorder %v6786_v34, 0.0  ;;  %v6818_v39 = vmul.f32 0.5, %v6681_v33 }
 0x27f   :  { %8161 = vst [vmem:[#allocation41_spill] sm:$0xff] %v6808_v40  ;;  %v4064_v59 = vpop.eup %4063  ;;  %v3064_v63 = vmul.f32 %v3030_v37, %v6746_v5  ;;  %v2312_v21 = vmul.f32 %v4062_v3, %v6768_v49  ;;  %vm2032_vm13 = vcmp.ge.f32.partialorder %v6346_v24, 0.0  ;;  %v3115_v38 = vmul.f32 1.442695, %v3061_v10 }
 0x280   :  { %8162 = vst [vmem:[#allocation42_spill] sm:$0xff] %v6818_v39  ;;  %v6823_v28 = vpop.eup %4065  ;;  %v3149_v48 = vmul.f32 %v4064_v59, %v2979_v4  ;;  %v2880_v53 = vadd.f32 -0.28449672, %v2846_v43  ;;  %v2080_v62 = vsub.f32 0.0, %v6808_v40  ;;  %4069 = vpow2.f32 %v3093_v16 }
 0x281   :  { %v2111_v25 = vsel %vm8042_vm14, %v6786_v34, %v2077_v60  ;;  %vm8038_vm10 = vcmp.ge.f32.partialorder %v6808_v40, 0.0  ;;  %v2313_v33 = vsub.f32 1.0, %v2312_v21  ;;  %v6830_v5 = vor.u32 1.1754944e-38, %v2502_v27 }
 0x282   :  { %v3183_v37 = vsub.f32 1.0, %v3149_v48  ;;  %v2914_v31 = vmul.f32 %v2880_v53, %v6765_v55  ;;  %v8164_v36 = vsub.f32 0.0, %v6346_v24  ;;  %v2492_v60 = vmul.f32 %v6823_v28, %v6758_v58 }
 0x283   :  { %8163 = vst [vmem:[#allocation43_spill] sm:$0xff] %v6830_v5  ;;  %v6840_v16 = vpop.eup %4067  ;;  %v2547_v4 = vand.u32 2147483648, %v6782_v42  ;;  %v3121_v43 = vmul.f32 1.442695, %v3064_v63  ;;  %v2322_v27 = vand.u32 2147483648, %v6768_v49  ;;  %v2114_v53 = vsel %vm8038_vm10, %v6808_v40, %v2080_v62 }
 0x284   :  { %v6838_v10 = vsel %vm2032_vm13, %v6346_v24, %v8164_v36  ;;  %v3217_v59 = vsub.f32 0.0, %v3183_v37  ;;  %v2948_v21 = vadd.f32 0.2548296, %v2914_v31  ;;  %v2145_v48 = vmul.f32 0.3275911, %v2111_v25 }
 0x285   :  { %v2314_v2 = vmul.f32 %v4062_v3, %v2313_v33  ;;  %vm2317_vm0 = vweird.f32 %v4062_v3  ;;  %v2320_v36 = vand.u32 2147483647, %v6768_v49  ;;  %v2134_v34 = vmul.f32 0.3275911, %v6838_v10 }
 0x286   :  { %v2537_v39 = vmul.f32 %v6840_v16, %v6782_v42  ;;  %v3251_v63 = vsel %vm2027_vm4, %v3183_v37, %v3217_v59  ;;  %v2982_v14 = vmul.f32 %v2948_v21, %v6765_v55  ;;  %vm2316_vm2 = vweird.f32 %v6768_v49  ;;  %v4070_v31 = vpop.eup %4069 }
 0x287   :  { %v3285_v5 = vadd.f32 1.0, %v3251_v63  ;;  %v2148_v11 = vmul.f32 0.3275911, %v2114_v53  ;;  %v2315_v62 = vadd.f32 %v4062_v3, %v2314_v2  ;;  %v6857_v33 = vadd.f32 1.0, %v2134_v34  ;;  %vm2318_vm15 = vmor %vm2316_vm2, %vm2317_vm0 }
 0x288   :  { %4071 = vpow2.f32 %v3115_v38  ;;  %v3152_v40 = vmul.f32 %v4070_v31, %v2982_v14  ;;  %v6859_v58 = vadd.f32 1.0, %v2145_v48  ;;  %v2323_v42 = vor.u32 1.1754944e-38, %v2322_v27 }
 0x289   :  { %v2493_v22 = vsub.f32 1.0, %v2492_v60  ;;  %v3319_v15 = vmul.f32 %v3285_v5, %v6776_v54  ;;  %v2319_v37 = vsel %vm2318_vm15, %v4062_v3, %v2315_v62  ;;  %vm2321_vm4 = vcmp.eq.f32.partialorder %v2320_v36, 8.507059e+37 }
 0x28a   :  { %v3186_v55 = vsub.f32 1.0, %v3152_v40  ;;  %v3029_v49 = vsub.f32 0.0, %v2111_v25  ;;  %v6863_v59 = vsel %vm2321_vm4, %v2323_v42, %v2319_v37  ;;  %vm2031_vm10 = vcmp.ge.f32.partialorder %v6366_v56, 0.0 }
 0x28b   :  { %v2538_v34 = vsub.f32 1.0, %v2537_v39  ;;  %3408 = vmatmul.f32.gmra.mxu2 %v3319_v15  ;;  %v6866_v2 = vadd.f32 1.0, %v2148_v11  ;;  %v2709_v14 = vmul.f32 1.0614054, %v6863_v59  ;;  %4073 = vrcp.f32 %v6857_v33 }
 0x28c   :  { %v3220_v38 = vsub.f32 0.0, %v3186_v55  ;;  %4075 = vrcp.f32 %v6859_v58  ;;  %v3032_v54 = vsub.f32 0.0, %v2114_v53  ;;  %v8166_v40 = vsub.f32 0.0, %v6741_v18 }
 0x28d   :  { %8165 = vst [vmem:[#allocation44_spill] sm:$0xff] %v6866_v2  ;;  %v6874_v42 = vor.u32 1.1754944e-38, %v2547_v4  ;;  %v2743_v5 = vadd.f32 -1.4531521, %v2709_v14  ;;  %v8168_v39 = vsub.f32 0.0, %v6366_v56  ;;  %vm2034_vm0 = vcmp.ge.f32.partialorder %v6372_v12, 0.0 }
 0x28e   :  { %v3049_v3 = vmul.f32 %v8166_v40, %v6741_v18  ;;  %v6884_v60 = vpop.eup %4071  ;;  %v6887_v27 = vmul.f32 %v6823_v28, %v2493_v22  ;;  %4077 = vpow2.f32 %v3121_v43  ;;  %v3254_v18 = vsel %vm2030_vm11, %v3186_v55, %v3220_v38 }
 0x28f   :  { %8167 = vst [vmem:[#allocation45_spill] sm:$0xff] %v6874_v42  ;;  %v6881_v11 = vsel %vm2031_vm10, %v6366_v56, %v8168_v39  ;;  %v3063_v4 = vmul.f32 %v3029_v49, %v2111_v25  ;;  %v3288_v21 = vadd.f32 1.0, %v3254_v18  ;;  %4079 = vrcp.f32 %v6866_v2 }
 0x290   :  { %8169 = vst [vmem:[#allocation46_spill] sm:$0xff] %v6884_v60  ;;  %v2777_v48 = vmul.f32 %v2743_v5, %v6863_v59  ;;  %v2133_v36 = vmul.f32 0.3275911, %v6881_v11  ;;  %v6895_v63 = vmul.f32 %v6840_v16, %v2538_v34  ;;  %v3066_v31 = vmul.f32 %v3032_v54, %v2114_v53 }
 0x291   :  { %v3091_v62 = vmul.f32 1.442695, %v3049_v3  ;;  %v8170_v22 = vsub.f32 0.0, %v6372_v12  ;;  %v4074_v25 = vpop.eup %4073  ;;  %v3322_v43 = vmul.f32 %v3288_v21, %v6308_v51  ;;  %v6906_v15 = vmul.f32 0.5, %v6772_v57 }
 0x292   :  { %v2811_v37 = vadd.f32 1.4214138, %v2777_v48  ;;  %v6908_v55 = vadd.f32 1.0, %v2133_v36  ;;  %v6910_v49 = vpop.eup %4075  ;;  %v3119_v53 = vmul.f32 1.442695, %v3063_v4  ;;  %v6913_v34 = vmul.f32 0.5, %v6780_v52 }
 0x293   :  { %v6902_v61 = vsel %vm2034_vm0, %v6372_v12, %v8170_v22  ;;  %8171 = vst [vmem:[#allocation47_spill] sm:$0xff] %v6906_v15  ;;  %v2357_v14 = vmul.f32 %v4074_v25, %v6857_v33  ;;  %3479 = vmatmul.f32.gmra.mxu3 %v3322_v43  ;;  %v2532_v54 = vand.u32 2147483648, %v6859_v58  ;;  %v2577_v51 = vand.u32 2147483648, %v6866_v2  ;;  %v1873_v15 = vpop.f32.mrf.mxu0 }
 0x294   :  { %8172 = vst [vmem:[#allocation48_spill] sm:$0xff] %v6913_v34  ;;  %v2136_v38 = vmul.f32 0.3275911, %v6902_v61  ;;  %v2845_v57 = vmul.f32 %v2811_v37, %v6863_v59  ;;  %4081 = vrcp.f32 %v6908_v55  ;;  %v6921_v40 = vpop.eup %4077  ;;  %v3125_v3 = vmul.f32 1.442695, %v3066_v31 }
 0x295   :  { %8173 = vst [vmem:[#allocation49_spill] sm:$0xff] %v6921_v40  ;;  %4083 = vpow2.f32 %v3091_v62  ;;  %v2358_v5 = vsub.f32 1.0, %v2357_v14  ;;  %v6925_v39 = vpop.eup %4079  ;;  %v2522_v18 = vmul.f32 %v6910_v49, %v6859_v58  ;;  %v2367_v21 = vand.u32 2147483648, %v6857_v33 }
 0x296   :  { %v6923_v52 = vadd.f32 1.0, %v2136_v38  ;;  %v2879_v4 = vadd.f32 -0.28449672, %v2845_v57  ;;  %v6931_v48 = vmul.f32 0.5, %v6340_v26  ;;  %4085 = vpow2.f32 %v3119_v53  ;;  %v1734_v57 = vpop.f32.mrf.mxu2 }
 0x297   :  { %v2359_v36 = vmul.f32 %v4074_v25, %v2358_v5  ;;  %vm2362_vm11 = vweird.f32 %v4074_v25  ;;  %v2365_v31 = vand.u32 2147483647, %v6857_v33  ;;  %v6934_v62 = vor.u32 1.1754944e-38, %v2532_v54 }
 0x298   :  { %v6936_v22 = vor.u32 1.1754944e-38, %v2577_v51  ;;  %v2913_v43 = vmul.f32 %v2879_v4, %v6863_v59  ;;  %4087 = vrcp.f32 %v6923_v52  ;;  %v6942_v37 = vmul.f32 %v6925_v39, %v6866_v2 }
 0x299   :  { %8174 = vst [vmem:[#allocation50_spill] sm:$0xff] %v6934_v62  ;;  %4089 = vpow2.f32 %v3125_v3  ;;  %v2360_v26 = vadd.f32 %v4074_v25, %v2359_v36  ;;  %vm2361_vm2 = vweird.f32 %v6857_v33  ;;  %v2523_v14 = vsub.f32 1.0, %v2522_v18  ;;  %v1802_v18 = vpop.f32.mrf.mxu3 }
 0x29a   :  { %8175 = vst [vmem:[#allocation51_spill] sm:$0xff] %v6936_v22  ;;  %v6945_v53 = vpop.eup %4081  ;;  %v2947_v38 = vadd.f32 0.2548296, %v2913_v43  ;;  %vm2363_vm15 = vmor %vm2361_vm2, %vm2362_vm11  ;;  %v2368_v54 = vor.u32 1.1754944e-38, %v2367_v21  ;;  %v3018_v51 = vsub.f32 0.0, %v6838_v10  ;;  %vm2366_vm4 = vcmp.eq.f32.partialorder %v2365_v31, 8.507059e+37 }
 0x29b   :  { %v4084_v5 = vpop.eup %4083  ;;  %v2364_v4 = vsel %vm2363_vm15, %v4074_v25, %v2360_v26  ;;  %v1735_v34 = vadd.f32 %v1734_v57, %v6017_v46  ;;  %v2342_v3 = vmul.f32 %v6945_v53, %v6908_v55  ;;  %v1874_v43 = vadd.f32 %v1873_v15, %v5948_v41 }
 0x29c   :  { %v2981_v33 = vmul.f32 %v2947_v38, %v6863_v59  ;;  %v6952_v36 = vsel %vm2366_vm4, %v2368_v54, %v2364_v4  ;;  %v6956_v21 = vmul.f32 0.5, %v6393_v29  ;;  %v6958_v40 = vpop.eup %4085  ;;  %v6967_v59 = vmul.f32 %v6910_v49, %v2523_v14  ;;  %v1941_v4 = vpop.f32.mrf.mxu1 }
 0x29d   :  { %8176 = vst [vmem:[#allocation52_spill] sm:$0xff] %v6958_v40  ;;  %v2712_v31 = vmul.f32 1.0614054, %v6952_v36  ;;  %v6962_v26 = vadd.f32 %v1802_v18, %v1735_v34  ;;  %v2343_v57 = vsub.f32 1.0, %v2342_v3  ;;  %v3052_v15 = vmul.f32 %v3018_v51, %v6838_v10 }
 0x29e   :  { %v6964_v60 = vpop.eup %4087  ;;  %8177 = vst [vmem:[#allocation53_spill] sm:$0xff] %v6967_v59  ;;  %v3151_v38 = vmul.f32 %v4084_v5, %v2981_v33  ;;  %vm2033_vm11 = vcmp.ge.f32.partialorder %v6415_v6, 0.0  ;;  %v2352_v34 = vand.u32 2147483648, %v6908_v55  ;;  %v3017_v3 = vsub.f32 0.0, %v6881_v11 }
 0x29f   :  { %v6971_v29 = vpop.eup %4089  ;;  %v2746_v54 = vadd.f32 -1.4531521, %v2712_v31  ;;  %v2344_v25 = vmul.f32 %v6945_v53, %v2343_v57  ;;  %v6976_v40 = vadd.f32 %v1941_v4, %v1874_v43  ;;  %vm2347_vm2 = vweird.f32 %v6945_v53 }
 0x2a0   :  { %8178 = vst [vmem:[#allocation54_spill] sm:$0xff] %v6971_v29  ;;  %v3185_v18 = vsub.f32 1.0, %v3151_v38  ;;  %v2387_v10 = vmul.f32 %v6964_v60, %v6923_v52  ;;  %v6983_v51 = vmul.f32 0.70710677, %v6962_v26  ;;  %v8179_v33 = vsub.f32 0.0, %v6415_v6 }
 0x2a1   :  { %v2780_v14 = vmul.f32 %v2746_v54, %v6952_v36  ;;  %v2345_v5 = vadd.f32 %v6945_v53, %v2344_v25  ;;  %vm2346_vm15 = vweird.f32 %v6908_v55  ;;  %v2350_v57 = vand.u32 2147483647, %v6908_v55 }
 0x2a2   :  { %v6991_v31 = vsel %vm2033_vm11, %v6415_v6, %v8179_v33  ;;  %v3219_v43 = vsub.f32 0.0, %v3185_v18  ;;  %v3020_v38 = vsub.f32 0.0, %v6902_v61  ;;  %v3097_v4 = vmul.f32 1.442695, %v3052_v15  ;;  %vm6996_vm4 = vmor %vm2346_vm15, %vm2347_vm2 }
 0x2a3   :  { %v2814_v54 = vadd.f32 1.4214138, %v2780_v14  ;;  %v3051_v25 = vmul.f32 %v3017_v3, %v6881_v11  ;;  %v2388_v22 = vsub.f32 1.0, %v2387_v10  ;;  %v7004_v62 = vmul.f32 0.70710677, %v6976_v40 }
 0x2a4   :  { %v3253_v33 = vsel %vm2029_vm8, %v3185_v18, %v3219_v43  ;;  %v2349_v55 = vsel %vm6996_vm4, %v6945_v53, %v2345_v5  ;;  %v2135_v14 = vmul.f32 0.3275911, %v6991_v31  ;;  %v2079_v59 = vsub.f32 0.0, %v6983_v51 }
 0x2a5   :  { %8182 = vst [vmem:[#allocation55_spill] sm:$0xff] %v7004_v62  ;;  %v3287_v15 = vadd.f32 1.0, %v3253_v33  ;;  %v2848_v42 = vmul.f32 %v2814_v54, %v6952_v36  ;;  %v2353_v2 = vor.u32 1.1754944e-38, %v2352_v34  ;;  %vm8041_vm2 = vcmp.ge.f32.partialorder %v6983_v51, 0.0 }
 0x2a6   :  { %vm2351_vm15 = vcmp.eq.f32.partialorder %v2350_v57, 8.507059e+37  ;;  %v2397_v32 = vand.u32 2147483648, %v6923_v52  ;;  %v3054_v11 = vmul.f32 %v3020_v38, %v6902_v61  ;;  %v2389_v53 = vmul.f32 %v6964_v60, %v2388_v22 }
 0x2a7   :  { %v3321_v3 = vmul.f32 %v3287_v15, %v6792_v47  ;;  %v2882_v18 = vadd.f32 -0.28449672, %v2848_v42  ;;  %v7016_v29 = vsel %vm2351_vm15, %v2353_v2, %v2349_v55  ;;  %4091 = vpow2.f32 %v3097_v4  ;;  %v1737_v55 = vpop.f32.mrf.mxu2  ;;  %v1876_v15 = vpop.f32.mrf.mxu0 }
 0x2a8   :  { %v2082_v10 = vsub.f32 0.0, %v7004_v62  ;;  %v2395_v5 = vand.u32 2147483647, %v6923_v52  ;;  %v7021_v34 = vadd.f32 1.0, %v2135_v14  ;;  %v7027_v61 = vsel %vm8041_vm2, %v6983_v51, %v2079_v59 }
 0x2a9   :  { %3411 = vmatmul.f32.gmra.mxu2 %v3321_v3  ;;  %v2916_v43 = vmul.f32 %v2882_v18, %v6952_v36  ;;  %vm8047_vm8 = vcmp.ge.f32.partialorder %v7004_v62, 0.0  ;;  %vm2392_vm4 = vweird.f32 %v6964_v60  ;;  %v2711_v47 = vmul.f32 1.0614054, %v7016_v29 }
 0x2aa   :  { %v3095_v2 = vmul.f32 1.442695, %v3051_v25  ;;  %vm2391_vm15 = vweird.f32 %v6923_v52  ;;  %v3019_v42 = vsub.f32 0.0, %v6991_v31  ;;  %v2390_v57 = vadd.f32 %v6964_v60, %v2389_v53 }
 0x2ab   :  { %v2950_v22 = vadd.f32 0.2548296, %v2916_v43  ;;  %v2398_v38 = vor.u32 1.1754944e-38, %v2397_v32  ;;  %v3101_v54 = vmul.f32 1.442695, %v3054_v11  ;;  %v7039_v59 = vsel %vm8047_vm8, %v7004_v62, %v2082_v10  ;;  %vm2393_vm2 = vmor %vm2391_vm15, %vm2392_vm4 }
 0x2ac   :  { %v2147_v4 = vmul.f32 0.3275911, %v7027_v61  ;;  %v2745_v33 = vadd.f32 -1.4531521, %v2711_v47  ;;  %4093 = vrcp.f32 %v7021_v34  ;;  %v2394_v25 = vsel %vm2393_vm2, %v6964_v60, %v2390_v57  ;;  %v1944_v57 = vpop.f32.mrf.mxu1 }
 0x2ad   :  { %v2984_v52 = vmul.f32 %v2950_v22, %v6952_v36  ;;  %vm2396_vm14 = vcmp.eq.f32.partialorder %v2395_v5, 8.507059e+37  ;;  %v1738_v14 = vadd.f32 %v1737_v55, %v6017_v46  ;;  %v4092_v32 = vpop.eup %4091  ;;  %v8183_v11 = vsub.f32 1.0, %v6942_v37  ;;  %v1805_v5 = vpop.f32.mrf.mxu3 }
 0x2ae   :  { %v2779_v18 = vmul.f32 %v2745_v33, %v7016_v29  ;;  %v7051_v53 = vsel %vm2396_vm14, %v2398_v38, %v2394_v25  ;;  %v1877_v10 = vadd.f32 %v1876_v15, %v5948_v41  ;;  %v2150_v36 = vmul.f32 0.3275911, %v7039_v59 }
 0x2af   :  { %v7048_v3 = vmul.f32 %v6925_v39, %v8183_v11  ;;  %v3154_v43 = vmul.f32 %v4092_v32, %v2984_v52  ;;  %4095 = vpow2.f32 %v3095_v2  ;;  %v2714_v60 = vmul.f32 1.0614054, %v7051_v53 }
 0x2b0   :  { %v7056_v47 = vadd.f32 1.0, %v2147_v4  ;;  %v2813_v22 = vadd.f32 1.4214138, %v2779_v18  ;;  %4097 = vpow2.f32 %v3101_v54  ;;  %v7058_v37 = vadd.f32 %v1805_v5, %v1738_v14 }
 0x2b1   :  { %v3188_v55 = vsub.f32 1.0, %v3154_v43  ;;  %v2748_v33 = vadd.f32 -1.4531521, %v2714_v60  ;;  %v7060_v38 = vadd.f32 %v1944_v57, %v1877_v10  ;;  %v7063_v25 = vmul.f32 %v3019_v42, %v6991_v31 }
 0x2b2   :  { %v7065_v52 = vpop.eup %4093  ;;  %v7068_v2 = vmul.f32 0.5, %v6962_v26  ;;  %v3031_v4 = vsub.f32 0.0, %v7027_v61  ;;  %v2847_v15 = vmul.f32 %v2813_v22, %v7016_v29  ;;  %v7073_v54 = vmul.f32 0.70710677, %v7058_v37 }
 0x2b3   :  { %v3222_v14 = vsub.f32 0.0, %v3188_v55  ;;  %v7075_v32 = vadd.f32 1.0, %v2150_v36  ;;  %v3034_v11 = vsub.f32 0.0, %v7039_v59  ;;  %v2782_v31 = vmul.f32 %v2748_v33, %v7051_v53 }
 0x2b4   :  { %8184 = vst [vmem:[#allocation56_spill] sm:$0xff] %v7068_v2  ;;  %4099 = vrcp.f32 %v7056_v47  ;;  %v2881_v42 = vadd.f32 -0.28449672, %v2847_v15  ;;  %vm8046_vm14 = vcmp.ge.f32.partialorder %v7073_v54, 0.0  ;;  %v2081_v26 = vsub.f32 0.0, %v7073_v54 }
 0x2b5   :  { %8185 = vst [vmem:[#allocation57_spill] sm:$0xff] %v7073_v54  ;;  %v4096_v18 = vpop.eup %4095  ;;  %v3256_v10 = vsel %vm2032_vm13, %v3188_v55, %v3222_v14  ;;  %v2816_v43 = vadd.f32 1.4214138, %v2782_v31  ;;  %v7085_v60 = vmul.f32 0.70710677, %v7060_v38  ;;  %v2372_v36 = vmul.f32 %v7065_v52, %v7021_v34 }
 0x2b6   :  { %v4098_v5 = vpop.eup %4097  ;;  %vm2422_vm2 = vweird.f32 %v6465_v7  ;;  %v3290_v22 = vadd.f32 1.0, %v3256_v10  ;;  %v2562_v57 = vand.u32 2147483648, %v7056_v47  ;;  %v3065_v33 = vmul.f32 %v3031_v4, %v7027_v61 }
 0x2b7   :  { %8186 = vst [vmem:[#allocation58_spill] sm:$0xff] %v7085_v60  ;;  %v2915_v15 = vmul.f32 %v2881_v42, %v7016_v29  ;;  %4101 = vrcp.f32 %v7075_v32  ;;  %v2850_v24 = vmul.f32 %v2816_v43, %v7051_v53  ;;  %v7098_v55 = vsel %vm8046_vm14, %v7073_v54, %v2081_v26 }
 0x2b8   :  { %vm8045_vm13 = vcmp.ge.f32.partialorder %v7085_v60, 0.0  ;;  %vm2421_vm4 = vweird.f32 %v6397_v8  ;;  %v3324_v14 = vmul.f32 %v3290_v22, %v6370_v17  ;;  %v2084_v61 = vsub.f32 0.0, %v7085_v60 }
 0x2b9   :  { %v2949_v31 = vadd.f32 0.2548296, %v2915_v15  ;;  %v2373_v4 = vsub.f32 1.0, %v2372_v36  ;;  %v7105_v42 = vmul.f32 0.5, %v6976_v40  ;;  %v3068_v10 = vmul.f32 %v3034_v11, %v7039_v59 }
 0x2ba   :  { %v2884_v43 = vadd.f32 -0.28449672, %v2850_v24  ;;  %v2380_v62 = vand.u32 2147483647, %v7021_v34  ;;  %v7109_v26 = vpop.eup %4099  ;;  %3482 = vmatmul.f32.gmra.mxu3 %v3324_v14  ;;  %v2149_v2 = vmul.f32 0.3275911, %v7098_v55  ;;  %v7116_v17 = vsel %vm8045_vm13, %v7085_v60, %v2084_v61 }
 0x2bb   :  { %8187 = vst [vmem:[#allocation59_spill] sm:$0xff] %v7105_v42  ;;  %v2983_v54 = vmul.f32 %v2949_v31, %v7016_v29  ;;  %v2374_v40 = vmul.f32 %v7065_v52, %v2373_v4  ;;  %v3123_v36 = vmul.f32 1.442695, %v3065_v33  ;;  %vm2377_vm15 = vweird.f32 %v7065_v52 }
 0x2bc   :  { %v2918_v59 = vmul.f32 %v2884_v43, %v7051_v53  ;;  %v2382_v11 = vand.u32 2147483648, %v7021_v34  ;;  %v7122_v22 = vor.u32 1.1754944e-38, %v2562_v57  ;;  %v2607_v29 = vand.u32 2147483648, %v7075_v32 }
 0x2bd   :  { %v3153_v15 = vmul.f32 %v4096_v18, %v2983_v54  ;;  %v2152_v24 = vmul.f32 0.3275911, %v7116_v17  ;;  %v7126_v14 = vpop.eup %4101  ;;  %v3129_v31 = vmul.f32 1.442695, %v3068_v10  ;;  %v2375_v4 = vadd.f32 %v7065_v52, %v2374_v40 }
 0x2be   :  { %v2952_v61 = vadd.f32 0.2548296, %v2918_v59  ;;  %vm2376_vm13 = vweird.f32 %v7021_v34  ;;  %v7132_v33 = vmul.f32 %v7109_v26, %v7056_v47  ;;  %v7134_v57 = vadd.f32 1.0, %v2149_v2 }
 0x2bf   :  { %v3187_v43 = vsub.f32 1.0, %v3153_v15  ;;  %vm2378_vm14 = vmor %vm2376_vm13, %vm2377_vm15  ;;  %vm2381_vm8 = vcmp.eq.f32.partialorder %v2380_v62, 8.507059e+37  ;;  %v2383_v60 = vor.u32 1.1754944e-38, %v2382_v11  ;;  %v2420_v10 = vadd.f32 %v6465_v7, %v6538_v50 }
 0x2c0   :  { %v2986_v54 = vmul.f32 %v2952_v61, %v7051_v53  ;;  %v2379_v18 = vsel %vm2378_vm14, %v7065_v52, %v2375_v4  ;;  %v7142_v34 = vmul.f32 %v7126_v14, %v7075_v32  ;;  %v7144_v59 = vadd.f32 1.0, %v2152_v24  ;;  %vm7151_vm13 = vmor %vm2421_vm4, %vm2422_vm2 }
 0x2c1   :  { %v3221_v40 = vsub.f32 0.0, %v3187_v43  ;;  %v2425_v2 = vand.u32 2147483647, %v6397_v8  ;;  %4103 = vpow2.f32 %v3123_v36  ;;  %v7155_v53 = vor.u32 1.1754944e-38, %v2607_v29  ;;  %v1879_v29 = vpop.f32.mrf.mxu0 }
 0x2c2   :  { %v3156_v50 = vmul.f32 %v4098_v5, %v2986_v54  ;;  %v7157_v52 = vsel %vm2381_vm8, %v2383_v60, %v2379_v18  ;;  %v2553_v11 = vsub.f32 1.0, %v7132_v33  ;;  %4105 = vpow2.f32 %v3129_v31  ;;  %v1740_v60 = vpop.f32.mrf.mxu2 }
 0x2c3   :  { %v3255_v15 = vsel %vm2031_vm10, %v3187_v43, %v3221_v40  ;;  %v2424_v8 = vsel %vm7151_vm13, %v6465_v7, %v2420_v10  ;;  %vm2406_vm14 = vweird.f32 %v6443_v45  ;;  %4107 = vrcp.f32 %v7134_v57  ;;  %v1808_v43 = vpop.f32.mrf.mxu3 }
 0x2c4   :  { %v3289_v24 = vadd.f32 1.0, %v3255_v15  ;;  %v3190_v61 = vsub.f32 1.0, %v3156_v50  ;;  %v2713_v5 = vmul.f32 1.0614054, %v7157_v52  ;;  %4109 = vrcp.f32 %v7144_v59 }
 0x2c5   :  { %vm2426_vm8 = vcmp.eq.f32.partialorder %v2425_v2, 8.507059e+37  ;;  %v1741_v56 = vadd.f32 %v1740_v60, %v6017_v46  ;;  %v7176_v54 = vmul.f32 0.5, %v7058_v37  ;;  %v1880_v40 = vadd.f32 %v1879_v29, %v5948_v41  ;;  %v1947_v60 = vpop.f32.mrf.mxu1 }
 0x2c6   :  { %v3323_v31 = vmul.f32 %v3289_v24, %v6931_v48  ;;  %v3224_v7 = vsub.f32 0.0, %v3190_v61  ;;  %v2747_v4 = vadd.f32 -1.4531521, %v2713_v5  ;;  %v7173_v33 = vsel %vm2426_vm8, %v6481_v30, %v2424_v8 }
 0x2c7   :  { %8190 = vst [vmem:[#allocation60_spill] sm:$0xff] %v7176_v54  ;;  %v2716_v18 = vmul.f32 1.0614054, %v7173_v33  ;;  %v7179_v10 = vadd.f32 %v1808_v43, %v1741_v56  ;;  %v7182_v2 = vpop.eup %4103  ;;  %v3033_v62 = vsub.f32 0.0, %v7098_v55  ;;  %v3099_v50 = vmul.f32 1.442695, %v7063_v25 }
 0x2c8   :  { %3414 = vmatmul.f32.gmra.mxu2 %v3323_v31  ;;  %v3258_v48 = vsel %vm2034_vm0, %v3190_v61, %v3224_v7  ;;  %v2781_v30 = vmul.f32 %v2747_v4, %v7157_v52  ;;  %v7189_v37 = vpop.eup %4105  ;;  %vm2452_vm10 = vweird.f32 %v6507_v35  ;;  %v3036_v8 = vsub.f32 0.0, %v7116_v17  ;;  %v8221_v54 = vld [vmem:[#allocation28_spill] sm:$0xff] }
 0x2c9   :  { %8191 = vst [vmem:[#allocation61_spill] sm:$0xff] %v7179_v10  ;;  %v3292_v15 = vadd.f32 1.0, %v3258_v48  ;;  %v2750_v24 = vadd.f32 -1.4531521, %v2716_v18  ;;  %v7194_v5 = vmul.f32 0.70710677, %v7179_v10  ;;  %v7196_v12 = vpop.eup %4107  ;;  %v7198_v56 = vadd.f32 %v1947_v60, %v1880_v40 }
 0x2ca   :  { %8192 = vst [vmem:[#allocation62_spill] sm:$0xff] %v7189_v37  ;;  %v2815_v61 = vadd.f32 1.4214138, %v2781_v30  ;;  %v2405_v25 = vadd.f32 %v6498_v1, %v6560_v13  ;;  %vm2407_vm0 = vweird.f32 %v6498_v1  ;;  %v7203_v29 = vpop.eup %4109  ;;  %vm2451_vm2 = vweird.f32 %v6461_v19 }
 0x2cb   :  { %8193 = vst [vmem:[#allocation63_spill] sm:$0xff] %v7194_v5  ;;  %v7207_v31 = vmul.f32 %v7109_v26, %v2553_v11  ;;  %v3326_v7 = vmul.f32 %v3292_v15, %v6386_v23  ;;  %v7211_v4 = vmul.f32 0.5, %v7060_v38  ;;  %v2784_v43 = vmul.f32 %v2750_v24, %v7173_v33  ;;  %vm7226_vm15 = vmor %vm2406_vm14, %vm2407_vm0 }
 0x2cc   :  { %8194 = vst [vmem:[#allocation64_spill] sm:$0xff] %v7198_v56  ;;  %v3067_v18 = vmul.f32 %v3033_v62, %v7098_v55  ;;  %v2849_v13 = vmul.f32 %v2815_v61, %v7157_v52  ;;  %v2083_v40 = vsub.f32 0.0, %v7194_v5  ;;  %v7218_v48 = vmul.f32 0.70710677, %v7198_v56  ;;  %vm7266_vm8 = vmor %vm2451_vm2, %vm2452_vm10 }
 0x2cd   :  { %8195 = vst [vmem:[#allocation65_spill] sm:$0xff] %v7211_v4  ;;  %3485 = vmatmul.f32.gmra.mxu3 %v3326_v7  ;;  %v2592_v11 = vand.u32 2147483648, %v7134_v57  ;;  %v2818_v30 = vadd.f32 1.4214138, %v2784_v43  ;;  %vm2049_vm4 = vcmp.ge.f32.partialorder %v7194_v5, 0.0  ;;  %v3070_v55 = vmul.f32 %v3036_v8, %v7116_v17 }
 0x2ce   :  { %8196 = vst [vmem:[#allocation66_spill] sm:$0xff] %v7218_v48  ;;  %v2410_v38 = vand.u32 2147483647, %v6443_v45  ;;  %v2883_v62 = vadd.f32 -0.28449672, %v2849_v13  ;;  %4111 = vpow2.f32 %v3099_v50  ;;  %v2409_v15 = vsel %vm7226_vm15, %v6498_v1, %v2405_v25  ;;  %v8200_v25 = vld [vmem:[#allocation18_spill] sm:$0xff] }
 0x2cf   :  { %v2582_v24 = vmul.f32 %v7196_v12, %v7134_v57  ;;  %v2627_v60 = vmul.f32 %v7203_v29, %v7144_v59  ;;  %v2852_v61 = vmul.f32 %v2818_v30, %v7173_v33  ;;  %v8199_v7 = vand.u32 2147483648, %v6443_v45 }
 0x2d0   :  { %v2917_v36 = vmul.f32 %v2883_v62, %v7157_v52  ;;  %v2117_v17 = vsel %vm2049_vm4, %v7194_v5, %v2083_v40  ;;  %v2086_v50 = vsub.f32 0.0, %v7218_v48  ;;  %vm2411_vm13 = vcmp.eq.f32.partialorder %v2410_v38, 8.507059e+37 }
 0x2d1   :  { %v2413_v43 = vor.u32 1.1754944e-38, %v8199_v7  ;;  %v2886_v1 = vadd.f32 -0.28449672, %v2852_v61  ;;  %vm2052_vm14 = vcmp.ge.f32.partialorder %v7218_v48, 0.0  ;;  %v2450_v13 = vadd.f32 %v6507_v35, %v8200_v25 }
 0x2d2   :  { %v8201_v45 = vsub.f32 1.0, %v7142_v34  ;;  %v7257_v23 = vor.u32 1.1754944e-38, %v2592_v11  ;;  %v3127_v62 = vmul.f32 1.442695, %v3067_v18  ;;  %v2951_v40 = vadd.f32 0.2548296, %v2917_v36  ;;  %v1882_v34 = vpop.f32.mrf.mxu0 }
 0x2d3   :  { %v7248_v8 = vsel %vm2411_vm13, %v2413_v43, %v2409_v15  ;;  %v2637_v7 = vand.u32 2147483648, %v7144_v59  ;;  %v2920_v38 = vmul.f32 %v2886_v1, %v7173_v33  ;;  %v2151_v61 = vmul.f32 0.3275911, %v2117_v17 }
 0x2d4   :  { %v7255_v30 = vmul.f32 %v7126_v14, %v8201_v45  ;;  %v2455_v15 = vand.u32 2147483647, %v6461_v19  ;;  %v4112_v43 = vpop.eup %4111  ;;  %v3133_v11 = vmul.f32 1.442695, %v3070_v55  ;;  %v2985_v18 = vmul.f32 %v2951_v40, %v7157_v52 }
 0x2d5   :  { %v7274_v36 = vsel %vm2052_vm14, %v7218_v48, %v2086_v50  ;;  %v2715_v1 = vmul.f32 1.0614054, %v7248_v8  ;;  %v2583_v25 = vsub.f32 1.0, %v2582_v24  ;;  %v2628_v45 = vsub.f32 1.0, %v2627_v60 }
 0x2d6   :  { %v2954_v56 = vadd.f32 0.2548296, %v2920_v38  ;;  %v2454_v19 = vsel %vm7266_vm8, %v6507_v35, %v2450_v13  ;;  %4113 = vpow2.f32 %v3127_v62  ;;  %v3155_v5 = vmul.f32 %v4112_v43, %v2985_v18  ;;  %v8204_v38 = vld [vmem:[#allocation14_spill] sm:$0xff]  ;;  %v1743_v35 = vpop.f32.mrf.mxu2 }
 0x2d7   :  { %v3035_v10 = vsub.f32 0.0, %v2117_v17  ;;  %v2749_v55 = vadd.f32 -1.4531521, %v2715_v1  ;;  %v7281_v40 = vadd.f32 1.0, %v2151_v61  ;;  %v2154_v50 = vmul.f32 0.3275911, %v7274_v36 }
 0x2d8   :  { %v2988_v52 = vmul.f32 %v2954_v56, %v7173_v33  ;;  %vm2456_vm10 = vcmp.eq.f32.partialorder %v2455_v15, 8.507059e+37  ;;  %v7284_v48 = vor.u32 1.1754944e-38, %v2637_v7  ;;  %v3189_v24 = vsub.f32 1.0, %v3155_v5  ;;  %v8205_v33 = vld [vmem:[#allocation11_spill] sm:$0xff]  ;;  %v8206_v61 = vld [vmem:[#allocation10_spill] sm:$0xff] }
 0x2d9   :  { %v2783_v60 = vmul.f32 %v2749_v55, %v7248_v8  ;;  %v7288_v4 = vsel %vm2456_vm10, %v8204_v38, %v2454_v19  ;;  %v7291_v13 = vmul.f32 %v7196_v12, %v2583_v25  ;;  %v7294_v62 = vmul.f32 %v7203_v29, %v2628_v45  ;;  %v1811_v55 = vpop.f32.mrf.mxu3 }
 0x2da   :  { %4115 = vpow2.f32 %v3133_v11  ;;  %v3158_v56 = vmul.f32 %v8205_v33, %v2988_v52  ;;  %vm2436_vm0 = vweird.f32 %v8206_v61  ;;  %v3223_v7 = vsub.f32 0.0, %v3189_v24 }
 0x2db   :  { %v3069_v15 = vmul.f32 %v3035_v10, %v2117_v17  ;;  %v2817_v5 = vadd.f32 1.4214138, %v2783_v60  ;;  %v2718_v43 = vmul.f32 1.0614054, %v7288_v4  ;;  %4117 = vrcp.f32 %v7281_v40 }
 0x2dc   :  { %v3192_v18 = vsub.f32 1.0, %v3158_v56  ;;  %v7300_v1 = vadd.f32 1.0, %v2154_v50  ;;  %v1744_v25 = vadd.f32 %v1743_v35, %v6017_v46  ;;  %v7303_v45 = vpop.eup %4113  ;;  %v3257_v11 = vsel %vm2033_vm11, %v3189_v24, %v3223_v7  ;;  %v8210_v7 = vld [vmem:[#allocation20_spill] sm:$0xff] }
 0x2dd   :  { %8207 = vst [vmem:[#allocation18_spill] sm:$0xff] %v7303_v45  ;;  %v2622_v19 = vand.u32 2147483648, %v7281_v40  ;;  %v2851_v10 = vmul.f32 %v2817_v5, %v7248_v8  ;;  %v2752_v17 = vadd.f32 -1.4531521, %v2718_v43  ;;  %v3291_v52 = vadd.f32 1.0, %v3257_v11 }
 0x2de   :  { %v3226_v60 = vsub.f32 0.0, %v3192_v18  ;;  %v7309_v38 = vadd.f32 %v1811_v55, %v1744_v25  ;;  %v1883_v50 = vadd.f32 %v1882_v34, %v5948_v41  ;;  %v3038_v33 = vsub.f32 0.0, %v7274_v36  ;;  %v8213_v55 = vld [vmem:[#allocation12_spill] sm:$0xff] }
 0x2df   :  { %v2885_v35 = vadd.f32 -0.28449672, %v2851_v10  ;;  %v2786_v56 = vmul.f32 %v2752_v17, %v7288_v4  ;;  %v2435_v6 = vadd.f32 %v6544_v0, %v6654_v9  ;;  %vm2482_vm11 = vweird.f32 %v8210_v7  ;;  %v1950_v17 = vpop.f32.mrf.mxu1 }
 0x2e0   :  { %8208 = vst [vmem:[#allocation14_spill] sm:$0xff] %v7309_v38  ;;  %v7316_v24 = vpop.eup %4115  ;;  %v3325_v5 = vmul.f32 %v3291_v52, %v6956_v21  ;;  %v3260_v25 = vsel %vm2036_vm6, %v3192_v18, %v3226_v60  ;;  %4119 = vrcp.f32 %v7300_v1  ;;  %v7324_v41 = vmul.f32 0.70710677, %v7309_v38  ;;  %v8215_v60 = vld [vmem:[#allocation6_spill] sm:$0xff] }
 0x2e1   :  { %8209 = vst [vmem:[#allocation11_spill] sm:$0xff] %v7316_v24  ;;  %v3294_v34 = vadd.f32 1.0, %v3260_v25  ;;  %v2919_v11 = vmul.f32 %v2885_v35, %v7248_v8  ;;  %v2820_v10 = vadd.f32 1.4214138, %v2786_v56  ;;  %vm2437_vm2 = vweird.f32 %v6544_v0  ;;  %v7328_v9 = vpop.eup %4117 }
 0x2e2   :  { %8212 = vst [vmem:[#allocation10_spill] sm:$0xff] %v7324_v41  ;;  %vm2481_vm15 = vweird.f32 %v8213_v55  ;;  %3417 = vmatmul.f32.gmra.mxu2 %v3325_v5  ;;  %v3131_v21 = vmul.f32 1.442695, %v3069_v15  ;;  %vm2051_vm6 = vcmp.ge.f32.partialorder %v7324_v41, 0.0  ;;  %v2085_v18 = vsub.f32 0.0, %v7324_v41  ;;  %vm7349_vm13 = vmor %vm2436_vm0, %vm2437_vm2 }
 0x2e3   :  { %v7333_v52 = vadd.f32 %v1950_v17, %v1883_v50  ;;  %v3328_v43 = vmul.f32 %v3294_v34, %v8215_v60  ;;  %v3072_v35 = vmul.f32 %v3038_v33, %v7274_v36  ;;  %v2953_v56 = vadd.f32 0.2548296, %v2919_v11  ;;  %vm7389_vm0 = vmor %vm2481_vm15, %vm2482_vm11 }
 0x2e4   :  { %v2854_v25 = vmul.f32 %v2820_v10, %v7288_v4  ;;  %v2667_v38 = vand.u32 2147483648, %v7300_v1  ;;  %v2119_v5 = vsel %vm2051_vm6, %v7324_v41, %v2085_v18  ;;  %v2440_v36 = vand.u32 2147483647, %v8206_v61  ;;  %v8220_v41 = vld [vmem:[#allocation16_spill] sm:$0xff] }
 0x2e5   :  { %8214 = vst [vmem:[#allocation20_spill] sm:$0xff] %v7333_v52  ;;  %v7343_v15 = vmul.f32 0.70710677, %v7333_v52  ;;  %3488 = vmatmul.f32.gmra.mxu3 %v3328_v43  ;;  %v2987_v33 = vmul.f32 %v2953_v56, %v7248_v8  ;;  %v2153_v11 = vmul.f32 0.3275911, %v2119_v5  ;;  %v2439_v10 = vsel %vm7349_vm13, %v6544_v0, %v2435_v6 }
 0x2e6   :  { %v2888_v34 = vadd.f32 -0.28449672, %v2854_v25  ;;  %v7358_v17 = vpop.eup %4119  ;;  %v2612_v18 = vmul.f32 %v7328_v9, %v7281_v40  ;;  %v8219_v52 = vand.u32 2147483648, %v8206_v61  ;;  %v3037_v25 = vsub.f32 0.0, %v2119_v5 }
 0x2e7   :  { %8216 = vst [vmem:[#allocation2_spill] sm:$0xff] %v7343_v15  ;;  %vm8057_vm8 = vcmp.ge.f32.partialorder %v7343_v15, 0.0  ;;  %v2088_v60 = vsub.f32 0.0, %v7343_v15  ;;  %v3157_v8 = vmul.f32 %v8220_v41, %v2987_v33  ;;  %vm2441_vm10 = vcmp.eq.f32.partialorder %v2440_v36, 8.507059e+37 }
 0x2e8   :  { %v2443_v43 = vor.u32 1.1754944e-38, %v8219_v52  ;;  %v2922_v56 = vmul.f32 %v2888_v34, %v7288_v4  ;;  %v7368_v50 = vadd.f32 1.0, %v2153_v11  ;;  %v2480_v24 = vadd.f32 %v8210_v7, %v8221_v54 }
 0x2e9   :  { %v7373_v0 = vsel %vm8057_vm8, %v7343_v15, %v2088_v60  ;;  %v7379_v61 = vor.u32 1.1754944e-38, %v2622_v19  ;;  %4121 = vpow2.f32 %v3131_v21  ;;  %v3191_v41 = vsub.f32 1.0, %v3157_v8 }
 0x2ea   :  { %v7375_v6 = vsel %vm2441_vm10, %v2443_v43, %v2439_v10  ;;  %v2956_v52 = vadd.f32 0.2548296, %v2922_v56  ;;  %v2657_v36 = vmul.f32 %v7358_v17, %v7300_v1  ;;  %v3137_v33 = vmul.f32 1.442695, %v3072_v35  ;;  %v8224_v43 = vld [vmem:[#allocation24_spill] sm:$0xff]  ;;  %v8230_v10 = vld [vmem:[#allocation29_spill] sm:$0xff] }
 0x2eb   :  { %v2156_v34 = vmul.f32 0.3275911, %v7373_v0  ;;  %v2485_v11 = vand.u32 2147483647, %v8213_v55  ;;  %v2613_v54 = vsub.f32 1.0, %v2612_v18  ;;  %v3225_v19 = vsub.f32 0.0, %v3191_v41 }
 0x2ec   :  { %v2990_v21 = vmul.f32 %v2956_v52, %v7288_v4  ;;  %v2717_v60 = vmul.f32 1.0614054, %v7375_v6  ;;  %vm2466_vm2 = vweird.f32 %v8224_v43  ;;  %v7396_v35 = vor.u32 1.1754944e-38, %v2667_v38  ;;  %v8227_v18 = vld [vmem:[#allocation22_spill] sm:$0xff] }
 0x2ed   :  { %4123 = vrcp.f32 %v7368_v50  ;;  %v3071_v8 = vmul.f32 %v3037_v25, %v2119_v5  ;;  %v2484_v55 = vsel %vm7389_vm0, %v8210_v7, %v2480_v24  ;;  %v3259_v15 = vsel %vm2035_vm9, %v3191_v41, %v3225_v19  ;;  %v8229_v25 = vld [vmem:[#allocation21_spill] sm:$0xff]  ;;  %v8231_v19 = vld [vmem:[#allocation7_spill] sm:$0xff] }
 0x2ee   :  { %8225 = vst [vmem:[#allocation12_spill] sm:$0xff] %v7396_v35  ;;  %v3160_v42 = vmul.f32 %v8227_v18, %v2990_v21  ;;  %v7405_v45 = vadd.f32 1.0, %v2156_v34  ;;  %v2751_v4 = vadd.f32 -1.4531521, %v2717_v60  ;;  %vm2512_vm11 = vweird.f32 %v6712_v20  ;;  %v1746_v34 = vpop.f32.mrf.mxu2 }
 0x2ef   :  { %v2658_v52 = vsub.f32 1.0, %v2657_v36  ;;  %4125 = vpow2.f32 %v3137_v33  ;;  %v3293_v38 = vadd.f32 1.0, %v3259_v15  ;;  %vm2486_vm15 = vcmp.eq.f32.partialorder %v2485_v11, 8.507059e+37  ;;  %v7408_v35 = vpop.eup %4121 }
 0x2f0   :  { %8228 = vst [vmem:[#allocation6_spill] sm:$0xff] %v7408_v35  ;;  %v7411_v5 = vmul.f32 %v7328_v9, %v2613_v54  ;;  %v3194_v24 = vsub.f32 1.0, %v3160_v42  ;;  %v2785_v7 = vmul.f32 %v2751_v4, %v7375_v6  ;;  %v7415_v41 = vsel %vm2486_vm15, %v8229_v25, %v2484_v55 }
 0x2f1   :  { %vm2511_vm9 = vweird.f32 %v8230_v10  ;;  %v3327_v21 = vmul.f32 %v3293_v38, %v8231_v19  ;;  %v2652_v36 = vand.u32 2147483648, %v7368_v50  ;;  %v3135_v15 = vmul.f32 1.442695, %v3071_v8  ;;  %v8232_v8 = vld [vmem:[#allocation30_spill] sm:$0xff]  ;;  %v1814_v19 = vpop.f32.mrf.mxu3 }
 0x2f2   :  { %v3040_v33 = vsub.f32 0.0, %v7373_v0  ;;  %v3228_v11 = vsub.f32 0.0, %v3194_v24  ;;  %4127 = vrcp.f32 %v7405_v45  ;;  %v2819_v54 = vadd.f32 1.4214138, %v2785_v7 }
 0x2f3   :  { %v2720_v42 = vmul.f32 1.0614054, %v7415_v41  ;;  %v7423_v60 = vpop.eup %4123  ;;  %vm2497_vm13 = vweird.f32 %v6823_v28  ;;  %v7427_v55 = vmul.f32 %v7358_v17, %v2658_v52  ;;  %3420 = vmatmul.f32.gmra.mxu2 %v3327_v21  ;;  %v1747_v56 = vadd.f32 %v1746_v34, %v6017_v46  ;;  %v8235_v52 = vld [vmem:[#allocation36_spill] sm:$0xff] }
 0x2f4   :  { %v2465_v18 = vadd.f32 %v8232_v8, %v6797_v44  ;;  %vm2467_vm10 = vweird.f32 %v8232_v8  ;;  %v3262_v38 = vsel %vm2038_vm3, %v3194_v24, %v3228_v11  ;;  %v2853_v7 = vmul.f32 %v2819_v54, %v7375_v6 }
 0x2f5   :  { %v2754_v25 = vadd.f32 -1.4531521, %v2720_v42  ;;  %v2470_v35 = vand.u32 2147483647, %v8224_v43  ;;  %v7437_v37 = vpop.eup %4125  ;;  %vm2496_vm0 = vweird.f32 %v8235_v52  ;;  %v3296_v21 = vadd.f32 1.0, %v3262_v38  ;;  %vm7452_vm3 = vmor %vm2466_vm2, %vm2467_vm10 }
 0x2f6   :  { %8234 = vst [vmem:[#allocation16_spill] sm:$0xff] %v7437_v37  ;;  %v7440_v46 = vor.u32 1.1754944e-38, %v2652_v36  ;;  %4129 = vpow2.f32 %v3135_v15  ;;  %v7442_v44 = vadd.f32 %v1814_v19, %v1747_v56  ;;  %v2642_v34 = vmul.f32 %v7423_v60, %v7368_v50  ;;  %v8239_v36 = vld [vmem:[#allocation8_spill] sm:$0xff] }
 0x2f7   :  { %v3074_v24 = vmul.f32 %v3040_v33, %v7373_v0  ;;  %v2887_v11 = vadd.f32 -0.28449672, %v2853_v7  ;;  %v2788_v54 = vmul.f32 %v2754_v25, %v7415_v41  ;;  %v3330_v15 = vmul.f32 %v3296_v21, %v8239_v36  ;;  %v8242_v36 = vld [vmem:[#allocation39_spill] sm:$0xff] }
 0x2f8   :  { %8236 = vst [vmem:[#allocation28_spill] sm:$0xff] %v7442_v44  ;;  %v2697_v56 = vand.u32 2147483648, %v7405_v45  ;;  %v7459_v4 = vmul.f32 0.70710677, %v7442_v44  ;;  %v2469_v0 = vsel %vm7452_vm3, %v8232_v8, %v2465_v18  ;;  %v7464_v33 = vpop.eup %4127  ;;  %vm2471_vm2 = vcmp.eq.f32.partialorder %v2470_v35, 8.507059e+37  ;;  %vm7479_vm3 = vmor %vm2511_vm9, %vm2512_vm11 }
 0x2f9   :  { %v2921_v38 = vmul.f32 %v2887_v11, %v7375_v6  ;;  %v2822_v7 = vadd.f32 1.4214138, %v2788_v54  ;;  %v8241_v25 = vand.u32 2147483648, %v8224_v43  ;;  %vm2542_vm15 = vweird.f32 %v6840_v16  ;;  %3491 = vmatmul.f32.gmra.mxu3 %v3330_v15 }
 0x2fa   :  { %8240 = vst [vmem:[#allocation24_spill] sm:$0xff] %v7459_v4  ;;  %vm2053_vm10 = vcmp.ge.f32.partialorder %v7459_v4, 0.0  ;;  %v2087_v21 = vsub.f32 0.0, %v7459_v4  ;;  %v2510_v42 = vadd.f32 %v6712_v20, %v8242_v36  ;;  %v2515_v8 = vand.u32 2147483647, %v8230_v10 }
 0x2fb   :  { %v2473_v19 = vor.u32 1.1754944e-38, %v8241_v25  ;;  %v2643_v43 = vsub.f32 1.0, %v2642_v34  ;;  %v2955_v18 = vadd.f32 0.2548296, %v2921_v38  ;;  %v2856_v11 = vmul.f32 %v2822_v7, %v7415_v41  ;;  %v8246_v25 = vld [vmem:[#allocation37_spill] sm:$0xff] }
 0x2fc   :  { %v7486_v15 = vpop.eup %4129  ;;  %vm2541_vm8 = vweird.f32 %v8246_v25  ;;  %v2687_v36 = vmul.f32 %v7464_v33, %v7405_v45  ;;  %v7494_v10 = vsel %vm2053_vm10, %v7459_v4, %v2087_v21  ;;  %v2514_v34 = vsel %vm7479_vm3, %v6712_v20, %v2510_v42  ;;  %v8252_v42 = vld [vmem:[#allocation23_spill] sm:$0xff] }
 0x2fd   :  { %v7484_v54 = vsel %vm2471_vm2, %v2473_v19, %v2469_v0  ;;  %8245 = vst [vmem:[#allocation3_spill] sm:$0xff] %v7486_v15  ;;  %v2989_v0 = vmul.f32 %v2955_v18, %v7375_v6  ;;  %v2890_v38 = vadd.f32 -0.28449672, %v2856_v11  ;;  %v2155_v7 = vmul.f32 0.3275911, %v7494_v10  ;;  %v8248_v15 = vld [vmem:[#allocation33_spill] sm:$0xff]  ;;  %vm7513_vm2 = vmor %vm2496_vm0, %vm2497_vm13 }
 0x2fe   :  { %8247 = vst [vmem:[#allocation22_spill] sm:$0xff] %v7494_v10  ;;  %v2719_v44 = vmul.f32 1.0614054, %v7484_v54  ;;  %vm2516_vm11 = vcmp.eq.f32.partialorder %v2515_v8, 8.507059e+37  ;;  %vm2527_vm9 = vweird.f32 %v6910_v49  ;;  %v2495_v21 = vadd.f32 %v6823_v28, %v6887_v27 }
 0x2ff   :  { %v7504_v37 = vsel %vm2516_vm11, %v8248_v15, %v2514_v34  ;;  %v2500_v4 = vand.u32 2147483647, %v8235_v52  ;;  %v7517_v6 = vmul.f32 1.442695, %v3074_v24  ;;  %v2924_v8 = vmul.f32 %v2890_v38, %v7415_v41  ;;  %vm7552_vm11 = vmor %vm2541_vm8, %vm2542_vm15 }
 0x300   :  { %v2753_v19 = vadd.f32 -1.4531521, %v2719_v44  ;;  %v3159_v44 = vmul.f32 %v8252_v42, %v2989_v0  ;;  %v7521_v35 = vadd.f32 1.0, %v2155_v7  ;;  %vm2526_vm3 = vweird.f32 %v6859_v58 }
 0x301   :  { %8251 = vst [vmem:[#allocation21_spill] sm:$0xff] %v7517_v6  ;;  %v2688_v27 = vsub.f32 1.0, %v2687_v36  ;;  %v2722_v11 = vmul.f32 1.0614054, %v7504_v37  ;;  %v2499_v52 = vsel %vm7513_vm2, %v6823_v28, %v2495_v21  ;;  %v2958_v24 = vadd.f32 0.2548296, %v2924_v8  ;;  %vm7580_vm8 = vmor %vm2526_vm3, %vm2527_vm9 }
 0x302   :  { %v2787_v18 = vmul.f32 %v2753_v19, %v7484_v54  ;;  %v3193_v15 = vsub.f32 1.0, %v3159_v44  ;;  %4131 = vrcp.f32 %v7521_v35  ;;  %vm2501_vm13 = vcmp.eq.f32.partialorder %v2500_v4, 8.507059e+37  ;;  %v8253_v36 = vld [vmem:[#allocation43_spill] sm:$0xff]  ;;  %v8257_v8 = vld [vmem:[#allocation25_spill] sm:$0xff] }
 0x303   :  { %v7531_v34 = vmul.f32 %v7423_v60, %v2643_v43  ;;  %v7533_v0 = vor.u32 1.1754944e-38, %v2697_v56  ;;  %v7536_v7 = vsel %vm2501_vm13, %v8253_v36, %v2499_v52  ;;  %v2992_v42 = vmul.f32 %v2958_v24, %v7415_v41  ;;  %v8258_v52 = vld [vmem:[#allocation44_spill] sm:$0xff] }
 0x304   :  { %v2821_v38 = vadd.f32 1.4214138, %v2787_v18  ;;  %v3227_v19 = vsub.f32 0.0, %v3193_v15  ;;  %v2756_v6 = vadd.f32 -1.4531521, %v2722_v11  ;;  %vm2572_vm0 = vweird.f32 %v6925_v39 }
 0x305   :  { %v2721_v28 = vmul.f32 1.0614054, %v7536_v7  ;;  %v7542_v21 = vmul.f32 %v7464_v33, %v2688_v27  ;;  %v2540_v43 = vadd.f32 %v6840_v16, %v6895_v63  ;;  %v3162_v27 = vmul.f32 %v8257_v8, %v2992_v42  ;;  %v8260_v42 = vld [vmem:[#allocation15_spill] sm:$0xff] }
 0x306   :  { %v2855_v56 = vmul.f32 %v2821_v38, %v7484_v54  ;;  %v3261_v44 = vsel %vm2037_vm12, %v3193_v15, %v3227_v19  ;;  %v2790_v18 = vmul.f32 %v2756_v6, %v7504_v37  ;;  %vm2571_vm2 = vweird.f32 %v8258_v52  ;;  %v8259_v19 = vld [vmem:[#allocation53_spill] sm:$0xff] }
 0x307   :  { %v2755_v11 = vadd.f32 -1.4531521, %v2721_v28  ;;  %v3295_v24 = vadd.f32 1.0, %v3261_v44  ;;  %v2544_v38 = vsel %vm7552_vm11, %v6840_v16, %v2540_v43  ;;  %v2545_v36 = vand.u32 2147483647, %v8246_v25  ;;  %v8265_v43 = vld [vmem:[#allocation17_spill] sm:$0xff]  ;;  %vm2573_vm11 = vmor %vm2571_vm2, %vm2572_vm0 }
 0x308   :  { %v2889_v63 = vadd.f32 -0.28449672, %v2855_v56  ;;  %v7565_v4 = vpop.eup %4131  ;;  %v3196_v10 = vsub.f32 1.0, %v3162_v27  ;;  %v2824_v20 = vadd.f32 1.4214138, %v2790_v18  ;;  %v2525_v6 = vadd.f32 %v6910_v49, %v8259_v19 }
 0x309   :  { %v2789_v15 = vmul.f32 %v2755_v11, %v7536_v7  ;;  %vm2557_vm12 = vweird.f32 %v7109_v26  ;;  %v3329_v28 = vmul.f32 %v3295_v24, %v8260_v42  ;;  %v2672_v56 = vmul.f32 %v7565_v4, %v7521_v35  ;;  %v8263_v11 = vld [vmem:[#allocation45_spill] sm:$0xff] }
 0x30a   :  { %v2923_v25 = vmul.f32 %v2889_v63, %v7484_v54  ;;  %v3230_v41 = vsub.f32 0.0, %v3196_v10  ;;  %v2858_v44 = vmul.f32 %v2824_v20, %v7504_v37  ;;  %vm2546_vm15 = vcmp.eq.f32.partialorder %v2545_v36, 8.507059e+37 }
 0x30b   :  { %v2823_v8 = vadd.f32 1.4214138, %v2789_v15  ;;  %vm2556_vm13 = vweird.f32 %v7056_v47  ;;  %3423 = vmatmul.f32.gmra.mxu2 %v3329_v28  ;;  %v2673_v27 = vsub.f32 1.0, %v2672_v56  ;;  %v7587_v24 = vsel %vm2546_vm15, %v8263_v11, %v2544_v38 }
 0x30c   :  { %v2957_v18 = vadd.f32 0.2548296, %v2923_v25  ;;  %v2529_v63 = vsel %vm7580_vm8, %v6910_v49, %v2525_v6  ;;  %v3264_v42 = vsel %vm2040_vm1, %v3196_v10, %v3230_v41  ;;  %v2892_v16 = vadd.f32 -0.28449672, %v2858_v44  ;;  %v8266_v44 = vld [vmem:[#allocation34_spill] sm:$0xff]  ;;  %vm7632_vm0 = vmor %vm2556_vm13, %vm2557_vm12 }
 0x30d   :  { %v2857_v20 = vmul.f32 %v2823_v8, %v7536_v7  ;;  %v2724_v36 = vmul.f32 1.0614054, %v7587_v24  ;;  %vm2602_vm9 = vweird.f32 %v7126_v14  ;;  %v3298_v15 = vadd.f32 1.0, %v3264_v42 }
 0x30e   :  { %v7598_v28 = vmul.f32 %v7565_v4, %v2673_v27  ;;  %v2991_v38 = vmul.f32 %v2957_v18, %v7484_v54  ;;  %v2530_v56 = vand.u32 2147483647, %v6859_v58  ;;  %v2926_v49 = vmul.f32 %v2892_v16, %v7504_v37 }
 0x30f   :  { %v2891_v6 = vadd.f32 -0.28449672, %v2857_v20  ;;  %v2758_v25 = vadd.f32 -1.4531521, %v2724_v36  ;;  %v2570_v10 = vadd.f32 %v6925_v39, %v7048_v3  ;;  %vm2601_vm1 = vweird.f32 %v7075_v32  ;;  %v8267_v3 = vld [vmem:[#allocation50_spill] sm:$0xff] }
 0x310   :  { %v3332_v41 = vmul.f32 %v3298_v15, %v8265_v43  ;;  %v3161_v8 = vmul.f32 %v8266_v44, %v2991_v38  ;;  %vm2531_vm3 = vcmp.eq.f32.partialorder %v2530_v56, 8.507059e+37  ;;  %v2575_v27 = vand.u32 2147483647, %v8258_v52  ;;  %v8268_v15 = vld [vmem:[#allocation51_spill] sm:$0xff]  ;;  %v8272_v44 = vld [vmem:[#allocation13_spill] sm:$0xff] }
 0x311   :  { %v2960_v58 = vadd.f32 0.2548296, %v2926_v49  ;;  %v2925_v54 = vmul.f32 %v2891_v6, %v7536_v7  ;;  %v2792_v16 = vmul.f32 %v2758_v25, %v7587_v24  ;;  %v7616_v18 = vsel %vm2531_vm3, %v8267_v3, %v2529_v63  ;;  %v8274_v3 = vld [vmem:[#allocation46_spill] sm:$0xff] }
 0x312   :  { %3494 = vmatmul.f32.gmra.mxu3 %v3332_v41  ;;  %v3195_v11 = vsub.f32 1.0, %v3161_v8  ;;  %v2723_v19 = vmul.f32 1.0614054, %v7616_v18  ;;  %v2574_v42 = vsel %vm2573_vm11, %v6925_v39, %v2570_v10  ;;  %vm2576_vm8 = vcmp.eq.f32.partialorder %v2575_v27, 8.507059e+37  ;;  %vm7656_vm11 = vmor %vm2601_vm1, %vm2602_vm9  ;;  %v8278_v39 = vld [vmem:[#allocation19_spill] sm:$0xff] }
 0x313   :  { %vm2587_vm15 = vweird.f32 %v7196_v12  ;;  %v2994_v52 = vmul.f32 %v2960_v58, %v7504_v37  ;;  %v2959_v20 = vadd.f32 0.2548296, %v2925_v54  ;;  %v2826_v36 = vadd.f32 1.4214138, %v2792_v16  ;;  %v8271_v37 = vld [vmem:[#allocation35_spill] sm:$0xff] }
 0x314   :  { %v7623_v38 = vsel %vm2576_vm8, %v8268_v15, %v2574_v42  ;;  %v3229_v56 = vsub.f32 0.0, %v3195_v11  ;;  %v2757_v49 = vadd.f32 -1.4531521, %v2723_v19  ;;  %v2555_v6 = vadd.f32 %v7109_v26, %v7207_v31 }
 0x315   :  { %v2726_v63 = vmul.f32 1.0614054, %v7623_v38  ;;  %vm2586_vm2 = vweird.f32 %v7134_v57  ;;  %v3164_v25 = vmul.f32 %v8271_v37, %v2994_v52  ;;  %v2993_v10 = vmul.f32 %v2959_v20, %v7536_v7  ;;  %v8277_v52 = vld [vmem:[#allocation26_spill] sm:$0xff] }
 0x316   :  { %v2860_v43 = vmul.f32 %v2826_v36, %v7587_v24  ;;  %v2560_v41 = vand.u32 2147483647, %v7056_v47  ;;  %vm8273_vm3 = vcmp.ge.f32.partialorder %v8272_v44, 0.0  ;;  %v2791_v8 = vmul.f32 %v2757_v49, %v7616_v18 }
 0x317   :  { %v3263_v31 = vsel %vm8273_vm3, %v3195_v11, %v3229_v56  ;;  %v2760_v27 = vadd.f32 -1.4531521, %v2726_v63  ;;  %v2559_v58 = vsel %vm7632_vm0, %v7109_v26, %v2555_v6  ;;  %vm2632_vm12 = vweird.f32 %v7203_v29  ;;  %vm7685_vm0 = vmor %vm2586_vm2, %vm2587_vm15  ;;  %v8285_v26 = vld [vmem:[#allocation40_spill] sm:$0xff] }
 0x318   :  { %v3297_v54 = vadd.f32 1.0, %v3263_v31  ;;  %v3198_v16 = vsub.f32 1.0, %v3164_v25  ;;  %v3163_v7 = vmul.f32 %v8274_v3, %v2993_v10  ;;  %v2894_v19 = vadd.f32 -0.28449672, %v2860_v43 }
 0x319   :  { %v2825_v42 = vadd.f32 1.4214138, %v2791_v8  ;;  %v2794_v47 = vmul.f32 %v2760_v27, %v7623_v38  ;;  %vm2561_vm13 = vcmp.eq.f32.partialorder %v2560_v41, 8.507059e+37  ;;  %v2600_v11 = vadd.f32 %v7126_v14, %v7255_v30 }
 0x31a   :  { %vm2631_vm8 = vweird.f32 %v7144_v59  ;;  %v3331_v20 = vmul.f32 %v3297_v54, %v8277_v52  ;;  %v3232_v36 = vsub.f32 0.0, %v3198_v16  ;;  %v3197_v15 = vsub.f32 1.0, %v3163_v7 }
 0x31b   :  { %v2928_v56 = vmul.f32 %v2894_v19, %v7587_v24  ;;  %v2859_v49 = vmul.f32 %v2825_v42, %v7616_v18  ;;  %v2828_v63 = vadd.f32 1.4214138, %v2794_v47  ;;  %v7665_v30 = vsel %vm2561_vm13, %v7122_v22, %v2559_v58  ;;  %vm7709_vm15 = vmor %vm2631_vm8, %vm2632_vm12 }
 0x31c   :  { %v2604_v6 = vsel %vm7656_vm11, %v7126_v14, %v2600_v11  ;;  %3426 = vmatmul.f32.gmra.mxu2 %v3331_v20  ;;  %vm8279_vm9 = vcmp.ge.f32.partialorder %v8278_v39, 0.0  ;;  %v3231_v25 = vsub.f32 0.0, %v3197_v15  ;;  %v2725_v43 = vmul.f32 1.0614054, %v7665_v30 }
 0x31d   :  { %v3266_v37 = vsel %vm8279_vm9, %v3198_v16, %v3232_v36  ;;  %v2962_v10 = vadd.f32 0.2548296, %v2928_v56  ;;  %v2893_v44 = vadd.f32 -0.28449672, %v2859_v49  ;;  %v2862_v31 = vmul.f32 %v2828_v63, %v7623_v38 }
 0x31e   :  { %v3300_v41 = vadd.f32 1.0, %v3266_v37  ;;  %v2605_v8 = vand.u32 2147483647, %v7075_v32  ;;  %vm2617_vm1 = vweird.f32 %v7328_v9  ;;  %v3265_v27 = vsel %vm2041_vm5, %v3197_v15, %v3231_v25  ;;  %v8283_v32 = vld [vmem:[#allocation27_spill] sm:$0xff] }
 0x31f   :  { %v2996_v14 = vmul.f32 %v2962_v10, %v7587_v24  ;;  %v2759_v58 = vadd.f32 -1.4531521, %v2725_v43  ;;  %v2585_v54 = vadd.f32 %v7196_v12, %v7291_v13  ;;  %v3299_v7 = vadd.f32 1.0, %v3265_v27  ;;  %v8284_v24 = vld [vmem:[#allocation49_spill] sm:$0xff] }
 0x320   :  { %v3334_v3 = vmul.f32 %v3300_v41, %v8283_v32  ;;  %v2927_v19 = vmul.f32 %v2893_v44, %v7616_v18  ;;  %v2896_v42 = vadd.f32 -0.28449672, %v2862_v31  ;;  %vm2616_vm5 = vweird.f32 %v7281_v40  ;;  %v8288_v44 = vld [vmem:[#allocation52_spill] sm:$0xff] }
 0x321   :  { %v3166_v47 = vmul.f32 %v8284_v24, %v2996_v14  ;;  %v2793_v13 = vmul.f32 %v2759_v58, %v7665_v30  ;;  %vm2606_vm3 = vcmp.eq.f32.partialorder %v2605_v8, 8.507059e+37  ;;  %v2589_v11 = vsel %vm7685_vm0, %v7196_v12, %v2585_v54  ;;  %v8290_v58 = vld [vmem:[#allocation54_spill] sm:$0xff] }
 0x322   :  { %3497 = vmatmul.f32.gmra.mxu3 %v3334_v3  ;;  %v3333_v52 = vmul.f32 %v3299_v7, %v8285_v26  ;;  %v2961_v20 = vadd.f32 0.2548296, %v2927_v19  ;;  %v2930_v36 = vmul.f32 %v2896_v42, %v7623_v38  ;;  %v7700_v15 = vsel %vm2606_vm3, %v7155_v53, %v2604_v6  ;;  %v8293_v19 = vld [vmem:[#allocation42_spill] sm:$0xff] }
 0x323   :  { %v3200_v56 = vsub.f32 1.0, %v3166_v47  ;;  %v2827_v49 = vadd.f32 1.4214138, %v2793_v13  ;;  %v2728_v63 = vmul.f32 1.0614054, %v7700_v15  ;;  %v2630_v39 = vadd.f32 %v7203_v29, %v7294_v62 }
 0x324   :  { %vm2662_vm2 = vweird.f32 %v7358_v17  ;;  %v2995_v53 = vmul.f32 %v2961_v20, %v7616_v18  ;;  %v2964_v6 = vadd.f32 0.2548296, %v2930_v36  ;;  %v2590_v37 = vand.u32 2147483647, %v7134_v57  ;;  %3429 = vmatmul.f32.gmra.mxu2 %v3333_v52  ;;  %v8294_v52 = vld [vmem:[#allocation38_spill] sm:$0xff]  ;;  %v8301_v57 = vld [vmem:[#allocation48_spill] sm:$0xff] }
 0x325   :  { %v2635_v25 = vand.u32 2147483647, %v7144_v59  ;;  %v3234_v10 = vsub.f32 0.0, %v3200_v56  ;;  %v2861_v62 = vmul.f32 %v2827_v49, %v7665_v30  ;;  %v2762_v43 = vadd.f32 -1.4531521, %v2728_v63 }
 0x326   :  { %v2634_v41 = vsel %vm7709_vm15, %v7203_v29, %v2630_v39  ;;  %vm2661_vm12 = vweird.f32 %v7300_v1  ;;  %v3165_v31 = vmul.f32 %v8288_v44, %v2995_v53  ;;  %v2998_v18 = vmul.f32 %v2964_v6, %v7623_v38  ;;  %v8296_v6 = vld [vmem:[#allocation41_spill] sm:$0xff] }
 0x327   :  { %vm2591_vm13 = vcmp.eq.f32.partialorder %v2590_v37, 8.507059e+37  ;;  %vm2636_vm11 = vcmp.eq.f32.partialorder %v2635_v25, 8.507059e+37  ;;  %v3268_v59 = vsel %vm2044_vm7, %v3200_v56, %v3234_v10  ;;  %v2895_v8 = vadd.f32 -0.28449672, %v2861_v62  ;;  %vm7743_vm7 = vmor %vm2616_vm5, %vm2617_vm1 }
 0x328   :  { %v2796_v22 = vmul.f32 %v2762_v43, %v7700_v15  ;;  %v7728_v27 = vsel %vm2591_vm13, %v7257_v23, %v2589_v11  ;;  %vm2647_vm8 = vweird.f32 %v7423_v60  ;;  %v3302_v29 = vadd.f32 1.0, %v3268_v59  ;;  %vm7767_vm3 = vmor %vm2661_vm12, %vm2662_vm2 }
 0x329   :  { %v3199_v14 = vsub.f32 1.0, %v3165_v31  ;;  %v3168_v54 = vmul.f32 %v8290_v58, %v2998_v18  ;;  %v2727_v16 = vmul.f32 1.0614054, %v7728_v27  ;;  %v2929_v38 = vmul.f32 %v2895_v8, %v7665_v30 }
 0x32a   :  { %v2830_v32 = vadd.f32 1.4214138, %v2796_v22  ;;  %v7735_v3 = vsel %vm2636_vm11, %v7284_v48, %v2634_v41  ;;  %v2615_v7 = vadd.f32 %v7328_v9, %v7411_v5  ;;  %vm2646_vm9 = vweird.f32 %v7368_v50 }
 0x32b   :  { %v3336_v42 = vmul.f32 %v3302_v29, %v8293_v19  ;;  %v3233_v24 = vsub.f32 0.0, %v3199_v14  ;;  %v3202_v47 = vsub.f32 1.0, %v3168_v54  ;;  %v2761_v13 = vadd.f32 -1.4531521, %v2727_v16  ;;  %vm7793_vm12 = vmor %vm2646_vm9, %vm2647_vm8  ;;  %v8305_v19 = vld [vmem:[#allocation62_spill] sm:$0xff] }
 0x32c   :  { %v2963_v48 = vadd.f32 0.2548296, %v2929_v38  ;;  %v2864_v11 = vmul.f32 %v2830_v32, %v7700_v15  ;;  %v2730_v5 = vmul.f32 1.0614054, %v7735_v3  ;;  %v2619_v26 = vsel %vm7743_vm7, %v7328_v9, %v2615_v7 }
 0x32d   :  { %3500 = vmatmul.f32.gmra.mxu3 %v3336_v42  ;;  %vm8295_vm1 = vcmp.ge.f32.partialorder %v8294_v52, 0.0  ;;  %v3236_v36 = vsub.f32 0.0, %v3202_v47  ;;  %v2795_v56 = vmul.f32 %v2761_v13, %v7728_v27  ;;  %v2620_v49 = vand.u32 2147483647, %v7281_v40  ;;  %v8300_v40 = vld [vmem:[#allocation47_spill] sm:$0xff] }
 0x32e   :  { %v3267_v20 = vsel %vm8295_vm1, %v3199_v14, %v3233_v24  ;;  %v2997_v39 = vmul.f32 %v2963_v48, %v7665_v30  ;;  %v2898_v12 = vadd.f32 -0.28449672, %v2864_v11  ;;  %v2764_v53 = vadd.f32 -1.4531521, %v2730_v5 }
 0x32f   :  { %v3301_v63 = vadd.f32 1.0, %v3267_v20  ;;  %vm8297_vm0 = vcmp.ge.f32.partialorder %v8296_v6, 0.0  ;;  %v2829_v25 = vadd.f32 1.4214138, %v2795_v56  ;;  %vm2621_vm5 = vcmp.eq.f32.partialorder %v2620_v49, 8.507059e+37 }
 0x330   :  { %v3270_v37 = vsel %vm8297_vm0, %v3202_v47, %v3236_v36  ;;  %v2660_v9 = vadd.f32 %v7358_v17, %v7427_v55  ;;  %vm2692_vm15 = vweird.f32 %v7464_v33  ;;  %v3167_v43 = vmul.f32 %v7182_v2, %v2997_v39 }
 0x331   :  { %v3335_v30 = vmul.f32 %v3301_v63, %v8300_v40  ;;  %v3304_v62 = vadd.f32 1.0, %v3270_v37  ;;  %v2932_v41 = vmul.f32 %v2898_v12, %v7700_v15  ;;  %v2863_v44 = vmul.f32 %v2829_v25, %v7728_v27 }
 0x332   :  { %v2798_v55 = vmul.f32 %v2764_v53, %v7735_v3  ;;  %v7778_v31 = vsel %vm2621_vm5, %v7379_v61, %v2619_v26  ;;  %v2664_v18 = vsel %vm7767_vm3, %v7358_v17, %v2660_v9  ;;  %vm2691_vm2 = vweird.f32 %v7405_v45  ;;  %v8311_v9 = vld [vmem:[#allocation55_spill] sm:$0xff]  ;;  %v8317_v17 = vld [vmem:[#allocation57_spill] sm:$0xff] }
 0x333   :  { %3432 = vmatmul.f32.gmra.mxu2 %v3335_v30  ;;  %v3338_v59 = vmul.f32 %v3304_v62, %v8301_v57  ;;  %v3201_v8 = vsub.f32 1.0, %v3167_v43  ;;  %v2966_v2 = vadd.f32 0.2548296, %v2932_v41  ;;  %v2729_v22 = vmul.f32 1.0614054, %v7778_v31  ;;  %vm7828_vm1 = vmor %vm2691_vm2, %vm2692_vm15  ;;  %v8330_v57 = vld [vmem:[#allocation16_spill] sm:$0xff] }
 0x334   :  { %v2897_v29 = vadd.f32 -0.28449672, %v2863_v44  ;;  %v2832_v14 = vadd.f32 1.4214138, %v2798_v55  ;;  %v2665_v58 = vand.u32 2147483647, %v7300_v1  ;;  %v2645_v61 = vadd.f32 %v7423_v60, %v7531_v34 }
 0x335   :  { %vm2677_vm13 = vweird.f32 %v7565_v4  ;;  %v3235_v54 = vsub.f32 0.0, %v3201_v8  ;;  %v3000_v16 = vmul.f32 %v2966_v2, %v7700_v15  ;;  %v2763_v38 = vadd.f32 -1.4531521, %v2729_v22  ;;  %3503 = vmatmul.f32.gmra.mxu3 %v3338_v59 }
 0x336   :  { %v2650_v32 = vand.u32 2147483647, %v7368_v50  ;;  %v2931_v1 = vmul.f32 %v2897_v29, %v7728_v27  ;;  %v2866_v34 = vmul.f32 %v2832_v14, %v7735_v3  ;;  %vm2666_vm11 = vcmp.eq.f32.partialorder %v2665_v58, 8.507059e+37  ;;  %v8306_v50 = vld [vmem:[#allocation12_spill] sm:$0xff]  ;;  %v3468_v29 = vpop.f32.mrf.mxu3 }
 0x337   :  { %v2649_v7 = vsel %vm7793_vm12, %v7423_v60, %v2645_v61  ;;  %vm2676_vm8 = vweird.f32 %v7521_v35  ;;  %vm8304_vm7 = vcmp.ge.f32.partialorder %v6983_v51, 0.0  ;;  %v3170_v15 = vmul.f32 %v8305_v19, %v3000_v16  ;;  %v8307_v51 = vld [vmem:[#allocation56_spill] sm:$0xff] }
 0x338   :  { %v3269_v23 = vsel %vm8304_vm7, %v3201_v8, %v3235_v54  ;;  %v2797_v42 = vmul.f32 %v2763_v38, %v7778_v31  ;;  %v7811_v24 = vsel %vm2666_vm11, %v8306_v50, %v2664_v18  ;;  %v2965_v13 = vadd.f32 0.2548296, %v2931_v1  ;;  %vm7849_vm3 = vmor %vm2676_vm8, %vm2677_vm13  ;;  %v8316_v8 = vld [vmem:[#allocation11_spill] sm:$0xff]  ;;  %v3400_v50 = vpop.f32.mrf.mxu2 }
 0x339   :  { %v3303_v47 = vadd.f32 1.0, %v3269_v23  ;;  %v2900_v48 = vadd.f32 -0.28449672, %v2866_v34  ;;  %vm2651_vm9 = vcmp.eq.f32.partialorder %v2650_v32, 8.507059e+37  ;;  %v3204_v11 = vsub.f32 1.0, %v3170_v15 }
 0x33a   :  { %v2831_v5 = vadd.f32 1.4214138, %v2797_v42  ;;  %v2732_v60 = vmul.f32 1.0614054, %v7811_v24  ;;  %v7815_v26 = vsel %vm2651_vm9, %v7440_v46, %v2649_v7  ;;  %v2999_v20 = vmul.f32 %v2965_v13, %v7728_v27  ;;  %v8310_v27 = vld [vmem:[#allocation18_spill] sm:$0xff] }
 0x33b   :  { %v3337_v52 = vmul.f32 %v3303_v47, %v8307_v51  ;;  %v2934_v36 = vmul.f32 %v2900_v48, %v7735_v3  ;;  %v2731_v56 = vmul.f32 1.0614054, %v7815_v26  ;;  %v3238_v49 = vsub.f32 0.0, %v3204_v11  ;;  %v8320_v47 = vld [vmem:[#allocation60_spill] sm:$0xff]  ;;  %v8321_v48 = vld [vmem:[#allocation6_spill] sm:$0xff] }
 0x33c   :  { %v2865_v63 = vmul.f32 %v2831_v5, %v7778_v31  ;;  %v2766_v39 = vadd.f32 -1.4531521, %v2732_v60  ;;  %v2690_v12 = vadd.f32 %v7464_v33, %v7542_v21  ;;  %v3169_v53 = vmul.f32 %v8310_v27, %v2999_v20  ;;  %v8322_v60 = vld [vmem:[#allocation58_spill] sm:$0xff] }
 0x33d   :  { %3435 = vmatmul.f32.gmra.mxu2 %v3337_v52  ;;  %v2968_v6 = vadd.f32 0.2548296, %v2934_v36  ;;  %v2765_v37 = vadd.f32 -1.4531521, %v2731_v56  ;;  %v2695_v25 = vand.u32 2147483647, %v7405_v45  ;;  %v2675_v45 = vadd.f32 %v7565_v4, %v7598_v28 }
 0x33e   :  { %vm8312_vm0 = vcmp.ge.f32.partialorder %v8311_v9, 0.0  ;;  %v2899_v40 = vadd.f32 -0.28449672, %v2865_v63  ;;  %v2800_v21 = vmul.f32 %v2766_v39, %v7811_v24  ;;  %v2694_v30 = vsel %vm7828_vm1, %v7464_v33, %v2690_v12  ;;  %v8315_v33 = vld [vmem:[#allocation59_spill] sm:$0xff]  ;;  %v8324_v39 = vld [vmem:[#allocation22_spill] sm:$0xff] }
 0x33f   :  { %v3272_v10 = vsel %vm8312_vm0, %v3204_v11, %v3238_v49  ;;  %v3203_v43 = vsub.f32 1.0, %v3169_v53  ;;  %v3002_v41 = vmul.f32 %v2968_v6, %v7735_v3  ;;  %v2799_v44 = vmul.f32 %v2765_v37, %v7815_v26  ;;  %v8326_v37 = vld [vmem:[#allocation65_spill] sm:$0xff] }
 0x340   :  { %v3306_v62 = vadd.f32 1.0, %v3272_v10  ;;  %v2933_v55 = vmul.f32 %v2899_v40, %v7778_v31  ;;  %v2834_v18 = vadd.f32 1.4214138, %v2800_v21  ;;  %vm2696_vm5 = vcmp.eq.f32.partialorder %v2695_v25, 8.507059e+37  ;;  %v8327_v21 = vld [vmem:[#allocation61_spill] sm:$0xff] }
 0x341   :  { %v3237_v3 = vsub.f32 0.0, %v3203_v43  ;;  %v3172_v2 = vmul.f32 %v8316_v8, %v3002_v41  ;;  %v2833_v22 = vadd.f32 1.4214138, %v2799_v44  ;;  %v7857_v28 = vsel %vm2696_vm5, %v7533_v0, %v2694_v30  ;;  %v3471_v44 = vpop.f32.mrf.mxu3 }
 0x342   :  { %v3340_v59 = vmul.f32 %v3306_v62, %v8315_v33  ;;  %v2967_v14 = vadd.f32 0.2548296, %v2933_v55  ;;  %v2868_v58 = vmul.f32 %v2834_v18, %v7811_v24  ;;  %v2679_v61 = vsel %vm7849_vm3, %v7565_v4, %v2675_v45  ;;  %v8328_v55 = vld [vmem:[#allocation21_spill] sm:$0xff] }
 0x343   :  { %vm8318_vm15 = vcmp.ge.f32.partialorder %v8317_v17, 0.0  ;;  %v3206_v16 = vsub.f32 1.0, %v3172_v2  ;;  %v2867_v38 = vmul.f32 %v2833_v22, %v7815_v26  ;;  %v2734_v32 = vmul.f32 1.0614054, %v7857_v28 }
 0x344   :  { %3506 = vmatmul.f32.gmra.mxu3 %v3340_v59  ;;  %v3271_v54 = vsel %vm8318_vm15, %v3203_v43, %v3237_v3  ;;  %v3001_v34 = vmul.f32 %v2967_v14, %v7778_v31  ;;  %v2902_v7 = vadd.f32 -0.28449672, %v2868_v58  ;;  %v2680_v0 = vand.u32 2147483647, %v7521_v35  ;;  %v7876_v31 = vld [vmem:[%s8007_s6] ss:$0 sm:$0xff] }
 0x345   :  { %v3305_v1 = vadd.f32 1.0, %v3271_v54  ;;  %v8319_v23 = vand.u32 2147483648, %v7521_v35  ;;  %v3240_v15 = vsub.f32 0.0, %v3206_v16  ;;  %v2901_v4 = vadd.f32 -0.28449672, %v2867_v38  ;;  %v8331_v3 = vld [vmem:[#allocation3_spill] sm:$0xff] }
 0x346   :  { %v2768_v42 = vadd.f32 -1.4531521, %v2734_v32  ;;  %v3171_v11 = vmul.f32 %v8321_v48, %v3001_v34  ;;  %v2936_v5 = vmul.f32 %v2902_v7, %v7811_v24  ;;  %vm2681_vm2 = vcmp.eq.f32.partialorder %v2680_v0, 8.507059e+37 }
 0x347   :  { %v2683_v19 = vor.u32 1.1754944e-38, %v8319_v23  ;;  %v3339_v13 = vmul.f32 %v3305_v1, %v8320_v47  ;;  %vm8323_vm12 = vcmp.ge.f32.partialorder %v8322_v60, 0.0  ;;  %v2935_v51 = vmul.f32 %v2901_v4, %v7815_v26 }
 0x348   :  { %v3274_v35 = vsel %vm8323_vm12, %v3206_v16, %v3240_v15  ;;  %v2802_v52 = vmul.f32 %v2768_v42, %v7857_v28  ;;  %v3205_v56 = vsub.f32 1.0, %v3171_v11  ;;  %v2970_v49 = vadd.f32 0.2548296, %v2936_v5 }
 0x349   :  { %v7882_v20 = vsel %vm2681_vm2, %v2683_v19, %v2679_v61  ;;  %3438 = vmatmul.f32.gmra.mxu2 %v3339_v13  ;;  %v3308_v36 = vadd.f32 1.0, %v3274_v35  ;;  %v8325_v12 = vsub.f32 0.0, %v8324_v39  ;;  %v2969_v27 = vadd.f32 0.2548296, %v2935_v51  ;;  %v8332_v19 = vld [vmem:[#allocation64_spill] sm:$0xff]  ;;  %v3474_v60 = vpop.f32.mrf.mxu3  ;;  %v8335_v35 = vld [vmem:[#allocation14_spill] sm:$0xff] }
 0x34a   :  { %v2733_v63 = vmul.f32 1.0614054, %v7882_v20  ;;  %v2836_v53 = vadd.f32 1.4214138, %v2802_v52  ;;  %v3401_v6 = vadd.f32 %v7876_v31, %v3400_v50  ;;  %v3239_v9 = vsub.f32 0.0, %v3205_v56 }
 0x34b   :  { %v3073_v46 = vmul.f32 %v8325_v12, %v8324_v39  ;;  %v3342_v25 = vmul.f32 %v3308_v36, %v8326_v37  ;;  %v3004_v10 = vmul.f32 %v2970_v49, %v7811_v24  ;;  %v1981_v30 = vmul.f32 0.5, %v8327_v21  ;;  %v8336_v21 = vld [vmem:[#allocation2_spill] sm:$0xff] }
 0x34c   :  { %v2767_v40 = vadd.f32 -1.4531521, %v2733_v63  ;;  %v3003_v62 = vmul.f32 %v2969_v27, %v7815_v26  ;;  %v2870_v43 = vmul.f32 %v2836_v53, %v7857_v28  ;;  %v3469_v41 = vadd.f32 %v3468_v29, %v3401_v6  ;;  %v3403_v26 = vpop.f32.mrf.mxu2 }
 0x34d   :  { %4133 = vpow2.f32 %v8328_v55  ;;  %3509 = vmatmul.f32.gmra.mxu3 %v3342_v25  ;;  %v3273_v45 = vsel %vm2049_vm4, %v3205_v56, %v3239_v9  ;;  %v3174_v33 = vmul.f32 %v8330_v57, %v3004_v10  ;;  %v3139_v14 = vmul.f32 1.442695, %v3073_v46 }
 0x34e   :  { %v2801_v59 = vmul.f32 %v2767_v40, %v7882_v20  ;;  %v3307_v24 = vadd.f32 1.0, %v3273_v45  ;;  %v3173_v8 = vmul.f32 %v8331_v3, %v3003_v62  ;;  %v2904_v2 = vadd.f32 -0.28449672, %v2870_v43 }
 0x34f   :  { %v3519_v22 = vsub.f32 0.0, %v3469_v41  ;;  %v3208_v58 = vsub.f32 1.0, %v3174_v33  ;;  %v3404_v61 = vadd.f32 %v7876_v31, %v3403_v26  ;;  %v1984_v15 = vmul.f32 0.5, %v8332_v19 }
 0x350   :  { %v2835_v29 = vadd.f32 1.4214138, %v2801_v59  ;;  %v3341_v17 = vmul.f32 %v3307_v24, %v1981_v30  ;;  %v3207_v54 = vsub.f32 1.0, %v3173_v8  ;;  %v2938_v16 = vmul.f32 %v2904_v2, %v7857_v28 }
 0x351   :  { %v3536_v38 = vmul.f32 1.442695, %v3519_v22  ;;  %v3242_v32 = vsub.f32 0.0, %v3208_v58  ;;  %v3472_v34 = vadd.f32 %v3471_v44, %v3404_v61  ;;  %v1983_v51 = vmul.f32 0.5, %v8335_v35  ;;  %v3477_v43 = vpop.f32.mrf.mxu3  ;;  %v8338_v44 = vld [vmem:[#allocation20_spill] sm:$0xff] }
 0x352   :  { %v2869_v1 = vmul.f32 %v2835_v29, %v7882_v20  ;;  %3441 = vmatmul.f32.gmra.mxu2 %v3341_v17  ;;  %v3241_v7 = vsub.f32 0.0, %v3207_v54  ;;  %v2972_v0 = vadd.f32 0.2548296, %v2938_v16  ;;  %vm8337_vm4 = vcmp.ge.f32.partialorder %v8336_v21, 0.0 }
 0x353   :  { %4135 = vpow2.f32 %v3536_v38  ;;  %v4134_v23 = vpop.eup %4133  ;;  %v3276_v42 = vsel %vm2052_vm14, %v3208_v58, %v3242_v32  ;;  %v3520_v47 = vsub.f32 0.0, %v3472_v34  ;;  %v1986_v55 = vmul.f32 0.5, %v8338_v44 }
 0x354   :  { %v2903_v50 = vadd.f32 -0.28449672, %v2869_v1  ;;  %4137 = vpow2.f32 %v3139_v14  ;;  %v3310_v13 = vadd.f32 1.0, %v3276_v42  ;;  %v3275_v11 = vsel %vm2051_vm6, %v3207_v54, %v3241_v7  ;;  %v3406_v39 = vpop.f32.mrf.mxu2  ;;  %v8340_v14 = vld [vmem:[#allocation28_spill] sm:$0xff] }
 0x355   :  { %v3006_v5 = vmul.f32 %v2972_v0, %v7857_v28  ;;  %v3309_v52 = vadd.f32 1.0, %v3275_v11  ;;  %v3538_v56 = vmul.f32 1.442695, %v3520_v47  ;;  %v3407_v27 = vadd.f32 %v7876_v31, %v3406_v39 }
 0x356   :  { %v2937_v36 = vmul.f32 %v2903_v50, %v7882_v20  ;;  %v3344_v49 = vmul.f32 %v3310_v13, %v1984_v15  ;;  %v1985_v58 = vmul.f32 0.5, %v8340_v14 }
 0x357   :  { %v3176_v63 = vmul.f32 %v4134_v23, %v3006_v5  ;;  %v3343_v12 = vmul.f32 %v3309_v52, %v1983_v51  ;;  %4139 = vpow2.f32 %v3538_v56  ;;  %v3475_v25 = vadd.f32 %v3474_v60, %v3407_v27 }
 0x358   :  { %v2971_v46 = vadd.f32 0.2548296, %v2937_v36  ;;  %3512 = vmatmul.f32.gmra.mxu3 %v3344_v49 }
 0x359   :  { %v4136_v53 = vpop.eup %4135  ;;  %v3210_v6 = vsub.f32 1.0, %v3176_v63  ;;  %v3521_v62 = vsub.f32 0.0, %v3475_v25  ;;  %v3480_v38 = vpop.f32.mrf.mxu3 }
 0x35a   :  { %v3005_v28 = vmul.f32 %v2971_v46, %v7882_v20  ;;  %v3570_v37 = vadd.f32 1.0, %v4136_v53  ;;  %v4138_v9 = vpop.eup %4137  ;;  %3444 = vmatmul.f32.gmra.mxu2 %v3343_v12 }
 0x35b   :  { %v3244_v10 = vsub.f32 0.0, %v3210_v6  ;;  %v3540_v33 = vmul.f32 1.442695, %v3521_v62 }
 0x35c   :  { %v3175_v40 = vmul.f32 %v4138_v9, %v3005_v28  ;;  %4141 = vrcp.f32 %v3570_v37  ;;  %v3409_v20 = vpop.f32.mrf.mxu2  ;;  %v3596_v32 = vand.u32 2147483647, %v3570_v37  ;;  %v3598_v1 = vand.u32 2147483648, %v3570_v37 }
 0x35d   :  { %v3278_v30 = vsel %vm8337_vm4, %v3210_v6, %v3244_v10  ;;  %v4140_v41 = vpop.eup %4139  ;;  %v3410_v3 = vadd.f32 %v7876_v31, %v3409_v20  ;;  %vm3592_vm6 = vweird.f32 %v3570_v37 }
 0x35e   :  { %v3312_v18 = vadd.f32 1.0, %v3278_v30  ;;  %v3209_v45 = vsub.f32 1.0, %v3175_v40  ;;  %v3571_v57 = vadd.f32 1.0, %v4140_v41  ;;  %vm3597_vm11 = vcmp.eq.f32.partialorder %v3596_v32, 8.507059e+37 }
 0x35f   :  { %v3478_v26 = vadd.f32 %v3477_v43, %v3410_v3  ;;  %v3599_v47 = vor.u32 1.1754944e-38, %v3598_v1 }
 0x360   :  { %v3346_v59 = vmul.f32 %v3312_v18, %v1986_v55  ;;  %v3243_v24 = vsub.f32 0.0, %v3209_v45  ;;  %4143 = vrcp.f32 %v3571_v57  ;;  %v3611_v5 = vand.u32 2147483647, %v3571_v57 }
 0x361   :  { %4145 = vpow2.f32 %v3540_v33  ;;  %v3522_v17 = vsub.f32 0.0, %v3478_v26  ;;  %v3613_v60 = vand.u32 2147483648, %v3571_v57  ;;  %vm3607_vm7 = vweird.f32 %v3571_v57  ;;  %v3483_v12 = vpop.f32.mrf.mxu3 }
 0x362   :  { %v4142_v8 = vpop.eup %4141  ;;  %3515 = vmatmul.f32.gmra.mxu3 %v3346_v59  ;;  %v3277_v22 = vsel %vm2053_vm10, %v3209_v45, %v3243_v24  ;;  %vm3842_vm10 = vcmask 97280   ;;  %vm3612_vm1 = vcmp.eq.f32.partialorder %v3611_v5, 8.507059e+37 }
 0x363   :  { %v3311_v29 = vadd.f32 1.0, %v3277_v22  ;;  %v3588_v61 = vmul.f32 %v4142_v8, %v3570_v37  ;;  %v3542_v34 = vmul.f32 1.442695, %v3522_v17  ;;  %vm3593_vm14 = vweird.f32 %v4142_v8 }
 0x364   :  { %v3412_v23 = vpop.f32.mrf.mxu2  ;;  %vm3594_vm13 = vmor %vm3592_vm6, %vm3593_vm14  ;;  %v3614_v63 = vor.u32 1.1754944e-38, %v3613_v60 }
 0x365   :  { %v3345_v54 = vmul.f32 %v3311_v29, %v1985_v58  ;;  %v3589_v16 = vsub.f32 1.0, %v3588_v61  ;;  %4147 = vpow2.f32 %v3542_v34  ;;  %v3413_v4 = vadd.f32 %v7876_v31, %v3412_v23 }
 0x366   :  { %v4144_v7 = vpop.eup %4143 }
 0x367   :  { %3447 = vmatmul.f32.gmra.mxu2 %v3345_v54  ;;  %v3590_v0 = vmul.f32 %v4142_v8, %v3589_v16  ;;  %v4146_v19 = vpop.eup %4145  ;;  %v3603_v15 = vmul.f32 %v4144_v7, %v3571_v57  ;;  %v3481_v48 = vadd.f32 %v3480_v38, %v3413_v4  ;;  %vm3608_vm8 = vweird.f32 %v4144_v7 }
 0x368   :  { %v3572_v50 = vadd.f32 1.0, %v4146_v19  ;;  %vm3609_vm9 = vmor %vm3607_vm7, %vm3608_vm8 }
 0x369   :  { %v3591_v42 = vadd.f32 %v4142_v8, %v3590_v0  ;;  %v3604_v13 = vsub.f32 1.0, %v3603_v15  ;;  %v3523_v52 = vsub.f32 0.0, %v3481_v48  ;;  %v3486_v33 = vpop.f32.mrf.mxu3 }
 0x36a   :  { %4149 = vrcp.f32 %v3572_v50  ;;  %v3628_v40 = vand.u32 2147483648, %v3572_v50  ;;  %v3626_v62 = vand.u32 2147483647, %v3572_v50  ;;  %vm3622_vm5 = vweird.f32 %v3572_v50 }
 0x36b   :  { %v3595_v11 = vsel %vm3594_vm13, %v4142_v8, %v3591_v42  ;;  %v3605_v51 = vmul.f32 %v4144_v7, %v3604_v13  ;;  %v4148_v36 = vpop.eup %4147  ;;  %v3544_v49 = vmul.f32 1.442695, %v3523_v52 }
 0x36c   :  { %v3600_v35 = vsel %vm3597_vm11, %v3599_v47, %v3595_v11  ;;  %v3573_v39 = vadd.f32 1.0, %v4148_v36  ;;  %v3415_v46 = vpop.f32.mrf.mxu2  ;;  %v3629_v57 = vor.u32 1.1754944e-38, %v3628_v40  ;;  %vm3627_vm15 = vcmp.eq.f32.partialorder %v3626_v62, 8.507059e+37 }
 0x36d   :  { %3843 = vst.msk [vmem:[%s8008_s7] sm:$0xff] %vm3842_vm10, %v3600_v35  ;;  %v3606_v56 = vadd.f32 %v4144_v7, %v3605_v51  ;;  %4151 = vpow2.f32 %v3544_v49  ;;  %v3416_v53 = vadd.f32 %v7876_v31, %v3415_v46 }
 0x36e   :  { %4153 = vrcp.f32 %v3573_v39  ;;  %v3643_v8 = vand.u32 2147483648, %v3573_v39  ;;  %v3641_v22 = vand.u32 2147483647, %v3573_v39  ;;  %vm3637_vm12 = vweird.f32 %v3573_v39 }
 0x36f   :  { %v3610_v27 = vsel %vm3609_vm9, %v4144_v7, %v3606_v56  ;;  %v3484_v25 = vadd.f32 %v3483_v12, %v3416_v53 }
 0x370   :  { %v4150_v6 = vpop.eup %4149  ;;  %v3615_v28 = vsel %vm3612_vm1, %v3614_v63, %v3610_v27  ;;  %v3644_v17 = vor.u32 1.1754944e-38, %v3643_v8  ;;  %vm3642_vm14 = vcmp.eq.f32.partialorder %v3641_v22, 8.507059e+37 }
 0x371   :  { %3844 = vst.msk [vmem:[%s8008_s7 + $0x8] sm:$0xff] %vm3842_vm10, %v3615_v28  ;;  %v3618_v37 = vmul.f32 %v4150_v6, %v3572_v50  ;;  %v3524_v10 = vsub.f32 0.0, %v3484_v25  ;;  %vm3623_vm0 = vweird.f32 %v4150_v6  ;;  %v3489_v19 = vpop.f32.mrf.mxu3 }
 0x372   :  { %vm3624_vm3 = vmor %vm3622_vm5, %vm3623_vm0 }
 0x373   :  { %v3619_v9 = vsub.f32 1.0, %v3618_v37  ;;  %v4152_v21 = vpop.eup %4151  ;;  %v3546_v43 = vmul.f32 1.442695, %v3524_v10 }
 0x374   :  { %v4154_v41 = vpop.eup %4153  ;;  %v3574_v44 = vadd.f32 1.0, %v4152_v21  ;;  %v3418_v55 = vpop.f32.mrf.mxu2 }
 0x375   :  { %v3620_v30 = vmul.f32 %v4150_v6, %v3619_v9  ;;  %v3633_v45 = vmul.f32 %v4154_v41, %v3573_v39  ;;  %4155 = vpow2.f32 %v3546_v43  ;;  %v3419_v24 = vadd.f32 %v7876_v31, %v3418_v55 }
 0x376   :  { %4157 = vrcp.f32 %v3574_v44  ;;  %vm3638_vm2 = vweird.f32 %v4154_v41  ;;  %v3658_v23 = vand.u32 2147483648, %v3574_v44  ;;  %v3656_v4 = vand.u32 2147483647, %v3574_v44 }
 0x377   :  { %v3621_v18 = vadd.f32 %v4150_v6, %v3620_v30  ;;  %v3634_v59 = vsub.f32 1.0, %v3633_v45  ;;  %v3487_v26 = vadd.f32 %v3486_v33, %v3419_v24  ;;  %vm3639_vm4 = vmor %vm3637_vm12, %vm3638_vm2  ;;  %vm3652_vm13 = vweird.f32 %v3574_v44 }
 0x378   :  { %v3659_v48 = vor.u32 1.1754944e-38, %v3658_v23  ;;  %vm3657_vm8 = vcmp.eq.f32.partialorder %v3656_v4, 8.507059e+37 }
 0x379   :  { %v3625_v20 = vsel %vm3624_vm3, %v4150_v6, %v3621_v18  ;;  %v3635_v2 = vmul.f32 %v4154_v41, %v3634_v59  ;;  %v3525_v29 = vsub.f32 0.0, %v3487_v26 }
 0x37a   :  { %v3630_v3 = vsel %vm3627_vm15, %v3629_v57, %v3625_v20 }
 0x37b   :  { %3845 = vst.msk [vmem:[%s8008_s7 + $0x10] sm:$0xff] %vm3842_vm10, %v3630_v3  ;;  %v4156_v14 = vpop.eup %4155  ;;  %v3636_v58 = vadd.f32 %v4154_v41, %v3635_v2  ;;  %v3548_v32 = vmul.f32 1.442695, %v3525_v29 }
 0x37c   :  { %v4158_v61 = vpop.eup %4157  ;;  %v3575_v54 = vadd.f32 1.0, %v4156_v14  ;;  %v3421_v1 = vpop.f32.mrf.mxu2 }
 0x37d   :  { %v3640_v16 = vsel %vm3639_vm4, %v4154_v41, %v3636_v58  ;;  %v3648_v38 = vmul.f32 %v4158_v61, %v3574_v44  ;;  %v3422_v0 = vadd.f32 %v7876_v31, %v3421_v1  ;;  %vm3653_vm6 = vweird.f32 %v4158_v61  ;;  %v3492_v43 = vpop.f32.mrf.mxu3 }
 0x37e   :  { %v3645_v34 = vsel %vm3642_vm14, %v3644_v17, %v3640_v16  ;;  %4159 = vrcp.f32 %v3575_v54  ;;  %vm3654_vm11 = vmor %vm3652_vm13, %vm3653_vm6  ;;  %v3673_v56 = vand.u32 2147483648, %v3575_v54  ;;  %v3671_v63 = vand.u32 2147483647, %v3575_v54 }
 0x37f   :  { %3846 = vst.msk [vmem:[%s8008_s7 + $0x18] sm:$0xff] %vm3842_vm10, %v3645_v34  ;;  %v3649_v7 = vsub.f32 1.0, %v3648_v38  ;;  %4161 = vpow2.f32 %v3548_v32  ;;  %v3490_v42 = vadd.f32 %v3489_v19, %v3422_v0  ;;  %vm3667_vm9 = vweird.f32 %v3575_v54 }
 0x380   :  { %v3674_v12 = vor.u32 1.1754944e-38, %v3673_v56  ;;  %vm3672_vm0 = vcmp.eq.f32.partialorder %v3671_v63, 8.507059e+37 }
 0x381   :  { %v3650_v15 = vmul.f32 %v4158_v61, %v3649_v7  ;;  %v3526_v47 = vsub.f32 0.0, %v3490_v42 }
 0x383   :  { %v3651_v50 = vadd.f32 %v4158_v61, %v3650_v15  ;;  %v3550_v35 = vmul.f32 1.442695, %v3526_v47 }
 0x384   :  { %v4160_v13 = vpop.eup %4159 }
 0x385   :  { %v4162_v11 = vpop.eup %4161  ;;  %v3655_v5 = vsel %vm3654_vm11, %v4158_v61, %v3651_v50  ;;  %v3663_v60 = vmul.f32 %v4160_v13, %v3575_v54  ;;  %4163 = vpow2.f32 %v3550_v35  ;;  %vm3668_vm7 = vweird.f32 %v4160_v13 }
 0x386   :  { %v3660_v51 = vsel %vm3657_vm8, %v3659_v48, %v3655_v5  ;;  %v3576_v52 = vadd.f32 1.0, %v4162_v11  ;;  %vm3669_vm1 = vmor %vm3667_vm9, %vm3668_vm7 }
 0x387   :  { %3847 = vst.msk [vmem:[%s8008_s7 + $0x20] sm:$0xff] %vm3842_vm10, %v3660_v51  ;;  %v3664_v36 = vsub.f32 1.0, %v3663_v60 }
 0x388   :  { %4165 = vrcp.f32 %v3576_v52  ;;  %v3688_v9 = vand.u32 2147483648, %v3576_v52  ;;  %v3686_v40 = vand.u32 2147483647, %v3576_v52  ;;  %vm3682_vm3 = vweird.f32 %v3576_v52 }
 0x389   :  { %v3665_v49 = vmul.f32 %v4160_v13, %v3664_v36 }
 0x38a   :  { %v3689_v44 = vor.u32 1.1754944e-38, %v3688_v9  ;;  %vm3687_vm2 = vcmp.eq.f32.partialorder %v3686_v40, 8.507059e+37 }
 0x38b   :  { %v3666_v39 = vadd.f32 %v4160_v13, %v3665_v49  ;;  %v4164_v46 = vpop.eup %4163 }
 0x38c   :  { %v3577_v28 = vadd.f32 1.0, %v4164_v46 }
 0x38d   :  { %v3670_v27 = vsel %vm3669_vm1, %v4160_v13, %v3666_v39 }
 0x38e   :  { %v4166_v53 = vpop.eup %4165  ;;  %v3675_v6 = vsel %vm3672_vm0, %v3674_v12, %v3670_v27  ;;  %4167 = vrcp.f32 %v3577_v28  ;;  %v3424_v21 = vpop.f32.mrf.mxu2  ;;  %v3703_v59 = vand.u32 2147483648, %v3577_v28  ;;  %v3701_v8 = vand.u32 2147483647, %v3577_v28 }
 0x38f   :  { %3848 = vst.msk [vmem:[%s8008_s7 + $0x28] sm:$0xff] %vm3842_vm10, %v3675_v6  ;;  %v3678_v37 = vmul.f32 %v4166_v53, %v3576_v52  ;;  %vm3683_vm5 = vweird.f32 %v4166_v53  ;;  %v3425_v30 = vadd.f32 %v7876_v31, %v3424_v21  ;;  %vm3697_vm4 = vweird.f32 %v3577_v28 }
 0x390   :  { %vm3684_vm15 = vmor %vm3682_vm3, %vm3683_vm5  ;;  %v3704_v22 = vor.u32 1.1754944e-38, %v3703_v59  ;;  %vm3702_vm6 = vcmp.eq.f32.partialorder %v3701_v8, 8.507059e+37 }
 0x391   :  { %v3679_v25 = vsub.f32 1.0, %v3678_v37  ;;  %v3493_v55 = vadd.f32 %v3492_v43, %v3425_v30 }
 0x393   :  { %v3680_v10 = vmul.f32 %v4166_v53, %v3679_v25  ;;  %v3527_v33 = vsub.f32 0.0, %v3493_v55 }
 0x394   :  { %v4168_v41 = vpop.eup %4167 }
 0x395   :  { %v3681_v62 = vadd.f32 %v4166_v53, %v3680_v10  ;;  %v3693_v45 = vmul.f32 %v4168_v41, %v3577_v28  ;;  %v3552_v24 = vmul.f32 1.442695, %v3527_v33  ;;  %vm3698_vm12 = vweird.f32 %v4168_v41  ;;  %v3495_v29 = vpop.f32.mrf.mxu3 }
 0x396   :  { %vm3699_vm14 = vmor %vm3697_vm4, %vm3698_vm12 }
 0x397   :  { %v3685_v18 = vsel %vm3684_vm15, %v4166_v53, %v3681_v62  ;;  %v3694_v20 = vsub.f32 1.0, %v3693_v45  ;;  %4169 = vpow2.f32 %v3552_v24 }
 0x398   :  { %v3690_v57 = vsel %vm3687_vm2, %v3689_v44, %v3685_v18 }
 0x399   :  { %3849 = vst.msk [vmem:[%s8008_s7 + $0x30] sm:$0xff] %vm3842_vm10, %v3690_v57  ;;  %v3695_v3 = vmul.f32 %v4168_v41, %v3694_v20 }
 0x39b   :  { %v3696_v2 = vadd.f32 %v4168_v41, %v3695_v3 }
 0x39d   :  { %v3700_v26 = vsel %vm3699_vm14, %v4168_v41, %v3696_v2  ;;  %v4170_v58 = vpop.eup %4169 }
 0x39e   :  { %v3705_v14 = vsel %vm3702_vm6, %v3704_v22, %v3700_v26  ;;  %v3578_v17 = vadd.f32 1.0, %v4170_v58 }
 0x39f   :  { %3850 = vst.msk [vmem:[%s8008_s7 + $0x38] sm:$0xff] %vm3842_vm10, %v3705_v14  ;;  %v3427_v61 = vpop.f32.mrf.mxu2 }
 0x3a0   :  { %v3428_v54 = vadd.f32 %v7876_v31, %v3427_v61  ;;  %4171 = vrcp.f32 %v3578_v17  ;;  %v3718_v4 = vand.u32 2147483648, %v3578_v17  ;;  %v3716_v47 = vand.u32 2147483647, %v3578_v17 }
 0x3a1   :  { %vm3712_vm11 = vweird.f32 %v3578_v17 }
 0x3a2   :  { %v3496_v16 = vadd.f32 %v3495_v29, %v3428_v54  ;;  %v3719_v5 = vor.u32 1.1754944e-38, %v3718_v4  ;;  %vm3717_vm7 = vcmp.eq.f32.partialorder %v3716_v47, 8.507059e+37 }
 0x3a4   :  { %v3528_v38 = vsub.f32 0.0, %v3496_v16 }
 0x3a5   :  { %v3498_v23 = vpop.f32.mrf.mxu3 }
 0x3a6   :  { %v3554_v32 = vmul.f32 1.442695, %v3528_v38  ;;  %v4172_v34 = vpop.eup %4171 }
 0x3a7   :  { %v3430_v1 = vpop.f32.mrf.mxu2  ;;  %v3708_v0 = vmul.f32 %v4172_v34, %v3578_v17  ;;  %vm3713_vm13 = vweird.f32 %v4172_v34 }
 0x3a8   :  { %v3431_v7 = vadd.f32 %v7876_v31, %v3430_v1  ;;  %4173 = vpow2.f32 %v3554_v32  ;;  %vm3714_vm8 = vmor %vm3712_vm11, %vm3713_vm13 }
 0x3a9   :  { %v3709_v15 = vsub.f32 1.0, %v3708_v0 }
 0x3aa   :  { %v3499_v19 = vadd.f32 %v3498_v23, %v3431_v7 }
 0x3ab   :  { %v3710_v50 = vmul.f32 %v4172_v34, %v3709_v15 }
 0x3ac   :  { %v3529_v42 = vsub.f32 0.0, %v3499_v19 }
 0x3ad   :  { %v3711_v11 = vadd.f32 %v4172_v34, %v3710_v50 }
 0x3ae   :  { %v3556_v13 = vmul.f32 1.442695, %v3529_v42  ;;  %v4174_v48 = vpop.eup %4173 }
 0x3af   :  { %v3579_v60 = vadd.f32 1.0, %v4174_v48  ;;  %v3715_v35 = vsel %vm3714_vm8, %v4172_v34, %v3711_v11 }
 0x3b0   :  { %4175 = vpow2.f32 %v3556_v13  ;;  %v3720_v51 = vsel %vm3717_vm7, %v3719_v5, %v3715_v35  ;;  %v3501_v52 = vpop.f32.mrf.mxu3 }
 0x3b1   :  { %4177 = vrcp.f32 %v3579_v60  ;;  %3851 = vst.msk [vmem:[%s8008_s7 + $0x40] sm:$0xff] %vm3842_vm10, %v3720_v51  ;;  %v3733_v28 = vand.u32 2147483648, %v3579_v60  ;;  %v3731_v9 = vand.u32 2147483647, %v3579_v60  ;;  %vm3727_vm1 = vweird.f32 %v3579_v60 }
 0x3b3   :  { %v3734_v43 = vor.u32 1.1754944e-38, %v3733_v28  ;;  %vm3732_vm5 = vcmp.eq.f32.partialorder %v3731_v9, 8.507059e+37 }
 0x3b6   :  { %v3433_v36 = vpop.f32.mrf.mxu2  ;;  %v4176_v49 = vpop.eup %4175 }
 0x3b7   :  { %v3434_v56 = vadd.f32 %v7876_v31, %v3433_v36  ;;  %v3580_v39 = vadd.f32 1.0, %v4176_v49  ;;  %v4178_v12 = vpop.eup %4177 }
 0x3b8   :  { %v3723_v27 = vmul.f32 %v4178_v12, %v3579_v60  ;;  %vm3728_vm9 = vweird.f32 %v4178_v12  ;;  %v3504_v10 = vpop.f32.mrf.mxu3 }
 0x3b9   :  { %v3502_v63 = vadd.f32 %v3501_v52, %v3434_v56  ;;  %4179 = vrcp.f32 %v3580_v39  ;;  %vm3729_vm0 = vmor %vm3727_vm1, %vm3728_vm9  ;;  %v3748_v33 = vand.u32 2147483648, %v3580_v39  ;;  %v3746_v3 = vand.u32 2147483647, %v3580_v39 }
 0x3ba   :  { %v3724_v6 = vsub.f32 1.0, %v3723_v27  ;;  %vm3742_vm15 = vweird.f32 %v3580_v39 }
 0x3bb   :  { %v3530_v46 = vsub.f32 0.0, %v3502_v63  ;;  %v3749_v2 = vor.u32 1.1754944e-38, %v3748_v33  ;;  %vm3747_vm12 = vcmp.eq.f32.partialorder %v3746_v3, 8.507059e+37 }
 0x3bc   :  { %v3725_v25 = vmul.f32 %v4178_v12, %v3724_v6 }
 0x3bd   :  { %v3558_v53 = vmul.f32 1.442695, %v3530_v46 }
 0x3be   :  { %v3726_v30 = vadd.f32 %v4178_v12, %v3725_v25 }
 0x3bf   :  { %4181 = vpow2.f32 %v3558_v53  ;;  %v4180_v21 = vpop.eup %4179 }
 0x3c0   :  { %v3436_v37 = vpop.f32.mrf.mxu2  ;;  %v3738_v41 = vmul.f32 %v4180_v21, %v3580_v39  ;;  %v3730_v44 = vsel %vm3729_vm0, %v4178_v12, %v3726_v30  ;;  %vm3743_vm3 = vweird.f32 %v4180_v21 }
 0x3c1   :  { %v3437_v40 = vadd.f32 %v7876_v31, %v3436_v37  ;;  %v3735_v45 = vsel %vm3732_vm5, %v3734_v43, %v3730_v44  ;;  %vm3744_vm2 = vmor %vm3742_vm15, %vm3743_vm3 }
 0x3c2   :  { %v3739_v57 = vsub.f32 1.0, %v3738_v41  ;;  %3852 = vst.msk [vmem:[%s8008_s7 + $0x48] sm:$0xff] %vm3842_vm10, %v3735_v45 }
 0x3c3   :  { %v3505_v62 = vadd.f32 %v3504_v10, %v3437_v40 }
 0x3c4   :  { %v3740_v24 = vmul.f32 %v4180_v21, %v3739_v57 }
 0x3c5   :  { %v3531_v55 = vsub.f32 0.0, %v3505_v62  ;;  %v4182_v18 = vpop.eup %4181 }
 0x3c6   :  { %v3581_v20 = vadd.f32 1.0, %v4182_v18  ;;  %v3741_v8 = vadd.f32 %v4180_v21, %v3740_v24 }
 0x3c7   :  { %v3560_v59 = vmul.f32 1.442695, %v3531_v55  ;;  %v3507_v22 = vpop.f32.mrf.mxu3 }
 0x3c8   :  { %4183 = vrcp.f32 %v3581_v20  ;;  %v3745_v14 = vsel %vm3744_vm2, %v4180_v21, %v3741_v8  ;;  %v3763_v7 = vand.u32 2147483648, %v3581_v20  ;;  %v3761_v23 = vand.u32 2147483647, %v3581_v20 }
 0x3c9   :  { %4185 = vpow2.f32 %v3560_v59  ;;  %v3750_v29 = vsel %vm3747_vm12, %v3749_v2, %v3745_v14  ;;  %vm3757_vm14 = vweird.f32 %v3581_v20 }
 0x3ca   :  { %3853 = vst.msk [vmem:[%s8008_s7 + $0x50] sm:$0xff] %vm3842_vm10, %v3750_v29  ;;  %v3764_v50 = vor.u32 1.1754944e-38, %v3763_v7  ;;  %vm3762_vm13 = vcmp.eq.f32.partialorder %v3761_v23, 8.507059e+37 }
 0x3cc   :  { %v3439_v26 = vpop.f32.mrf.mxu2 }
 0x3cd   :  { %v3440_v58 = vadd.f32 %v7876_v31, %v3439_v26 }
 0x3ce   :  { %v4184_v17 = vpop.eup %4183 }
 0x3cf   :  { %v3508_v61 = vadd.f32 %v3507_v22, %v3440_v58  ;;  %v4186_v54 = vpop.eup %4185  ;;  %v3753_v16 = vmul.f32 %v4184_v17, %v3581_v20  ;;  %vm3758_vm4 = vweird.f32 %v4184_v17 }
 0x3d0   :  { %v3582_v32 = vadd.f32 1.0, %v4186_v54  ;;  %v3510_v15 = vpop.f32.mrf.mxu3  ;;  %vm3759_vm6 = vmor %vm3757_vm14, %vm3758_vm4 }
 0x3d1   :  { %v3532_v38 = vsub.f32 0.0, %v3508_v61  ;;  %v3754_v1 = vsub.f32 1.0, %v3753_v16 }
 0x3d2   :  { %4187 = vrcp.f32 %v3582_v32  ;;  %v3776_v49 = vand.u32 2147483647, %v3582_v32  ;;  %v3778_v63 = vand.u32 2147483648, %v3582_v32  ;;  %vm3772_vm8 = vweird.f32 %v3582_v32 }
 0x3d3   :  { %v3562_v34 = vmul.f32 1.442695, %v3532_v38  ;;  %v3755_v0 = vmul.f32 %v4184_v17, %v3754_v1 }
 0x3d4   :  { %v3779_v6 = vor.u32 1.1754944e-38, %v3778_v63  ;;  %vm3777_vm9 = vcmp.eq.f32.partialorder %v3776_v49, 8.507059e+37 }
 0x3d5   :  { %4189 = vpow2.f32 %v3562_v34  ;;  %v3442_v19 = vpop.f32.mrf.mxu2  ;;  %v3756_v42 = vadd.f32 %v4184_v17, %v3755_v0 }
 0x3d6   :  { %v3443_v4 = vadd.f32 %v7876_v31, %v3442_v19 }
 0x3d7   :  { %v3760_v13 = vsel %vm3759_vm6, %v4184_v17, %v3756_v42 }
 0x3d8   :  { %v3511_v47 = vadd.f32 %v3510_v15, %v3443_v4  ;;  %v4188_v48 = vpop.eup %4187  ;;  %v3765_v11 = vsel %vm3762_vm13, %v3764_v50, %v3760_v13 }
 0x3d9   :  { %3854 = vst.msk [vmem:[%s8008_s7 + $0x58] sm:$0xff] %vm3842_vm10, %v3765_v11  ;;  %v3768_v35 = vmul.f32 %v4188_v48, %v3582_v32  ;;  %vm3773_vm11 = vweird.f32 %v4188_v48 }
 0x3da   :  { %v3533_v5 = vsub.f32 0.0, %v3511_v47  ;;  %vm3774_vm7 = vmor %vm3772_vm8, %vm3773_vm11 }
 0x3db   :  { %v4190_v60 = vpop.eup %4189  ;;  %v3769_v36 = vsub.f32 1.0, %v3768_v35  ;;  %v3513_v46 = vpop.f32.mrf.mxu3 }
 0x3dc   :  { %v3583_v51 = vadd.f32 1.0, %v4190_v60  ;;  %v3564_v52 = vmul.f32 1.442695, %v3533_v5 }
 0x3dd   :  { %v3445_v56 = vpop.f32.mrf.mxu2  ;;  %v3770_v39 = vmul.f32 %v4188_v48, %v3769_v36 }
 0x3de   :  { %4191 = vrcp.f32 %v3583_v51  ;;  %v3446_v12 = vadd.f32 %v7876_v31, %v3445_v56  ;;  %v3793_v43 = vand.u32 2147483648, %v3583_v51  ;;  %v3791_v44 = vand.u32 2147483647, %v3583_v51 }
 0x3df   :  { %4193 = vpow2.f32 %v3564_v52  ;;  %v3771_v27 = vadd.f32 %v4188_v48, %v3770_v39  ;;  %vm3787_vm0 = vweird.f32 %v3583_v51 }
 0x3e0   :  { %v3514_v53 = vadd.f32 %v3513_v46, %v3446_v12  ;;  %v3794_v33 = vor.u32 1.1754944e-38, %v3793_v43  ;;  %vm3792_vm3 = vcmp.eq.f32.partialorder %v3791_v44, 8.507059e+37 }
 0x3e1   :  { %v3775_v28 = vsel %vm3774_vm7, %v4188_v48, %v3771_v27 }
 0x3e2   :  { %v3534_v37 = vsub.f32 0.0, %v3514_v53  ;;  %v3780_v9 = vsel %vm3777_vm9, %v3779_v6, %v3775_v28 }
 0x3e3   :  { %3855 = vst.msk [vmem:[%s8008_s7 + $0x60] sm:$0xff] %vm3842_vm10, %v3780_v9 }
 0x3e4   :  { %v4192_v25 = vpop.eup %4191  ;;  %v3566_v21 = vmul.f32 1.442695, %v3534_v37 }
 0x3e5   :  { %v4194_v10 = vpop.eup %4193  ;;  %v3783_v40 = vmul.f32 %v4192_v25, %v3583_v51  ;;  %vm3788_vm1 = vweird.f32 %v4192_v25  ;;  %v3516_v57 = vpop.f32.mrf.mxu3 }
 0x3e6   :  { %v3584_v30 = vadd.f32 1.0, %v4194_v10  ;;  %4195 = vpow2.f32 %v3566_v21  ;;  %vm3789_vm5 = vmor %vm3787_vm0, %vm3788_vm1 }
 0x3e7   :  { %v3784_v62 = vsub.f32 1.0, %v3783_v40 }
 0x3e8   :  { %4197 = vrcp.f32 %v3584_v30  ;;  %v3808_v58 = vand.u32 2147483648, %v3584_v30  ;;  %v3806_v61 = vand.u32 2147483647, %v3584_v30  ;;  %vm3802_vm2 = vweird.f32 %v3584_v30 }
 0x3e9   :  { %v3785_v41 = vmul.f32 %v4192_v25, %v3784_v62 }
 0x3ea   :  { %v3448_v55 = vpop.f32.mrf.mxu2  ;;  %v3809_v16 = vor.u32 1.1754944e-38, %v3808_v58  ;;  %vm3807_vm4 = vcmp.eq.f32.partialorder %v3806_v61, 8.507059e+37 }
 0x3eb   :  { %v3449_v18 = vadd.f32 %v7876_v31, %v3448_v55  ;;  %v3786_v45 = vadd.f32 %v4192_v25, %v3785_v41 }
 0x3ec   :  { %v4196_v59 = vpop.eup %4195 }
 0x3ed   :  { %v3517_v20 = vadd.f32 %v3516_v57, %v3449_v18  ;;  %v3790_v24 = vsel %vm3789_vm5, %v4192_v25, %v3786_v45  ;;  %v3585_v2 = vadd.f32 1.0, %v4196_v59 }
 0x3ee   :  { %v4198_v3 = vpop.eup %4197  ;;  %v3795_v8 = vsel %vm3792_vm3, %v3794_v33, %v3790_v24 }
 0x3ef   :  { %v3535_v22 = vsub.f32 0.0, %v3517_v20  ;;  %3856 = vst.msk [vmem:[%s8008_s7 + $0x68] sm:$0xff] %vm3842_vm10, %v3795_v8  ;;  %v3798_v26 = vmul.f32 %v4198_v3, %v3584_v30  ;;  %4199 = vrcp.f32 %v3585_v2  ;;  %vm3803_vm15 = vweird.f32 %v4198_v3 }
 0x3f0   :  { %vm3804_vm12 = vmor %vm3802_vm2, %vm3803_vm15  ;;  %v3823_v0 = vand.u32 2147483648, %v3585_v2  ;;  %v3821_v15 = vand.u32 2147483647, %v3585_v2  ;;  %vm3817_vm6 = vweird.f32 %v3585_v2 }
 0x3f1   :  { %v3799_v31 = vsub.f32 1.0, %v3798_v26  ;;  %v3568_v14 = vmul.f32 1.442695, %v3535_v22 }
 0x3f2   :  { %v3824_v42 = vor.u32 1.1754944e-38, %v3823_v0  ;;  %vm3822_vm11 = vcmp.eq.f32.partialorder %v3821_v15, 8.507059e+37 }
 0x3f3   :  { %v3800_v29 = vmul.f32 %v4198_v3, %v3799_v31  ;;  %4201 = vpow2.f32 %v3568_v14 }
 0x3f5   :  { %v3801_v17 = vadd.f32 %v4198_v3, %v3800_v29  ;;  %v4200_v54 = vpop.eup %4199 }
 0x3f6   :  { %v3813_v32 = vmul.f32 %v4200_v54, %v3585_v2  ;;  %vm3818_vm14 = vweird.f32 %v4200_v54 }
 0x3f7   :  { %v3805_v38 = vsel %vm3804_vm12, %v4198_v3, %v3801_v17  ;;  %vm3819_vm13 = vmor %vm3817_vm6, %vm3818_vm14 }
 0x3f8   :  { %v3810_v1 = vsel %vm3807_vm4, %v3809_v16, %v3805_v38  ;;  %v3814_v7 = vsub.f32 1.0, %v3813_v32 }
 0x3f9   :  { %v4202_v34 = vpop.eup %4201  ;;  %3857 = vst.msk [vmem:[%s8008_s7 + $0x70] sm:$0xff] %vm3842_vm10, %v3810_v1 }
 0x3fa   :  { %v3586_v23 = vadd.f32 1.0, %v4202_v34  ;;  %v3815_v19 = vmul.f32 %v4200_v54, %v3814_v7 }
 0x3fc   :  { %4203 = vrcp.f32 %v3586_v23  ;;  %v3816_v4 = vadd.f32 %v4200_v54, %v3815_v19  ;;  %v3838_v5 = vand.u32 2147483648, %v3586_v23  ;;  %v3836_v35 = vand.u32 2147483647, %v3586_v23 }
 0x3fd   :  { %vm3832_vm7 = vweird.f32 %v3586_v23 }
 0x3fe   :  { %v3820_v50 = vsel %vm3819_vm13, %v4200_v54, %v3816_v4  ;;  %v3839_v52 = vor.u32 1.1754944e-38, %v3838_v5  ;;  %vm3837_vm1 = vcmp.eq.f32.partialorder %v3836_v35, 8.507059e+37 }
 0x3ff   :  { %v3825_v47 = vsel %vm3822_vm11, %v3824_v42, %v3820_v50 }
 0x400   :  { %3858 = vst.msk [vmem:[%s8008_s7 + $0x78] sm:$0xff] %vm3842_vm10, %v3825_v47 }
 0x402   :  { %v4204_v13 = vpop.eup %4203 }
 0x403   :  { %v3828_v48 = vmul.f32 %v4204_v13, %v3586_v23  ;;  %vm3833_vm8 = vweird.f32 %v4204_v13 }
 0x404   :  { %vm3834_vm9 = vmor %vm3832_vm7, %vm3833_vm8 }
 0x405   :  { %v3829_v11 = vsub.f32 1.0, %v3828_v48 }
 0x407   :  { %v3830_v60 = vmul.f32 %v4204_v13, %v3829_v11 }
 0x409   :  { %v3831_v51 = vadd.f32 %v4204_v13, %v3830_v60 }
 0x40b   :  { %v3835_v36 = vsel %vm3834_vm9, %v4204_v13, %v3831_v51 }
 0x40c   :  { %v3840_v56 = vsel %vm3837_vm1, %v3839_v52, %v3835_v36 }
 0x40d   :  { %3859 = vst.msk [vmem:[%s8008_s7 + $0x80] sm:$0xff] %vm3842_vm10, %v3840_v56 }

</bundles_post_ra>
